<compile_context>
chip_gen: v5e
topology: v5e:2x2
jax: 0.10.0
libtpu: 0.0.40
codegen_flags: <defaults>
</compile_context>

<pallas_src>
import functools

import jax
import jax.numpy as jnp
import numpy as np
from jax import lax
from jax.experimental import pallas as pl
from jax.experimental.pallas import tpu as pltpu


def _sine_layer_kernel(x_ref, w_ref, b_ref, o_ref, *, omega):
    # x_ref: (tm, K)  VMEM
    # w_ref: (tn, K)  VMEM  (nn.Linear layout: out_features x in_features)
    # b_ref: (1, tn)  VMEM
    # o_ref: (tm, tn) VMEM
    acc = lax.dot_general(
        x_ref[...], w_ref[...],
        dimension_numbers=(((1,), (1,)), ((), ())),   # contract K with K -> (tm, tn)
        preferred_element_type=jnp.float32,
    )
    acc = acc + b_ref[...]                            # broadcast (1, tn) over rows
    o_ref[...] = jnp.sin(omega * acc).astype(o_ref.dtype)


def sine_layer(x, weight, bias=None, omega=30.0, *, tm=512, tn=512):
    """y = sin(omega * (x @ weight.T + bias)), matching torch.nn.Linear semantics.

    x:      (M, K)  float32   (n_samples, in_features)
    weight: (N, K)  float32   (out_features, in_features)
    bias:   (N,)    float32 or None
    """
    M, K = x.shape
    N, K2 = weight.shape
    assert K == K2, "in_features mismatch"

    if bias is None:
        bias = jnp.zeros((N,), x.dtype)
    b2 = bias.reshape(1, N)

    # Tile sizes: full extent when small (satisfies the (8,128) rule by equaling
    # the array dim); otherwise 512 (multiple of 8 / 128). Partial edge tiles are
    # handled by the cdiv grid (OOB rows/cols are dropped on writeback).
    tm = M if M <= tm else tm
    tn = N if N <= tn else tn
    grid = (pl.cdiv(M, tm), pl.cdiv(N, tn))

    kernel = functools.partial(_sine_layer_kernel, omega=float(omega))
    cost = pl.CostEstimate(
        flops=2 * M * N * K,
        transcendentals=M * N,
        bytes_accessed=(M * K + N * K + M * N + N) * 4,
    )

    return pl.pallas_call(
        kernel,
        out_shape=jax.ShapeDtypeStruct((M, N), x.dtype),
        grid_spec=pltpu.PrefetchScalarGridSpec(
            num_scalar_prefetch=0,
            grid=grid,
            in_specs=[
                pl.BlockSpec((tm, K), lambda i, j: (i, 0)),   # x tile (rows)
                pl.BlockSpec((tn, K), lambda i, j: (j, 0)),   # weight tile (out cols)
                pl.BlockSpec((1, tn), lambda i, j: (0, j)),   # bias tile
            ],
            out_specs=pl.BlockSpec((tm, tn), lambda i, j: (i, j)),
        ),
        compiler_params=pltpu.CompilerParams(
            dimension_semantics=("parallel", "parallel"),
        ),
        cost_estimate=cost,
    )(x, weight, b2)


def paper_init(key, out_features, in_features, is_first=False, omega=30.0):
    """SIREN paper init (matches paper_init_ in the PyTorch code)."""
    if is_first:
        bound = 1.0 / in_features
    else:
        bound = np.sqrt(6.0 / in_features) / omega
    return jax.random.uniform(
        key, (out_features, in_features), jnp.float32, minval=-bound, maxval=bound
    )


def _make_params(key, n_samples, in_features, out_features, is_first, omega):
    kx, kw, kb = jax.random.split(key, 3)
    x = jax.random.normal(kx, (n_samples, in_features), jnp.float32)
    w = paper_init(kw, out_features, in_features, is_first=is_first, omega=omega)
    b_bound = 1.0 / np.sqrt(in_features)
    b = jax.random.uniform(kb, (out_features,), jnp.float32,
                           minval=-b_bound, maxval=b_bound)
    return x, w, b


if __name__ == "__main__":
    omega = 30.0
    key = jax.random.PRNGKey(0)
    k1, k2 = jax.random.split(key)

    # Case 1: small shapes consistent with the module (single tile).
    x, w, b = _make_params(k1, n_samples=128, in_features=32, out_features=64,
                           is_first=True, omega=omega)
    y = sine_layer(x, w, b, omega=omega)
    jax.block_until_ready(y)
    y_ref = jnp.sin(omega * (x @ w.T + b))
    np.testing.assert_allclose(np.asarray(y), np.asarray(y_ref), rtol=1e-5, atol=1e-5)

    # Case 2: larger M to exercise the (M, N)-tiled, pipelined path (grid > 1).
    x2, w2, b2 = _make_params(k2, n_samples=1024, in_features=64, out_features=256,
                              is_first=False, omega=omega)
    y2 = sine_layer(x2, w2, b2, omega=omega)
    jax.block_until_ready(y2)
    y2_ref = jnp.sin(omega * (x2 @ w2.T + b2))
    np.testing.assert_allclose(np.asarray(y2), np.asarray(y2_ref), rtol=1e-5, atol=1e-5)

    print("KERNEL_OK")
</pallas_src>

<mosaic_0001>
module attributes {stable_mosaic.version = 11 : i64} {
  func.func @_sine_layer_kernel(%arg0: i32, %arg1: i32, %arg2: memref<128x32xf32, #tpu.memory_space<vmem>>, %arg3: memref<64x32xf32, #tpu.memory_space<vmem>>, %arg4: memref<1x64xf32, #tpu.memory_space<vmem>>, %arg5: memref<128x64xf32, #tpu.memory_space<vmem>>) attributes {dimension_semantics = [#tpu.dimension_semantics<parallel>, #tpu.dimension_semantics<parallel>], iteration_bounds = array<i64: 1, 1>, scalar_prefetch = 0 : i64, scratch_operands = 0 : i64, tpu.core_type = #tpu.core_type<tc>, window_params = [{transform_indices = @transform_0, window_bounds = array<i64: 128, 32>}, {transform_indices = @transform_1, window_bounds = array<i64: 64, 32>}, {transform_indices = @transform_2, window_bounds = array<i64: 1, 64>}, {transform_indices = @transform_3, window_bounds = array<i64: 128, 64>}]} {
    %c0 = arith.constant 0 : index
    %c0_0 = arith.constant 0 : index
    %0 = vector.load %arg2[%c0, %c0_0] : memref<128x32xf32, #tpu.memory_space<vmem>>, vector<128x32xf32>
    %c0_1 = arith.constant 0 : index
    %c0_2 = arith.constant 0 : index
    %1 = vector.load %arg3[%c0_1, %c0_2] : memref<64x32xf32, #tpu.memory_space<vmem>>, vector<64x32xf32>
    %cst = arith.constant dense<0.000000e+00> : vector<128x64xf32>
    %2 = tpu.matmul %0, %1, %cst {dimension_numbers = #tpu.dot_dimension_numbers<[1], [1], [0], [0], [0, 0, 1, 0], [], []>} : vector<128x32xf32>, vector<64x32xf32>, vector<128x64xf32> -> vector<128x64xf32>
    %c0_3 = arith.constant 0 : index
    %c0_4 = arith.constant 0 : index
    %3 = vector.load %arg4[%c0_3, %c0_4] : memref<1x64xf32, #tpu.memory_space<vmem>>, vector<1x64xf32>
    %4 = vector.broadcast %3 : vector<1x64xf32> to vector<128x64xf32>
    %5 = arith.addf %2, %4 : vector<128x64xf32>
    %cst_5 = arith.constant 3.000000e+01 : f32
    %6 = vector.broadcast %cst_5 : f32 to vector<128x64xf32>
    %7 = arith.mulf %6, %5 : vector<128x64xf32>
    %8 = math.sin %7 : vector<128x64xf32>
    %c0_6 = arith.constant 0 : index
    %c0_7 = arith.constant 0 : index
    %9 = vector.load %arg5[%c0_6, %c0_7] : memref<128x64xf32, #tpu.memory_space<vmem>>, vector<128x64xf32>
    tpu.vector_store %arg5[%c0_6, %c0_7], %8 {strides = array<i32>} : memref<128x64xf32, #tpu.memory_space<vmem>>, vector<128x64xf32>,
    return
  }
  func.func @transform_0(%arg0: i32, %arg1: i32) -> (i32, i32) {
    %c0_i32 = arith.constant 0 : i32
    %c0_i32_0 = arith.constant 0 : i32
    return %arg0, %c0_i32 : i32, i32
  }
  func.func @transform_1(%arg0: i32, %arg1: i32) -> (i32, i32) {
    %c0_i32 = arith.constant 0 : i32
    %c0_i32_0 = arith.constant 0 : i32
    return %arg1, %c0_i32 : i32, i32
  }
  func.func @transform_2(%arg0: i32, %arg1: i32) -> (i32, i32) {
    %c0_i32 = arith.constant 0 : i32
    %c0_i32_0 = arith.constant 0 : i32
    return %c0_i32, %arg1 : i32, i32
  }
  func.func @transform_3(%arg0: i32, %arg1: i32) -> (i32, i32) {
    %c0_i32 = arith.constant 0 : i32
    return %arg0, %arg1 : i32, i32
  }
}

</mosaic_0001>

<bundles_post_ra>
// kernel: tpu_custom_call.1
= control target key start
LH: loop header
LB: loop body
LE: loop exit
PB: predicated region body
PF: predicated region fallthrough
CT: control target
= control target key end

     0   :  { %vm42_vm0 = vcmask 261120   ;;  %v2804_v55 = vmov 683565275   ;;  %v2805_v57 = vmov 2475754826   ;;  %s4702_s1 = inlined_call_operand.vmem [shape: f32[64,32], index: 1, kind: input, shape index: {}]   ;;  %s4703_s2 = inlined_call_operand.vmem [shape: f32[1,64], index: 2, kind: input, shape index: {}]   ;;  %s4704_s0 = inlined_call_operand.vmem [shape: f32[128,32], index: 0, kind: input, shape index: {}]   ;;  %s4705_s3 = inlined_call_operand.vmem [shape: f32[128,64], index: 3, kind: output, shape index: {}]  }
   0x1   :  { %v37_v0 = vld [vmem:[%s4702_s1 + $0x38] sm:$0xff]  ;;  %v36_v1 = vld [vmem:[%s4702_s1 + $0x30] sm:$0xff]  ;;  %v35_v2 = vld [vmem:[%s4702_s1 + $0x28] sm:$0xff]  ;;  %v2806_v59 = vmov 2131351028  }
   0x2   :  { %2697 = vmatpush.xpose.msk.msra.mxu0 %vm42_vm0, %v37_v0  ;;  %2769 = vmatpush.xpose.msk.msra.mxu1 %vm42_vm0, %v37_v0  ;;  %v34_v3 = vld [vmem:[%s4702_s1 + $0x20] sm:$0xff]  ;;  %v33_v4 = vld [vmem:[%s4702_s1 + $0x18] sm:$0xff]  ;;  %v32_v5 = vld [vmem:[%s4702_s1 + $0x10] sm:$0xff]  ;;  %v2807_v61 = vmov 2102212464  }
   0x3   :  { %2770 = vmatpush.xpose.msk.msra.mxu2 %vm42_vm0, %v37_v0  ;;  %2771 = vmatpush.xpose.msk.msra.mxu3 %vm42_vm0, %v37_v0  ;;  %v31_v6 = vld [vmem:[%s4702_s1 + $0x8] sm:$0xff]  ;;  %v30_v7 = vld [vmem:[%s4702_s1] sm:$0xff]  ;;  %v16_v16 = vld [vmem:[%s4704_s0 + $0x10] sm:$0xff]  ;;  %v2808_v63 = vmov 920167782  }
   0x4   :  { %v14_v8 = vld [vmem:[%s4704_s0] sm:$0xff]  ;;  %v15_v12 = vld [vmem:[%s4704_s0 + $0x8] sm:$0xff]  ;;  %v20_v17 = vld [vmem:[%s4704_s0 + $0x30] sm:$0xff] }
   0x5   :  { %v18_v9 = vld [vmem:[%s4704_s0 + $0x20] sm:$0xff]  ;;  %v19_v13 = vld [vmem:[%s4704_s0 + $0x28] sm:$0xff]  ;;  %v24_v18 = vld [vmem:[%s4704_s0 + $0x50] sm:$0xff] }
   0x6   :  { %2698 = vmatpush.xpose.msk.msra.mxu0 %vm42_vm0, %v36_v1  ;;  %2772 = vmatpush.xpose.msk.msra.mxu1 %vm42_vm0, %v36_v1  ;;  %v22_v10 = vld [vmem:[%s4704_s0 + $0x40] sm:$0xff]  ;;  %v23_v14 = vld [vmem:[%s4704_s0 + $0x48] sm:$0xff]  ;;  %v28_v19 = vld [vmem:[%s4704_s0 + $0x70] sm:$0xff] }
   0x7   :  { %2773 = vmatpush.xpose.msk.msra.mxu2 %vm42_vm0, %v36_v1  ;;  %2774 = vmatpush.xpose.msk.msra.mxu3 %vm42_vm0, %v36_v1  ;;  %v26_v11 = vld [vmem:[%s4704_s0 + $0x60] sm:$0xff]  ;;  %v27_v15 = vld [vmem:[%s4704_s0 + $0x68] sm:$0xff]  ;;  %v17_v20 = vld [vmem:[%s4704_s0 + $0x18] sm:$0xff] }
   0x8   :  { %v21_v21 = vld [vmem:[%s4704_s0 + $0x38] sm:$0xff]  ;;  %v2954_v24 = vld [vmem:[%s4703_s2] ss:$0 sm:$0xff] }
   0x9   :  { %v25_v22 = vld [vmem:[%s4704_s0 + $0x58] sm:$0xff] }
   0xa   :  { %2699 = vmatpush.xpose.msk.msra.mxu0 %vm42_vm0, %v35_v2  ;;  %2775 = vmatpush.xpose.msk.msra.mxu1 %vm42_vm0, %v35_v2  ;;  %v29_v23 = vld [vmem:[%s4704_s0 + $0x78] sm:$0xff] }
   0xb   :  { %2776 = vmatpush.xpose.msk.msra.mxu2 %vm42_vm0, %v35_v2  ;;  %2777 = vmatpush.xpose.msk.msra.mxu3 %vm42_vm0, %v35_v2 }
   0xe   :  { %2700 = vmatpush.xpose.msk.msra.mxu0 %vm42_vm0, %v34_v3  ;;  %2778 = vmatpush.xpose.msk.msra.mxu1 %vm42_vm0, %v34_v3 }
   0xf   :  { %2779 = vmatpush.xpose.msk.msra.mxu2 %vm42_vm0, %v34_v3  ;;  %2780 = vmatpush.xpose.msk.msra.mxu3 %vm42_vm0, %v34_v3 }
  0x12   :  { %2701 = vmatpush.xpose.msk.msra.mxu0 %vm42_vm0, %v33_v4  ;;  %2781 = vmatpush.xpose.msk.msra.mxu1 %vm42_vm0, %v33_v4 }
  0x13   :  { %2782 = vmatpush.xpose.msk.msra.mxu2 %vm42_vm0, %v33_v4  ;;  %2783 = vmatpush.xpose.msk.msra.mxu3 %vm42_vm0, %v33_v4 }
  0x16   :  { %2702 = vmatpush.xpose.msk.msra.mxu0 %vm42_vm0, %v32_v5  ;;  %2784 = vmatpush.xpose.msk.msra.mxu1 %vm42_vm0, %v32_v5 }
  0x17   :  { %2785 = vmatpush.xpose.msk.msra.mxu2 %vm42_vm0, %v32_v5  ;;  %2786 = vmatpush.xpose.msk.msra.mxu3 %vm42_vm0, %v32_v5 }
  0x1a   :  { %2703 = vmatpush.xpose.msk.msra.mxu0 %vm42_vm0, %v31_v6  ;;  %2787 = vmatpush.xpose.msk.msra.mxu1 %vm42_vm0, %v31_v6 }
  0x1b   :  { %2788 = vmatpush.xpose.msk.msra.mxu2 %vm42_vm0, %v31_v6  ;;  %2789 = vmatpush.xpose.msk.msra.mxu3 %vm42_vm0, %v31_v6 }
  0x1e   :  { %2704 = vmatpush.xpose.msk.msra.mxu0 %vm42_vm0, %v30_v7  ;;  %2790 = vmatpush.xpose.msk.msra.mxu1 %vm42_vm0, %v30_v7 }
  0x1f   :  { %2791 = vmatpush.xpose.msk.msra.mxu2 %vm42_vm0, %v30_v7  ;;  %2792 = vmatpush.xpose.msk.msra.mxu3 %vm42_vm0, %v30_v7 }
  0x21   :  { %2705 = vmatmul.msk.f32.vlgmr.msra.gmra.mxu0 %vm42_vm0, %v14_v8  ;;  %2709 = vmatmul.msk.f32.vlgmr.msra.gmra.mxu1 %vm42_vm0, %v18_v9  ;;  %v2809_v8 = vmov 1326507024  }
  0x22   :  { %2713 = vmatmul.msk.f32.vlgmr.msra.gmra.mxu2 %vm42_vm0, %v22_v10  ;;  %2717 = vmatmul.msk.f32.vlgmr.msra.gmra.mxu3 %vm42_vm0, %v26_v11 }
  0x29   :  { %2706 = vmatmul.msk.f32.gmra.mxu0 %vm42_vm0, %v15_v12  ;;  %2710 = vmatmul.msk.f32.gmra.mxu1 %vm42_vm0, %v19_v13 }
  0x2a   :  { %2714 = vmatmul.msk.f32.gmra.mxu2 %vm42_vm0, %v23_v14  ;;  %2718 = vmatmul.msk.f32.gmra.mxu3 %vm42_vm0, %v27_v15 }
  0x31   :  { %2707 = vmatmul.msk.f32.gmra.mxu0 %vm42_vm0, %v16_v16  ;;  %2711 = vmatmul.msk.f32.gmra.mxu1 %vm42_vm0, %v20_v17 }
  0x32   :  { %2715 = vmatmul.msk.f32.gmra.mxu2 %vm42_vm0, %v24_v18  ;;  %2719 = vmatmul.msk.f32.gmra.mxu3 %vm42_vm0, %v28_v19 }
  0x39   :  { %2708 = vmatmul.msk.f32.gmra.mxu0 %vm42_vm0, %v17_v20  ;;  %2712 = vmatmul.msk.f32.gmra.mxu1 %vm42_vm0, %v21_v21 }
  0x3a   :  { %2716 = vmatmul.msk.f32.gmra.mxu2 %vm42_vm0, %v25_v22  ;;  %2720 = vmatmul.msk.f32.gmra.mxu3 %vm42_vm0, %v29_v23 }
  0x9e   :  { %v132_v25 = vpop.f32.mrf.mxu0  ;;  %v144_v26 = vpop.f32.mrf.mxu1 }
  0x9f   :  { %v133_v27 = vadd.f32 %v2954_v24, %v132_v25  ;;  %v145_v28 = vadd.f32 %v2954_v24, %v144_v26 }
  0xa1   :  { %v2958_v29 = vmul.f32 30.0, %v133_v27  ;;  %v2960_v30 = vmul.f32 30.0, %v145_v28 }
  0xa3   :  { %v196_v31 = vand.u32 2147483647, %v2958_v29  ;;  %v199_v32 = vand.u32 2139095040, %v2958_v29  ;;  %v816_v33 = vand.u32 2147483647, %v2960_v30  ;;  %v819_v34 = vand.u32 2139095040, %v2960_v30 }
  0xa5   :  { %v200_v35 = vshrl.u32 %v199_v32, 23  ;;  %v203_v36 = vand.u32 8388607, %v196_v31  ;;  %v820_v37 = vshrl.u32 %v819_v34, 23  ;;  %v156_v39 = vpop.f32.mrf.mxu2  ;;  %v823_v42 = vand.u32 8388607, %v816_v33 }
  0xa6   :  { %v157_v45 = vadd.f32 %v2954_v24, %v156_v39 }
  0xa7   :  { %v2721_v38 = vadd.s32 4294967169, %v200_v35  ;;  %v204_v40 = vor.u32 8388608, %v203_v36  ;;  %v2733_v41 = vadd.s32 4294967169, %v820_v37  ;;  %v824_v48 = vor.u32 8388608, %v823_v42 }
  0xa8   :  { %v2977_v53 = vmul.f32 30.0, %v157_v45 }
  0xa9   :  { %v206_v43 = vadd.s32 1, %v2721_v38  ;;  %v826_v44 = vadd.s32 1, %v2733_v41  ;;  %v2971_v47 = vshll.u32 %v204_v40, 8  ;;  %v2985_v2 = vshll.u32 %v824_v48, 8 }
  0xaa   :  { %v1439_v16 = vand.u32 2139095040, %v2977_v53 }
  0xab   :  { %vm207_vm1 = vcmp.gt.s32.totalorder %v206_v43, 0  ;;  %vm827_vm2 = vcmp.gt.s32.totalorder %v826_v44, 0  ;;  %v245_v1 = vand.u32 65535, %v2971_v47  ;;  %v246_v6 = vshrl.u32 %v2971_v47, 16 }
  0xac   :  { %v208_v46 = vsel %vm207_vm1, %v206_v43, 0  ;;  %v828_v50 = vsel %vm827_vm2, %v826_v44, 0  ;;  %v3029_v36 = vand.u32 65535, %v2985_v2 }
  0xad   :  { %v210_v49 = vand.u32 31, %v208_v46  ;;  %v2973_v51 = vshrl.u32 %v208_v46, 5  ;;  %v2975_v52 = vand.u32 31, %v828_v50  ;;  %v3035_v43 = vshrl.u32 %v828_v50, 5 }
  0xaf   :  { %v211_v54 = vsub.s32 32, %v210_v49  ;;  %v213_v56 = vshll.u32 %v2804_v55, %v210_v49  ;;  %v216_v58 = vshll.u32 %v2805_v57, %v210_v49  ;;  %v219_v60 = vshll.u32 %v2806_v59, %v210_v49 }
  0xb0   :  { %v222_v62 = vshll.u32 %v2807_v61, %v210_v49  ;;  %v225_v0 = vshll.u32 %v2808_v63, %v210_v49  ;;  %vm228_vm3 = vcmp.lt.s32.totalorder %v2973_v51, 1  ;;  %vm231_vm4 = vcmp.lt.s32.totalorder %v2973_v51, 4 }
  0xb1   :  { %v214_v3 = vshrl.u32 %v2805_v57, %v211_v54  ;;  %v217_v4 = vshrl.u32 %v2806_v59, %v211_v54  ;;  %v220_v5 = vshrl.u32 %v2807_v61, %v211_v54  ;;  %v223_v7 = vshrl.u32 %v2808_v63, %v211_v54 }
  0xb2   :  { %v226_v9 = vshrl.u32 %v2809_v8, %v211_v54  ;;  %v2996_v13 = vsub.s32 32, %v2975_v52  ;;  %vm230_vm5 = vcmp.lt.s32.totalorder %v2973_v51, 3  ;;  %v212_v17 = vshrl.u32 %v2804_v55, %v211_v54 }
  0xb3   :  { %v215_v10 = vor.u32 %v214_v3, %v213_v56  ;;  %v218_v11 = vor.u32 %v217_v4, %v216_v58  ;;  %v221_v12 = vor.u32 %v220_v5, %v219_v60  ;;  %v224_v14 = vor.u32 %v223_v7, %v222_v62 }
  0xb4   :  { %v227_v15 = vor.u32 %v226_v9, %v225_v0  ;;  %vm229_vm6 = vcmp.lt.s32.totalorder %v2973_v51, 2  ;;  %v833_v22 = vshll.u32 %v2804_v55, %v2975_v52  ;;  %v836_v23 = vshll.u32 %v2805_v57, %v2975_v52 }
  0xb5   :  { %v236_v18 = vsel %vm228_vm3, %v215_v10, %v218_v11  ;;  %v240_v19 = vsel %vm228_vm3, %v218_v11, %v221_v12  ;;  %v237_v20 = vsel %vm231_vm4, %v224_v14, 920167782  ;;  %v233_v25 = vsel %vm231_vm4, %v221_v12, 2102212464 }
  0xb6   :  { %v241_v21 = vsel %vm231_vm4, %v227_v15, 1326507024  ;;  %v238_v26 = vsel %vm230_vm5, %v221_v12, %v237_v20  ;;  %v834_v28 = vshrl.u32 %v2805_v57, %v2996_v13  ;;  %v837_v35 = vshrl.u32 %v2806_v59, %v2996_v13 }
  0xb7   :  { %v242_v27 = vsel %vm230_vm5, %v224_v14, %v241_v21  ;;  %v239_v32 = vsel %vm229_vm6, %v236_v18, %v238_v26  ;;  %v232_v41 = vsel %vm228_vm3, %v212_v17, %v215_v10  ;;  %v234_v42 = vsel %vm230_vm5, %v218_v11, %v233_v25 }
  0xb8   :  { %v243_v34 = vsel %vm229_vm6, %v240_v19, %v242_v27  ;;  %v269_v39 = vand.u32 65535, %v239_v32  ;;  %v270_v40 = vshrl.u32 %v239_v32, 16  ;;  %v3037_v44 = vor.u32 %v834_v28, %v833_v22 }
  0xb9   :  { %v247_v37 = vand.u32 65535, %v243_v34  ;;  %v248_v38 = vshrl.u32 %v243_v34, 16  ;;  %v3039_v48 = vor.u32 %v837_v35, %v836_v23  ;;  %v839_v49 = vshll.u32 %v2806_v59, %v2975_v52 }
  0xba   :  { %v272_v56 = vmul.u32 %v270_v40, %v245_v1  ;;  %v273_v58 = vmul.u32 %v269_v39, %v246_v6  ;;  %v840_v60 = vshrl.u32 %v2807_v61, %v2996_v13  ;;  %v271_v3 = vmul.u32 %v269_v39, %v245_v1 }
  0xbb   :  { %v250_v45 = vmul.u32 %v248_v38, %v245_v1  ;;  %v251_v46 = vmul.u32 %v247_v37, %v246_v6  ;;  %v249_v54 = vmul.u32 %v247_v37, %v245_v1  ;;  %v252_v62 = vmul.u32 %v248_v38, %v246_v6 }
  0xbc   :  { %v274_v50 = vmul.u32 %v270_v40, %v246_v6  ;;  %v275_v9 = vshll.u32 %v272_v56, 16  ;;  %v277_v11 = vshll.u32 %v273_v58, 16  ;;  %v842_v12 = vshll.u32 %v2807_v61, %v2975_v52 }
  0xbd   :  { %v253_v0 = vshll.u32 %v250_v45, 16  ;;  %v254_v4 = vshrl.u32 %v250_v45, 16  ;;  %v255_v5 = vshll.u32 %v251_v46, 16  ;;  %v256_v7 = vshrl.u32 %v251_v46, 16 }
  0xbe   :  { %v2810_v14 = vmov 0   ;;  %vm279_vm8 = vc.u32 %v271_v3, %v275_v9  ;;  %v281_v17 = vadd.s32 %v275_v9, %v271_v3  ;;  %v843_v18 = vshrl.u32 %v2808_v63, %v2996_v13 }
  0xbf   :  { %vm257_vm7 = vc.u32 %v249_v54, %v253_v0  ;;  %v259_v10 = vadd.s32 %v253_v0, %v249_v54  ;;  %v280_v6 = vsel %vm279_vm8, 1, %v2810_v14  ;;  %v845_v19 = vshll.u32 %v2808_v63, %v2975_v52 }
  0xc0   :  { %v258_v15 = vsel %vm257_vm7, 1, %v2810_v14  ;;  %v282_v21 = vadd.s32 %v280_v6, %v274_v50  ;;  %vm283_vm10 = vc.u32 %v281_v17, %v277_v11  ;;  %v841_v22 = vor.u32 %v840_v60, %v839_v49 }
  0xc1   :  { %v260_v1 = vadd.s32 %v258_v15, %v252_v62  ;;  %vm261_vm9 = vc.u32 %v259_v10, %v255_v5  ;;  %v284_v25 = vsel %vm283_vm10, 1, %v2810_v14  ;;  %v844_v26 = vor.u32 %v843_v18, %v842_v12 }
  0xc2   :  { %v262_v20 = vsel %vm261_vm9, 1, %v2810_v14  ;;  %v846_v27 = vshrl.u32 %v2809_v8, %v2996_v13  ;;  %v276_v28 = vshrl.u32 %v272_v56, 16  ;;  %v286_v32 = vadd.s32 %v284_v25, %v282_v21 }
  0xc3   :  { %v264_v23 = vadd.s32 %v262_v20, %v260_v1  ;;  %vm848_vm11 = vcmp.lt.s32.totalorder %v3035_v43, 1  ;;  %vm850_vm12 = vcmp.lt.s32.totalorder %v3035_v43, 3  ;;  %v278_v52 = vshrl.u32 %v273_v58, 16 }
  0xc4   :  { %v847_v35 = vor.u32 %v846_v27, %v845_v19  ;;  %vm851_vm13 = vcmp.lt.s32.totalorder %v3035_v43, 4  ;;  %v3060_v37 = vadd.s32 %v281_v17, %v277_v11  ;;  %v287_v38 = vadd.s32 %v286_v32, %v276_v28 }
  0xc5   :  { %v265_v34 = vadd.s32 %v264_v23, %v254_v4  ;;  %v856_v39 = vsel %vm848_vm11, %v3037_v44, %v3039_v48  ;;  %v857_v40 = vsel %vm851_vm13, %v844_v26, 920167782  ;;  %vm849_vm14 = vcmp.lt.s32.totalorder %v3035_v43, 2 }
  0xc6   :  { %v858_v46 = vsel %vm850_vm12, %v841_v22, %v857_v40  ;;  %v860_v49 = vsel %vm848_vm11, %v3039_v48, %v841_v22  ;;  %v235_v54 = vsel %vm229_vm6, %v232_v41, %v234_v42  ;;  %v288_v56 = vadd.s32 %v287_v38, %v278_v52 }
  0xc7   :  { %v3068_v45 = vadd.s32 %v265_v34, %v256_v7  ;;  %v859_v58 = vsel %vm849_vm14, %v856_v39, %v858_v46  ;;  %v861_v60 = vsel %vm851_vm13, %v847_v35, 1326507024  ;;  %v866_v0 = vshrl.u32 %v2985_v2, 16 }
  0xc8   :  { %v862_v62 = vsel %vm850_vm12, %v844_v26, %v861_v60  ;;  %v889_v3 = vand.u32 65535, %v859_v58  ;;  %v292_v50 = vadd.s32 1, %v288_v56  ;;  %v890_v41 = vshrl.u32 %v859_v58, 16 }
  0xc9   :  { %vm291_vm15 = vc.u32 %v3068_v45, %v3060_v37  ;;  %v863_v51 = vsel %vm849_vm14, %v860_v49, %v862_v62  ;;  %v1440_v42 = vshrl.u32 %v1439_v16, 23  ;;  %v289_v4 = vmul.u32 %v2971_v47, %v235_v54 }
  0xca   :  { %v867_v5 = vand.u32 65535, %v863_v51  ;;  %v868_v7 = vshrl.u32 %v863_v51, 16  ;;  %v1436_v9 = vand.u32 2147483647, %v2977_v53  ;;  %v293_v10 = vsel %vm291_vm15, %v292_v50, %v288_v56 }
  0xcb   :  { %v832_v11 = vshrl.u32 %v2804_v55, %v2996_v13  ;;  %v892_v12 = vmul.u32 %v890_v41, %v3029_v36  ;;  %v893_v15 = vmul.u32 %v889_v3, %v866_v0  ;;  %v294_v17 = vadd.s32 %v293_v10, %v289_v4 }
  0xcc   :  { %v853_v18 = vsel %vm851_vm13, %v841_v22, 2102212464  ;;  %v870_v1 = vmul.u32 %v868_v7, %v3029_v36  ;;  %v871_v16 = vmul.u32 %v867_v5, %v866_v0  ;;  %v891_v47 = vmul.u32 %v889_v3, %v3029_v36 }
  0xcd   :  { %v894_v6 = vmul.u32 %v890_v41, %v866_v0  ;;  %v895_v19 = vshll.u32 %v892_v12, 16  ;;  %v2745_v20 = vadd.s32 4294967169, %v1440_v42  ;;  %v295_v21 = vadd.s32 536870912, %v294_v17 }
  0xce   :  { %v869_v23 = vmul.u32 %v867_v5, %v3029_v36  ;;  %v872_v25 = vmul.u32 %v868_v7, %v866_v0  ;;  %v873_v13 = vshll.u32 %v870_v1, 16  ;;  %v875_v26 = vshll.u32 %v871_v16, 16 }
  0xcf   :  { %v897_v27 = vshll.u32 %v893_v15, 16  ;;  %vm899_vm0 = vc.u32 %v891_v47, %v895_v19  ;;  %v901_v28 = vadd.s32 %v895_v19, %v891_v47  ;;  %v296_v32 = vshrl.u32 %v295_v21, 30 }
  0xd0   :  { %vm877_vm1 = vc.u32 %v869_v23, %v873_v13  ;;  %v879_v22 = vadd.s32 %v873_v13, %v869_v23  ;;  %v900_v34 = vsel %vm899_vm0, 1, %v2810_v14  ;;  %v1443_v38 = vand.u32 8388607, %v1436_v9 }
  0xd1   :  { %v878_v52 = vsel %vm877_vm1, 1, %v2810_v14  ;;  %v902_v35 = vadd.s32 %v900_v34, %v894_v6  ;;  %vm903_vm2 = vc.u32 %v901_v28, %v897_v27  ;;  %v297_v39 = vshll.u32 %v296_v32, 30 }
  0xd2   :  { %v852_v36 = vsel %vm848_vm11, %v832_v11, %v3037_v44  ;;  %v880_v40 = vadd.s32 %v878_v52, %v872_v25  ;;  %vm881_vm3 = vc.u32 %v879_v22, %v875_v26  ;;  %v854_v46 = vsel %vm850_vm12, %v3039_v48, %v853_v18 }
  0xd3   :  { %v882_v49 = vsel %vm881_vm3, 1, %v2810_v14  ;;  %v904_v54 = vsel %vm903_vm2, 1, %v2810_v14  ;;  %v1446_v56 = vadd.s32 1, %v2745_v20  ;;  %v298_v58 = vsub.s32 %v294_v17, %v297_v39 }
  0xd4   :  { %v874_v60 = vshrl.u32 %v870_v1, 16  ;;  %v884_v62 = vadd.s32 %v882_v49, %v880_v40  ;;  %v906_v0 = vadd.s32 %v904_v54, %v902_v35  ;;  %vm198_vm4 = vcmp.lt.s32.totalorder %v2958_v29, 0 }
  0xd5   :  { %v320_v3 = vsub.s32 4, %v296_v32  ;;  %v896_v50 = vshrl.u32 %v892_v12, 16  ;;  %vm1447_vm5 = vcmp.gt.s32.totalorder %v1446_v56, 0  ;;  %vm299_vm6 = vcmp.lt.s32.totalorder %v298_v58, 0 }
  0xd6   :  { %v300_v44 = vsub.s32 0, %v298_v58  ;;  %v876_v51 = vshrl.u32 %v871_v16, 16  ;;  %v885_v41 = vadd.s32 %v884_v62, %v874_v60  ;;  %v855_v48 = vsel %vm849_vm14, %v852_v36, %v854_v46 }
  0xd7   :  { %v898_v42 = vshrl.u32 %v893_v15, 16  ;;  %v907_v4 = vadd.s32 %v906_v0, %v896_v50  ;;  %v1448_v5 = vsel %vm1447_vm5, %v1446_v56, 0  ;;  %v3118_v11 = vadd.s32 %v901_v28, %v897_v27 }
  0xd8   :  { %v301_v7 = vsel %vm299_vm6, %v300_v44, %v298_v58  ;;  %v3116_v10 = vadd.s32 %v885_v41, %v876_v51  ;;  %v1444_v17 = vor.u32 8388608, %v1443_v38  ;;  %v321_v12 = vsel %vm198_vm4, %v320_v3, %v296_v32 }
  0xd9   :  { %v302_v18 = vclz %v301_v7  ;;  %v908_v1 = vadd.s32 %v907_v4, %v898_v42  ;;  %v1450_v47 = vand.u32 31, %v1448_v5  ;;  %vm3124_vm7 = vcmp.le.f32.partialorder %v196_v31, 0.7853982 }
  0xda   :  { %vm911_vm8 = vc.u32 %v3116_v10, %v3118_v11  ;;  %v290_v19 = vadd.s32 %v3060_v37, %v3068_v45  ;;  %v323_v20 = vsel %vm3124_vm7, 0, %v321_v12  ;;  %v909_v21 = vmul.u32 %v2985_v2, %v855_v48  ;;  %v168_v12 = vpop.f32.mrf.mxu3 }
  0xdb   :  { %v2722_v15 = vadd.s32 4294967294, %v302_v18  ;;  %v912_v16 = vadd.s32 1, %v908_v1  ;;  %v3130_v6 = vsub.s32 32, %v1450_v47  ;;  %v3137_v23 = vshrl.u32 %v1448_v5, 5 }
  0xdc   :  { %v3139_v25 = vshll.u32 %v1444_v17, 8  ;;  %v1453_v32 = vshll.u32 %v2804_v55, %v1450_v47  ;;  %v1456_v2 = vshll.u32 %v2805_v57, %v1450_v47  ;;  %v1462_v52 = vshll.u32 %v2807_v61, %v1450_v47 }
  0xdd   :  { %vm2723_vm9 = vcmp.lt.s32.totalorder %v2722_v15, 0  ;;  %v913_v31 = vsel %vm911_vm8, %v912_v16, %v908_v1  ;;  %v1454_v27 = vshrl.u32 %v2805_v57, %v3130_v6  ;;  %v1457_v28 = vshrl.u32 %v2806_v59, %v3130_v6 }
  0xde   :  { %v305_v13 = vsel %vm2723_vm9, 0, %v2722_v15  ;;  %v914_v26 = vadd.s32 %v913_v31, %v909_v21  ;;  %v1460_v34 = vshrl.u32 %v2807_v61, %v3130_v6  ;;  %v1463_v35 = vshrl.u32 %v2808_v63, %v3130_v6 }
  0xdf   :  { %v306_v37 = vsub.s32 32, %v305_v13  ;;  %v310_v45 = vsub.s32 4294967266, %v305_v13  ;;  %v307_v38 = vshll.u32 %v298_v58, %v305_v13  ;;  %v1466_v40 = vshrl.u32 %v2809_v8, %v3130_v6 }
  0xe0   :  { %v915_v22 = vadd.s32 536870912, %v914_v26  ;;  %v1455_v49 = vor.u32 %v1454_v27, %v1453_v32  ;;  %v3154_v54 = vor.u32 %v1457_v28, %v1456_v2  ;;  %v1459_v56 = vshll.u32 %v2806_v59, %v1450_v47 }
  0xe1   :  { %v308_v39 = vshrl.u32 %v290_v19, %v306_v37  ;;  %v311_v36 = vadd.s32 127, %v310_v45  ;;  %v1464_v0 = vor.u32 %v1463_v35, %v1462_v52  ;;  %v1465_v3 = vshll.u32 %v2808_v63, %v1450_v47 }
  0xe2   :  { %v916_v46 = vshrl.u32 %v915_v22, 30  ;;  %v340_v50 = vadd.s32 3, %v323_v20  ;;  %v1461_v51 = vor.u32 %v1460_v34, %v1459_v56  ;;  %vm1468_vm10 = vcmp.lt.s32.totalorder %v3137_v23, 1 }
  0xe3   :  { %v309_v60 = vor.u32 %v308_v39, %v307_v38  ;;  %v312_v62 = vshll.u32 %v311_v36, 23  ;;  %v1467_v41 = vor.u32 %v1466_v40, %v1465_v3  ;;  %v1485_v48 = vand.u32 65535, %v3139_v25 }
  0xe4   :  { %v917_v44 = vshll.u32 %v916_v46, 30  ;;  %vm818_vm11 = vcmp.lt.s32.totalorder %v2960_v30, 0  ;;  %vm1471_vm12 = vcmp.lt.s32.totalorder %v3137_v23, 4  ;;  %v1476_v4 = vsel %vm1468_vm10, %v1455_v49, %v3154_v54 }
  0xe5   :  { %v313_v58 = vor.u32 4788187, %v312_v62  ;;  %v3168_v5 = vshrl.u32 %v3139_v25, 16  ;;  %v316_v17 = vcvt.s32.f32 %v309_v60  ;;  %vm1470_vm13 = vcmp.lt.s32.totalorder %v3137_v23, 3 }
  0xe6   :  { %v3161_v42 = vsub.s32 %v914_v26, %v917_v44  ;;  %v1477_v18 = vsel %vm1471_vm12, %v1464_v0, 920167782  ;;  %vm1469_vm15 = vcmp.lt.s32.totalorder %v3137_v23, 2  ;;  %v1480_v19 = vsel %vm1468_vm10, %v3154_v54, %v1461_v51 }
  0xe7   :  { %v314_v7 = vand.u32 2147483647, %v313_v58  ;;  %v1478_v47 = vsel %vm1470_vm13, %v1461_v51, %v1477_v18  ;;  %v1481_v20 = vsel %vm1471_vm12, %v1467_v41, 1326507024  ;;  %v3185_v21 = vand.u32 3, %v340_v50 }
  0xe8   :  { %vm919_vm14 = vcmp.lt.s32.totalorder %v3161_v42, 0  ;;  %v920_v1 = vsub.s32 0, %v3161_v42  ;;  %v1479_v16 = vsel %vm1469_vm15, %v1476_v4, %v1478_v47  ;;  %v1482_v13 = vsel %vm1470_vm13, %v1464_v0, %v1481_v20 }
  0xe9   :  { %v317_v15 = vmul.f32 %v316_v17, %v314_v7  ;;  %v3191_v26 = vadd.f32 %v2954_v24, %v168_v12  ;;  %v940_v37 = vsub.s32 4, %v916_v46  ;;  %v1483_v45 = vsel %vm1469_vm15, %v1480_v19, %v1482_v13 }
  0xea   :  { %v921_v31 = vsel %vm919_vm14, %v920_v1, %v3161_v42  ;;  %v1452_v32 = vshrl.u32 %v2804_v55, %v3130_v6  ;;  %v1487_v2 = vand.u32 65535, %v1483_v45  ;;  %v1509_v22 = vand.u32 65535, %v1479_v16 }
  0xeb   :  { %v318_v27 = vxor.u32 2147483648, %v317_v15  ;;  %v922_v28 = vclz %v921_v31  ;;  %v1510_v34 = vshrl.u32 %v1479_v16, 16  ;;  %v910_v35 = vadd.s32 %v3118_v11, %v3116_v10 }
  0xec   :  { %v1488_v39 = vshrl.u32 %v1483_v45, 16  ;;  %v3208_v40 = vsel %vm1468_vm10, %v1452_v32, %v1455_v49  ;;  %v1473_v6 = vsel %vm1471_vm12, %v1461_v51, 2102212464  ;;  %v3213_v56 = vmul.u32 %v1487_v2, %v3168_v5 }
  0xed   :  { %v319_v52 = vsel %vm198_vm4, %v318_v27, %v317_v15  ;;  %v2734_v38 = vadd.s32 4294967294, %v922_v28  ;;  %v3219_v11 = vsel %vm818_vm11, %v940_v37, %v916_v46  ;;  %v1489_v62 = vmul.u32 %v1487_v2, %v1485_v48 }
  0xee   :  { %v3204_v36 = vsel %vm3124_vm7, %v2958_v29, %v319_v52  ;;  %v1490_v43 = vmul.u32 %v1488_v39, %v1485_v48  ;;  %v1511_v0 = vmul.u32 %v1509_v22, %v1485_v48  ;;  %v3221_v49 = vmul.u32 %v1510_v34, %v1485_v48 }
  0xef   :  { %v324_v10 = vmul.f32 %v3204_v36, %v3204_v36  ;;  %vm2735_vm0 = vcmp.lt.s32.totalorder %v2734_v38, 0  ;;  %v1492_v51 = vmul.u32 %v1488_v39, %v3168_v5  ;;  %v1495_v4 = vshll.u32 %v3213_v56, 16 }
  0xf0   :  { %v925_v60 = vsel %vm2735_vm0, 0, %v2734_v38  ;;  %v1493_v41 = vshll.u32 %v1490_v43, 16  ;;  %v3226_v7 = vmul.u32 %v1509_v22, %v3168_v5  ;;  %v1515_v47 = vshll.u32 %v3221_v49, 16 }
  0xf1   :  { %v325_v3 = vmul.f32 -0.001358992, %v324_v10  ;;  %v332_v50 = vmul.f32 -0.00019511016, %v324_v10  ;;  %v926_v44 = vsub.s32 32, %v925_v60  ;;  %v930_v58 = vsub.s32 4294967266, %v925_v60 }
  0xf2   :  { %v927_v18 = vshll.u32 %v3161_v42, %v925_v60  ;;  %vm1497_vm1 = vc.u32 %v1489_v62, %v1493_v41  ;;  %v1499_v48 = vadd.s32 %v1493_v41, %v1489_v62  ;;  %vm3232_vm2 = vcmp.le.f32.partialorder %v816_v33, 0.7853982 }
  0xf3   :  { %v326_v46 = vadd.f32 0.041655596, %v325_v3  ;;  %v333_v17 = vadd.f32 0.008332121, %v332_v50  ;;  %v928_v12 = vshrl.u32 %v910_v35, %v926_v44  ;;  %v931_v1 = vadd.s32 127, %v930_v58 }
  0xf4   :  { %v1494_v20 = vshrl.u32 %v1490_v43, 16  ;;  %v1498_v31 = vsel %vm1497_vm1, 1, %v2810_v14  ;;  %vm1501_vm3 = vc.u32 %v1499_v48, %v1495_v4  ;;  %vm346_vm4 = vcmp.eq.s32.totalorder %v3185_v21, 2 }
  0xf5   :  { %v327_v15 = vmul.f32 %v326_v46, %v324_v10  ;;  %v334_v16 = vmul.f32 %v333_v17, %v324_v10  ;;  %v929_v13 = vor.u32 %v928_v12, %v927_v18  ;;  %v932_v27 = vshll.u32 %v931_v1, 23 }
  0xf6   :  { %v1500_v42 = vadd.s32 %v1498_v31, %v1492_v51  ;;  %v1502_v45 = vsel %vm1501_vm3, 1, %v2810_v14  ;;  %v1514_v32 = vmul.u32 %v1510_v34, %v3168_v5  ;;  %vm343_vm5 = vcmp.eq.s32.totalorder %v3185_v21, 0 }
  0xf7   :  { %v328_v28 = vadd.f32 -0.4999988, %v327_v15  ;;  %v335_v37 = vadd.f32 -0.16666654, %v334_v16  ;;  %v933_v33 = vor.u32 4788187, %v932_v27  ;;  %vm1519_vm6 = vc.u32 %v1511_v0, %v1515_v47 }
  0xf8   :  { %v1504_v2 = vadd.s32 %v1502_v45, %v1500_v42  ;;  %v1517_v22 = vshll.u32 %v3226_v7, 16  ;;  %vm342_vm7 = vcmp.lt.s32.totalorder %v3185_v21, 2  ;;  %vm2676_vm8 = vcmask 523264  }
  0xf9   :  { %v329_v52 = vmul.f32 %v328_v28, %v324_v10  ;;  %v336_v35 = vmul.f32 %v335_v37, %v324_v10  ;;  %v1520_v38 = vsel %vm1519_vm6, 1, %v2810_v14  ;;  %v1521_v39 = vadd.s32 %v1515_v47, %v1511_v0  ;;  %v135_v47 = vpop.f32.mrf.mxu0 }
  0xfa   :  { %vm339_vm9 = vweird.f32 %v2958_v29  ;;  %v934_v43 = vand.u32 2147483647, %v933_v33  ;;  %v936_v60 = vcvt.s32.f32 %v929_v13  ;;  %v1505_v5 = vadd.s32 %v1504_v2, %v1494_v20 }
  0xfb   :  { %v1522_v34 = vadd.s32 %v1520_v38, %v1514_v32  ;;  %v330_v62 = vadd.f32 1.0, %v329_v52  ;;  %v337_v3 = vadd.f32 1.0, %v336_v35  ;;  %v1474_v50 = vsel %vm1470_vm13, %v3154_v54, %v1473_v6 }
  0xfc   :  { %vm1523_vm10 = vc.u32 %v1521_v39, %v1517_v22  ;;  %v937_v10 = vmul.f32 %v936_v60, %v934_v43  ;;  %v1496_v44 = vshrl.u32 %v3213_v56, 16  ;;  %v3251_v0 = vmul.f32 30.0, %v3191_v26 }
  0xfd   :  { %v1524_v51 = vsel %vm1523_vm10, 1, %v2810_v14  ;;  %v338_v58 = vmul.f32 %v337_v3, %v3204_v36  ;;  %v347_v41 = vxor.u32 2147483648, %v330_v62  ;;  %v1516_v4 = vshrl.u32 %v3221_v49, 16 }
  0xfe   :  { %v1526_v46 = vadd.s32 %v1524_v51, %v1522_v34  ;;  %v938_v17 = vxor.u32 2147483648, %v937_v10  ;;  %v943_v54 = vsel %vm3232_vm2, 0, %v3219_v11  ;;  %v1506_v6 = vadd.s32 %v1505_v5, %v1496_v44 }
  0xff   :  { %v2056_v18 = vand.u32 2147483647, %v3251_v0  ;;  %v344_v56 = vxor.u32 2147483648, %v338_v58  ;;  %v1475_v26 = vsel %vm1469_vm15, %v3208_v40, %v1474_v50  ;;  %v1518_v12 = vshrl.u32 %v3226_v7, 16 }
 0x100   :  { %v1527_v36 = vadd.s32 %v1526_v46, %v1516_v4  ;;  %v348_v49 = vsel %vm346_vm4, %v347_v41, %v338_v58  ;;  %v939_v1 = vsel %vm818_vm11, %v938_v17, %v937_v10  ;;  %v1525_v48 = vadd.s32 %v1521_v39, %v1517_v22 }
 0x101   :  { %v2059_v11 = vand.u32 2139095040, %v3251_v0  ;;  %v345_v15 = vsel %vm343_vm5, %v330_v62, %v344_v56  ;;  %v942_v23 = vsel %vm3232_vm2, %v2960_v30, %v939_v1  ;;  %v2063_v7 = vand.u32 8388607, %v2056_v18 }
 0x102   :  { %v1528_v40 = vadd.s32 %v1527_v36, %v1518_v12  ;;  %v349_v16 = vsel %vm342_vm7, %v345_v15, %v348_v49  ;;  %v944_v20 = vmul.f32 %v942_v23, %v942_v23  ;;  %vm1531_vm11 = vc.u32 %v1506_v6, %v1525_v48 }
 0x103   :  { %v2060_v31 = vshrl.u32 %v2059_v11, 23  ;;  %v350_v13 = vsel %vm339_vm9, nan, %v349_v16  ;;  %v960_v27 = vadd.s32 3, %v943_v54  ;;  %v136_v28 = vadd.f32 %v2954_v24, %v135_v47 }
 0x104   :  { %v1532_v42 = vadd.s32 1, %v1528_v40  ;;  %2677 = vst.msk [vmem:[%s4705_s3] sm:$0xff] %vm2676_vm8, %v350_v13  ;;  %v945_v19 = vmul.f32 -0.001358992, %v944_v20  ;;  %v952_v37 = vmul.f32 -0.00019511016, %v944_v20  ;;  %v1529_v21 = vmul.u32 %v3139_v25, %v1475_v26 }
 0x105   :  { %v2757_v45 = vadd.s32 4294967169, %v2060_v31  ;;  %v2064_v33 = vor.u32 8388608, %v2063_v7  ;;  %v961_v35 = vand.u32 3, %v960_v27  ;;  %v3285_v38 = vmul.f32 30.0, %v136_v28 }
 0x106   :  { %v1533_v32 = vsel %vm1531_vm11, %v1532_v42, %v1528_v40  ;;  %v946_v2 = vadd.f32 0.041655596, %v945_v19  ;;  %v953_v22 = vadd.f32 0.008332121, %v952_v37  ;;  %vm1438_vm13 = vcmp.lt.s32.totalorder %v2977_v53, 0 }
 0x107   :  { %v1534_v29 = vadd.s32 %v1533_v32, %v1529_v21  ;;  %v2066_v52 = vadd.s32 1, %v2757_v45  ;;  %v3287_v5 = vshll.u32 %v2064_v33, 8  ;;  %v351_v50 = vand.u32 2147483647, %v3285_v38 }
 0x108   :  { %v947_v24 = vmul.f32 %v946_v2, %v944_v20  ;;  %v954_v39 = vmul.f32 %v953_v22, %v944_v20  ;;  %v354_v10 = vand.u32 2139095040, %v3285_v38  ;;  %vm962_vm14 = vcmp.lt.s32.totalorder %v961_v35, 2 }
 0x109   :  { %v1535_v43 = vadd.s32 536870912, %v1534_v29  ;;  %vm2067_vm12 = vcmp.gt.s32.totalorder %v2066_v52, 0  ;;  %vm963_vm15 = vcmp.eq.s32.totalorder %v961_v35, 0  ;;  %vm959_vm0 = vweird.f32 %v2960_v30 }
 0x10a   :  { %v2068_v60 = vsel %vm2067_vm12, %v2066_v52, 0  ;;  %v948_v34 = vadd.f32 -0.4999988, %v947_v24  ;;  %v955_v62 = vadd.f32 -0.16666654, %v954_v39  ;;  %vm966_vm1 = vcmp.eq.s32.totalorder %v961_v35, 2 }
 0x10b   :  { %v1536_v25 = vshrl.u32 %v1535_v43, 30  ;;  %v2070_v3 = vand.u32 31, %v2068_v60  ;;  %v1530_v41 = vadd.s32 %v1525_v48, %v1506_v6  ;;  %v3294_v46 = vand.u32 65535, %v3287_v5 }
 0x10c   :  { %v949_v44 = vmul.f32 %v948_v34, %v944_v20  ;;  %v956_v51 = vmul.f32 %v955_v62, %v944_v20  ;;  %vm3298_vm2 = vcmp.le.f32.partialorder %v1436_v9, 0.7853982  ;;  %v3302_v36 = vshrl.u32 %v2068_v60, 5 }
 0x10d   :  { %v1537_v58 = vshll.u32 %v1536_v25, 30  ;;  %v2071_v4 = vsub.s32 32, %v2070_v3  ;;  %v1560_v12 = vsub.s32 4, %v1536_v25  ;;  %v355_v1 = vshrl.u32 %v354_v10, 23 }
 0x10e   :  { %v950_v17 = vadd.f32 1.0, %v949_v44  ;;  %v957_v54 = vadd.f32 1.0, %v956_v51  ;;  %v3307_v6 = vand.u32 8388607, %v351_v50  ;;  %v2073_v9 = vshll.u32 %v2804_v55, %v2070_v3 }
 0x10f   :  { %v1538_v26 = vsub.s32 %v1534_v29, %v1537_v58  ;;  %v2074_v49 = vshrl.u32 %v2805_v57, %v2071_v4  ;;  %v2076_v15 = vshll.u32 %v2805_v57, %v2070_v3  ;;  %v2077_v40 = vshrl.u32 %v2806_v59, %v2071_v4 }
 0x110   :  { %v958_v48 = vmul.f32 %v957_v54, %v942_v23  ;;  %v967_v11 = vxor.u32 2147483648, %v950_v17  ;;  %v2080_v7 = vshrl.u32 %v2807_v61, %v2071_v4  ;;  %v1561_v31 = vsel %vm1438_vm13, %v1560_v12, %v1536_v25 }
 0x111   :  { %vm1539_vm3 = vcmp.lt.s32.totalorder %v1538_v26, 0  ;;  %v1540_v47 = vsub.s32 0, %v1538_v26  ;;  %v2079_v13 = vshll.u32 %v2806_v59, %v2070_v3  ;;  %v2075_v42 = vor.u32 %v2074_v49, %v2073_v9 }
 0x112   :  { %v964_v16 = vxor.u32 2147483648, %v958_v48  ;;  %v968_v23 = vsel %vm966_vm1, %v967_v11, %v958_v48  ;;  %v2083_v28 = vshrl.u32 %v2808_v63, %v2071_v4  ;;  %v2082_v37 = vshll.u32 %v2807_v61, %v2070_v3 }
 0x113   :  { %v1541_v20 = vsel %vm1539_vm3, %v1540_v47, %v1538_v26  ;;  %v2085_v21 = vshll.u32 %v2808_v63, %v2070_v3  ;;  %v2086_v45 = vshrl.u32 %v2809_v8, %v2071_v4  ;;  %v2078_v2 = vor.u32 %v2077_v40, %v2076_v15 }
 0x114   :  { %v1542_v27 = vclz %v1541_v20  ;;  %v965_v19 = vsel %vm963_vm15, %v950_v17, %v964_v16  ;;  %v2081_v22 = vor.u32 %v2080_v7, %v2079_v13  ;;  %v2084_v52 = vor.u32 %v2083_v28, %v2082_v37 }
 0x115   :  { %v969_v32 = vsel %vm962_vm14, %v965_v19, %v968_v23  ;;  %v2087_v24 = vor.u32 %v2086_v45, %v2085_v21  ;;  %v2724_v39 = vadd.s32 4294967169, %v355_v1  ;;  %v1563_v43 = vsel %vm3298_vm2, 0, %v1561_v31 }
 0x116   :  { %v2746_v33 = vadd.s32 4294967294, %v1542_v27  ;;  %v970_v29 = vsel %vm959_vm0, nan, %v969_v32  ;;  %v2072_v35 = vshrl.u32 %v2804_v55, %v2071_v4  ;;  %vm2088_vm5 = vcmp.lt.s32.totalorder %v3302_v36, 1 }
 0x117   :  { %2681 = vst.msk [vmem:[%s4705_s3 + $0x20] sm:$0xff] %vm2676_vm8, %v970_v29  ;;  %vm2089_vm6 = vcmp.lt.s32.totalorder %v3302_v36, 2  ;;  %vm2090_vm7 = vcmp.lt.s32.totalorder %v3302_v36, 3  ;;  %vm2091_vm9 = vcmp.lt.s32.totalorder %v3302_v36, 4  ;;  %v2096_v25 = vsel %vm2088_vm5, %v2075_v42, %v2078_v2 }
 0x118   :  { %vm2747_vm4 = vcmp.lt.s32.totalorder %v2746_v33, 0  ;;  %v2093_v62 = vsel %vm2091_vm9, %v2081_v22, 2102212464  ;;  %v2097_v10 = vsel %vm2091_vm9, %v2084_v52, 920167782  ;;  %v2100_v44 = vsel %vm2088_vm5, %v2078_v2, %v2081_v22 }
 0x119   :  { %v1545_v60 = vsel %vm2747_vm4, 0, %v2746_v33  ;;  %v2101_v51 = vsel %vm2091_vm9, %v2087_v24, 1326507024  ;;  %v2098_v17 = vsel %vm2090_vm7, %v2081_v22, %v2097_v10  ;;  %v2092_v12 = vsel %vm2088_vm5, %v2072_v35, %v2075_v42 }
 0x11a   :  { %v1546_v30 = vsub.s32 32, %v1545_v60  ;;  %v1550_v34 = vsub.s32 4294967266, %v1545_v60  ;;  %v1547_v3 = vshll.u32 %v1538_v26, %v1545_v60  ;;  %v2102_v54 = vsel %vm2090_vm7, %v2084_v52, %v2101_v51 }
 0x11b   :  { %v2094_v49 = vsel %vm2090_vm7, %v2078_v2, %v2093_v62  ;;  %v2099_v1 = vsel %vm2089_vm6, %v2096_v25, %v2098_v17  ;;  %v2103_v48 = vsel %vm2089_vm6, %v2100_v44, %v2102_v54  ;;  %v2106_v15 = vshrl.u32 %v3287_v5, 16 }
 0x11c   :  { %v1548_v58 = vshrl.u32 %v1530_v41, %v1546_v30  ;;  %v1551_v4 = vadd.s32 127, %v1550_v34  ;;  %v2107_v47 = vand.u32 65535, %v2103_v48  ;;  %v2108_v9 = vshrl.u32 %v2103_v48, 16 }
 0x11d   :  { %v2129_v41 = vand.u32 65535, %v2099_v1  ;;  %v2130_v40 = vshrl.u32 %v2099_v1, 16  ;;  %v361_v7 = vadd.s32 1, %v2724_v39  ;;  %v3347_v20 = vadd.s32 3, %v1563_v43 }
 0x11e   :  { %v1549_v26 = vor.u32 %v1548_v58, %v1547_v3  ;;  %v1552_v11 = vshll.u32 %v1551_v4, 23  ;;  %v2110_v31 = vmul.u32 %v2108_v9, %v3294_v46  ;;  %v359_v13 = vor.u32 8388608, %v3307_v6 }
 0x11f   :  { %v3353_v27 = vsel %vm2089_vm6, %v2092_v12, %v2094_v49  ;;  %v2111_v42 = vmul.u32 %v2107_v47, %v2106_v15  ;;  %v2132_v28 = vmul.u32 %v2130_v40, %v3294_v46  ;;  %v2109_v37 = vmul.u32 %v2107_v47, %v3294_v46 }
 0x120   :  { %v1553_v16 = vor.u32 4788187, %v1552_v11  ;;  %v1556_v23 = vcvt.s32.f32 %v1549_v26  ;;  %v2113_v21 = vshll.u32 %v2110_v31, 16  ;;  %v2133_v45 = vmul.u32 %v2129_v41, %v2106_v15 }
 0x121   :  { %v2112_v32 = vmul.u32 %v2108_v9, %v2106_v15  ;;  %v2131_v33 = vmul.u32 %v2129_v41, %v3294_v46  ;;  %v2135_v2 = vshll.u32 %v2132_v28, 16  ;;  %vm362_vm10 = vcmp.gt.s32.totalorder %v361_v7, 0 }
 0x122   :  { %v1554_v19 = vand.u32 2147483647, %v1553_v16  ;;  %v2115_v29 = vshll.u32 %v2111_v42, 16  ;;  %vm2117_vm11 = vc.u32 %v2109_v37, %v2113_v21  ;;  %v2119_v52 = vadd.s32 %v2113_v21, %v2109_v37 }
 0x123   :  { %v2118_v36 = vsel %vm2117_vm11, 1, %v2810_v14  ;;  %v2134_v24 = vmul.u32 %v2130_v40, %v2106_v15  ;;  %v2137_v39 = vshll.u32 %v2133_v45, 16  ;;  %vm2139_vm12 = vc.u32 %v2131_v33, %v2135_v2 }
 0x124   :  { %v1557_v22 = vmul.f32 %v1556_v23, %v1554_v19  ;;  %v2120_v35 = vadd.s32 %v2118_v36, %v2112_v32  ;;  %vm2121_vm14 = vc.u32 %v2119_v52, %v2115_v29  ;;  %v2140_v60 = vsel %vm2139_vm12, 1, %v2810_v14 }
 0x125   :  { %v2122_v30 = vsel %vm2121_vm14, 1, %v2810_v14  ;;  %v2141_v34 = vadd.s32 %v2135_v2, %v2131_v33  ;;  %v2142_v46 = vadd.s32 %v2140_v60, %v2134_v24  ;;  %v363_v62 = vsel %vm362_vm10, %v361_v7, 0 }
 0x126   :  { %v1558_v43 = vxor.u32 2147483648, %v1557_v22  ;;  %v2114_v3 = vshrl.u32 %v2110_v31, 16  ;;  %v2124_v10 = vadd.s32 %v2122_v30, %v2120_v35  ;;  %v365_v44 = vand.u32 31, %v363_v62 }
 0x127   :  { %v2116_v58 = vshrl.u32 %v2111_v42, 16  ;;  %vm2143_vm15 = vc.u32 %v2141_v34, %v2137_v39  ;;  %v2149_v4 = vmul.u32 %v3287_v5, %v3353_v27  ;;  %v2136_v1 = vshrl.u32 %v2132_v28, 16 }
 0x128   :  { %v1559_v25 = vsel %vm1438_vm13, %v1558_v43, %v1557_v22  ;;  %v2125_v54 = vadd.s32 %v2124_v10, %v2114_v3  ;;  %v2144_v12 = vsel %vm2143_vm15, 1, %v2810_v14  ;;  %v3370_v49 = vsub.s32 32, %v365_v44 }
 0x129   :  { %v1562_v51 = vsel %vm3298_vm2, %v2977_v53, %v1559_v25  ;;  %v2138_v48 = vshrl.u32 %v2133_v45, 16  ;;  %v2146_v26 = vadd.s32 %v2144_v12, %v2142_v46  ;;  %v368_v11 = vshll.u32 %v2804_v55, %v365_v44 }
 0x12a   :  { %v1564_v17 = vmul.f32 %v1562_v51, %v1562_v51  ;;  %v3373_v56 = vadd.s32 %v2125_v54, %v2116_v58  ;;  %v3375_v15 = vadd.s32 %v2141_v34, %v2137_v39  ;;  %v369_v5 = vshrl.u32 %v2805_v57, %v3370_v49 }
 0x12b   :  { %v2147_v41 = vadd.s32 %v2146_v26, %v2136_v1  ;;  %v371_v40 = vshll.u32 %v2805_v57, %v365_v44  ;;  %v372_v7 = vshrl.u32 %v2806_v59, %v3370_v49  ;;  %v3382_v23 = vshrl.u32 %v363_v62, 5 }
 0x12c   :  { %v1565_v47 = vmul.f32 -0.001358992, %v1564_v17  ;;  %v1572_v9 = vmul.f32 -0.00019511016, %v1564_v17  ;;  %v374_v27 = vshll.u32 %v2806_v59, %v365_v44  ;;  %vm2151_vm13 = vc.u32 %v3373_v56, %v3375_v15 }
 0x12d   :  { %v2148_v42 = vadd.s32 %v2147_v41, %v2138_v48  ;;  %v3387_v28 = vor.u32 %v369_v5, %v368_v11  ;;  %v375_v19 = vshrl.u32 %v2807_v61, %v3370_v49  ;;  %v377_v45 = vshll.u32 %v2807_v61, %v365_v44 }
 0x12e   :  { %v1566_v16 = vadd.f32 0.041655596, %v1565_v47  ;;  %v1573_v31 = vadd.f32 0.008332121, %v1572_v9  ;;  %v378_v32 = vshrl.u32 %v2808_v63, %v3370_v49  ;;  %v3394_v2 = vor.u32 %v372_v7, %v371_v40 }
 0x12f   :  { %v2152_v33 = vadd.s32 1, %v2148_v42  ;;  %v380_v22 = vshll.u32 %v2808_v63, %v365_v44  ;;  %v381_v29 = vshrl.u32 %v2809_v8, %v3370_v49  ;;  %vm383_vm0 = vcmp.lt.s32.totalorder %v3382_v23, 1 }
 0x130   :  { %v1567_v37 = vmul.f32 %v1566_v16, %v1564_v17  ;;  %v1574_v21 = vmul.f32 %v1573_v31, %v1564_v17  ;;  %v379_v24 = vor.u32 %v378_v32, %v377_v45  ;;  %v376_v43 = vor.u32 %v375_v19, %v374_v27 }
 0x131   :  { %v2153_v39 = vsel %vm2151_vm13, %v2152_v33, %v2148_v42  ;;  %v382_v35 = vor.u32 %v381_v29, %v380_v22  ;;  %vm386_vm1 = vcmp.lt.s32.totalorder %v3382_v23, 4  ;;  %vm385_vm2 = vcmp.lt.s32.totalorder %v3382_v23, 3 }
 0x132   :  { %v1568_v52 = vadd.f32 -0.4999988, %v1567_v37  ;;  %v1575_v36 = vadd.f32 -0.16666654, %v1574_v21  ;;  %v2154_v34 = vadd.s32 %v2153_v39, %v2149_v4  ;;  %v1581_v46 = vand.u32 3, %v3347_v20 }
 0x133   :  { %v391_v62 = vsel %vm383_vm0, %v3387_v28, %v3394_v2  ;;  %v392_v25 = vsel %vm386_vm1, %v379_v24, 920167782  ;;  %v3411_v58 = vshll.u32 %v359_v13, 8  ;;  %vm384_vm3 = vcmp.lt.s32.totalorder %v3382_v23, 2 }
 0x134   :  { %v1569_v60 = vmul.f32 %v1568_v52, %v1564_v17  ;;  %v1576_v30 = vmul.f32 %v1575_v36, %v1564_v17  ;;  %v2155_v44 = vadd.s32 536870912, %v2154_v34  ;;  %v393_v20 = vsel %vm385_vm2, %v376_v43, %v392_v25 }
 0x135   :  { %v395_v4 = vsel %vm383_vm0, %v3394_v2, %v376_v43  ;;  %v396_v17 = vsel %vm386_vm1, %v382_v35, 1326507024  ;;  %v394_v6 = vsel %vm384_vm3, %v391_v62, %v393_v20  ;;  %vm1582_vm4 = vcmp.lt.s32.totalorder %v1581_v46, 2 }
 0x136   :  { %v1570_v3 = vadd.f32 1.0, %v1569_v60  ;;  %v1577_v10 = vadd.f32 1.0, %v1576_v30  ;;  %v3421_v1 = vshrl.u32 %v2155_v44, 30  ;;  %vm1583_vm5 = vcmp.eq.s32.totalorder %v1581_v46, 0 }
 0x137   :  { %v397_v13 = vsel %vm385_vm2, %v379_v24, %v396_v17  ;;  %v425_v48 = vshrl.u32 %v394_v6, 16  ;;  %vm1586_vm6 = vcmp.eq.s32.totalorder %v1581_v46, 2  ;;  %v400_v47 = vand.u32 65535, %v3411_v58 }
 0x138   :  { %v1578_v54 = vmul.f32 %v1577_v10, %v1562_v51  ;;  %v1587_v12 = vxor.u32 2147483648, %v1570_v3  ;;  %v2157_v11 = vshll.u32 %v3421_v1, 30  ;;  %v367_v51 = vshrl.u32 %v2804_v55, %v3370_v49  ;;  %v147_v10 = vpop.f32.mrf.mxu1 }
 0x139   :  { %v398_v41 = vsel %vm384_vm3, %v395_v4, %v397_v13  ;;  %v424_v5 = vand.u32 65535, %v394_v6  ;;  %v3433_v31 = vmul.u32 %v425_v48, %v400_v47  ;;  %vm1579_vm7 = vweird.f32 %v2977_v53 }
 0x13a   :  { %v1584_v26 = vxor.u32 2147483648, %v1578_v54  ;;  %v1588_v9 = vsel %vm1586_vm6, %v1587_v12, %v1578_v54  ;;  %v2158_v7 = vsub.s32 %v2154_v34, %v2157_v11  ;;  %v402_v16 = vand.u32 65535, %v398_v41  ;;  %v3458_v11 = vld [vmem:[%s4703_s2] ss:$0 sm:$0xff] }
 0x13b   :  { %v401_v42 = vshrl.u32 %v3411_v58, 16  ;;  %v403_v19 = vshrl.u32 %v398_v41, 16  ;;  %v2150_v49 = vadd.s32 %v3375_v15, %v3373_v56  ;;  %v387_v53 = vsel %vm383_vm0, %v367_v51, %v3387_v28 }
 0x13c   :  { %v1585_v40 = vsel %vm1583_vm5, %v1570_v3, %v1584_v26  ;;  %vm2159_vm9 = vcmp.lt.s32.totalorder %v2158_v7, 0  ;;  %v2160_v21 = vsub.s32 0, %v2158_v7  ;;  %v430_v29 = vshll.u32 %v3433_v31, 16 }
 0x13d   :  { %v1589_v27 = vsel %vm1582_vm4, %v1585_v40, %v1588_v9  ;;  %v405_v45 = vmul.u32 %v403_v19, %v400_v47  ;;  %v406_v32 = vmul.u32 %v402_v16, %v401_v42  ;;  %v428_v22 = vmul.u32 %v424_v5, %v401_v42 }
 0x13e   :  { %v1590_v37 = vsel %vm1579_vm7, nan, %v1589_v27  ;;  %v2161_v33 = vsel %vm2159_vm9, %v2160_v21, %v2158_v7  ;;  %v388_v36 = vsel %vm386_vm1, %v376_v43, 2102212464  ;;  %v404_v24 = vmul.u32 %v402_v16, %v400_v47  ;;  %v159_v27 = vpop.f32.mrf.mxu2 }
 0x13f   :  { %2685 = vst.msk [vmem:[%s4705_s3 + $0x40] sm:$0xff] %vm2676_vm8, %v1590_v37  ;;  %v2162_v52 = vclz %v2161_v33  ;;  %v408_v39 = vshll.u32 %v405_v45, 16  ;;  %v407_v35 = vmul.u32 %v403_v19, %v401_v42  ;;  %v426_v60 = vmul.u32 %v424_v5, %v400_v47 }
 0x140   :  { %v429_v30 = vmul.u32 %v425_v48, %v401_v42  ;;  %v431_v56 = vshrl.u32 %v3433_v31, 16  ;;  %v410_v34 = vshll.u32 %v406_v32, 16  ;;  %v432_v62 = vshll.u32 %v428_v22, 16 }
 0x141   :  { %v2758_v15 = vadd.s32 4294967294, %v2162_v52  ;;  %vm412_vm10 = vc.u32 %v404_v24, %v408_v39  ;;  %v414_v46 = vadd.s32 %v408_v39, %v404_v24  ;;  %vm434_vm11 = vc.u32 %v426_v60, %v430_v29 }
 0x142   :  { %v413_v28 = vsel %vm412_vm10, 1, %v2810_v14  ;;  %v436_v25 = vadd.s32 %v430_v29, %v426_v60  ;;  %v435_v43 = vsel %vm434_vm11, 1, %v2810_v14  ;;  %v409_v12 = vshrl.u32 %v405_v45, 16 }
 0x143   :  { %vm2759_vm12 = vcmp.lt.s32.totalorder %v2758_v15, 0  ;;  %v415_v3 = vadd.s32 %v413_v28, %v407_v35  ;;  %vm416_vm14 = vc.u32 %v414_v46, %v410_v34  ;;  %v437_v4 = vadd.s32 %v435_v43, %v429_v30 }
 0x144   :  { %v2165_v44 = vsel %vm2759_vm12, 0, %v2758_v15  ;;  %v417_v20 = vsel %vm416_vm14, 1, %v2810_v14  ;;  %vm438_vm15 = vc.u32 %v436_v25, %v432_v62  ;;  %v411_v48 = vshrl.u32 %v406_v32, 16 }
 0x145   :  { %v2166_v17 = vsub.s32 32, %v2165_v44  ;;  %v2170_v54 = vsub.s32 4294967266, %v2165_v44  ;;  %v419_v6 = vadd.s32 %v417_v20, %v415_v3  ;;  %v2167_v13 = vshll.u32 %v2158_v7, %v2165_v44 }
 0x146   :  { %v439_v26 = vsel %vm438_vm15, 1, %v2810_v14  ;;  %v148_v47 = vadd.f32 %v3458_v11, %v147_v10  ;;  %v2180_v40 = vsub.s32 4, %v3421_v1  ;;  %v389_v7 = vsel %vm385_vm2, %v3394_v2, %v388_v36 }
 0x147   :  { %v2168_v9 = vshrl.u32 %v2150_v49, %v2166_v17  ;;  %v2171_v51 = vadd.s32 127, %v2170_v54  ;;  %v420_v41 = vadd.s32 %v419_v6, %v409_v12  ;;  %v441_v5 = vadd.s32 %v439_v26, %v437_v4 }
 0x148   :  { %v433_v16 = vshrl.u32 %v428_v22, 16  ;;  %v3465_v31 = vmul.f32 30.0, %v148_v47  ;;  %vm2058_vm13 = vcmp.lt.s32.totalorder %v3251_v0, 0  ;;  %v440_v49 = vadd.s32 %v436_v25, %v432_v62 }
 0x149   :  { %v2169_v42 = vor.u32 %v2168_v9, %v2167_v13  ;;  %v2172_v19 = vshll.u32 %v2171_v51, 23  ;;  %v421_v37 = vadd.s32 %v420_v41, %v411_v48  ;;  %v442_v21 = vadd.s32 %v441_v5, %v431_v56 }
 0x14a   :  { %v971_v45 = vand.u32 2147483647, %v3465_v31  ;;  %v974_v32 = vand.u32 2139095040, %v3465_v31  ;;  %v390_v29 = vsel %vm384_vm3, %v387_v53, %v389_v7  ;;  %v160_v22 = vadd.f32 %v3458_v11, %v159_v27 }
 0x14b   :  { %v2173_v33 = vor.u32 4788187, %v2172_v19  ;;  %v443_v2 = vadd.s32 %v442_v21, %v433_v16  ;;  %v2181_v52 = vsel %vm2058_vm13, %v2180_v40, %v3421_v1  ;;  %vm446_vm0 = vc.u32 %v421_v37, %v440_v49 }
 0x14c   :  { %v975_v36 = vshrl.u32 %v974_v32, 23  ;;  %v978_v24 = vand.u32 8388607, %v971_v45  ;;  %v2176_v35 = vcvt.s32.f32 %v2169_v42  ;;  %vm3480_vm1 = vcmp.le.f32.partialorder %v2056_v18, 0.7853982 }
 0x14d   :  { %v2174_v39 = vand.u32 2147483647, %v2173_v33  ;;  %v447_v60 = vadd.s32 1, %v443_v2  ;;  %v444_v53 = vmul.u32 %v3411_v58, %v390_v29  ;;  %v2183_v1 = vsel %vm3480_vm1, 0, %v2181_v52 }
 0x14e   :  { %v2736_v30 = vadd.s32 4294967169, %v975_v36  ;;  %v3487_v34 = vmul.f32 30.0, %v160_v22  ;;  %v979_v28 = vor.u32 8388608, %v978_v24  ;;  %v2200_v3 = vadd.s32 3, %v2183_v1 }
 0x14f   :  { %v2177_v56 = vmul.f32 %v2176_v35, %v2174_v39  ;;  %v448_v15 = vsel %vm446_vm0, %v447_v60, %v443_v2  ;;  %vm353_vm3 = vcmp.lt.s32.totalorder %v3285_v38, 0  ;;  %v445_v9 = vadd.s32 %v440_v49, %v421_v37 }
 0x150   :  { %v449_v46 = vadd.s32 %v448_v15, %v444_v53  ;;  %v981_v62 = vadd.s32 1, %v2736_v30  ;;  %v1591_v58 = vand.u32 2147483647, %v3487_v34  ;;  %v3497_v17 = vshll.u32 %v979_v28, 8 }
 0x151   :  { %v2178_v25 = vxor.u32 2147483648, %v2177_v56  ;;  %v3502_v12 = vand.u32 3, %v2200_v3  ;;  %v1594_v48 = vand.u32 2139095040, %v3487_v34  ;;  %vm2199_vm9 = vweird.f32 %v3251_v0 }
 0x152   :  { %v450_v43 = vadd.s32 536870912, %v449_v46  ;;  %vm982_vm2 = vcmp.gt.s32.totalorder %v981_v62, 0  ;;  %v3507_v51 = vand.u32 8388607, %v1591_v58  ;;  %v3512_v40 = vand.u32 65535, %v3497_v17 }
 0x153   :  { %v2179_v18 = vsel %vm2058_vm13, %v2178_v25, %v2177_v56  ;;  %v983_v10 = vsel %vm982_vm2, %v981_v62, 0  ;;  %v3515_v7 = vshrl.u32 %v3497_v17, 16  ;;  %vm2206_vm5 = vcmp.eq.s32.totalorder %v3502_v12, 2 }
 0x154   :  { %v3495_v44 = vsel %vm3480_vm1, %v3251_v0, %v2179_v18  ;;  %v451_v20 = vshrl.u32 %v450_v43, 30  ;;  %v985_v4 = vand.u32 31, %v983_v10  ;;  %v3523_v29 = vshrl.u32 %v983_v10, 5 }
 0x155   :  { %v2184_v54 = vmul.f32 %v3495_v44, %v3495_v44  ;;  %v1595_v23 = vshrl.u32 %v1594_v48, 23  ;;  %vm2203_vm6 = vcmp.eq.s32.totalorder %v3502_v12, 0  ;;  %vm2202_vm7 = vcmp.lt.s32.totalorder %v3502_v12, 2 }
 0x156   :  { %v452_v6 = vshll.u32 %v451_v20, 30  ;;  %v986_v13 = vsub.s32 32, %v985_v4  ;;  %v475_v5 = vsub.s32 4, %v451_v20  ;;  %v988_v42 = vshll.u32 %v2804_v55, %v985_v4 }
 0x157   :  { %v2185_v26 = vmul.f32 -0.001358992, %v2184_v54  ;;  %v2192_v47 = vmul.f32 -0.00019511016, %v2184_v54  ;;  %v991_v19 = vshll.u32 %v2805_v57, %v985_v4  ;;  %v994_v2 = vshll.u32 %v2806_v59, %v985_v4 }
 0x158   :  { %v3509_v41 = vsub.s32 %v449_v46, %v452_v6  ;;  %v989_v21 = vshrl.u32 %v2805_v57, %v986_v13  ;;  %v992_v49 = vshrl.u32 %v2806_v59, %v986_v13  ;;  %v995_v52 = vshrl.u32 %v2807_v61, %v986_v13 }
 0x159   :  { %v2186_v16 = vadd.f32 0.041655596, %v2185_v26  ;;  %v2193_v27 = vadd.f32 0.008332121, %v2192_v47  ;;  %v997_v36 = vshll.u32 %v2807_v61, %v985_v4  ;;  %v998_v24 = vshrl.u32 %v2808_v63, %v986_v13 }
 0x15a   :  { %vm454_vm4 = vcmp.lt.s32.totalorder %v3509_v41, 0  ;;  %v455_v37 = vsub.s32 0, %v3509_v41  ;;  %v3534_v53 = vsel %vm353_vm3, %v475_v5, %v451_v20  ;;  %v987_v30 = vshrl.u32 %v2804_v55, %v986_v13 }
 0x15b   :  { %v2187_v32 = vmul.f32 %v2186_v16, %v2184_v54  ;;  %v2194_v33 = vmul.f32 %v2193_v27, %v2184_v54  ;;  %v990_v56 = vor.u32 %v989_v21, %v988_v42  ;;  %v993_v1 = vor.u32 %v992_v49, %v991_v19 }
 0x15c   :  { %v456_v22 = vsel %vm454_vm4, %v455_v37, %v3509_v41  ;;  %v1000_v62 = vshll.u32 %v2808_v63, %v985_v4  ;;  %v996_v25 = vor.u32 %v995_v52, %v994_v2  ;;  %v999_v3 = vor.u32 %v998_v24, %v997_v36 }
 0x15d   :  { %v2188_v39 = vadd.f32 -0.4999988, %v2187_v32  ;;  %v2195_v35 = vadd.f32 -0.16666654, %v2194_v33  ;;  %v457_v60 = vclz %v456_v22  ;;  %v1001_v43 = vshrl.u32 %v2809_v8, %v986_v13 }
 0x15e   :  { %vm1003_vm10 = vcmp.lt.s32.totalorder %v3523_v29, 1  ;;  %vm1006_vm12 = vcmp.lt.s32.totalorder %v3523_v29, 4  ;;  %vm3545_vm14 = vcmp.le.f32.partialorder %v351_v50, 0.7853982  ;;  %vm1004_vm15 = vcmp.lt.s32.totalorder %v3523_v29, 2 }
 0x15f   :  { %v2189_v15 = vmul.f32 %v2188_v39, %v2184_v54  ;;  %v2196_v46 = vmul.f32 %v2195_v35, %v2184_v54  ;;  %v2725_v28 = vadd.s32 4294967294, %v457_v60  ;;  %v1002_v54 = vor.u32 %v1001_v43, %v1000_v62 }
 0x160   :  { %vm1005_vm13 = vcmp.lt.s32.totalorder %v3523_v29, 3  ;;  %v1007_v26 = vsel %vm1003_vm10, %v987_v30, %v990_v56  ;;  %v1008_v50 = vsel %vm1006_vm12, %v996_v25, 2102212464  ;;  %v1011_v5 = vsel %vm1003_vm10, %v990_v56, %v993_v1 }
 0x161   :  { %v2190_v18 = vadd.f32 1.0, %v2189_v15  ;;  %v2197_v10 = vadd.f32 1.0, %v2196_v46  ;;  %vm2726_vm11 = vcmp.lt.s32.totalorder %v2725_v28, 0  ;;  %v1012_v16 = vsel %vm1006_vm12, %v999_v3, 920167782 }
 0x162   :  { %v460_v4 = vsel %vm2726_vm11, 0, %v2725_v28  ;;  %v1013_v21 = vsel %vm1005_vm13, %v996_v25, %v1012_v16  ;;  %v1015_v49 = vsel %vm1003_vm10, %v993_v1, %v996_v25  ;;  %v1016_v32 = vsel %vm1006_vm12, %v1002_v54, 1326507024 }
 0x163   :  { %v2198_v6 = vmul.f32 %v2197_v10, %v3495_v44  ;;  %v2207_v13 = vxor.u32 2147483648, %v2190_v18  ;;  %v461_v48 = vsub.s32 32, %v460_v4  ;;  %v465_v47 = vsub.s32 4294967266, %v460_v4 }
 0x164   :  { %v462_v44 = vshll.u32 %v3509_v41, %v460_v4  ;;  %v1014_v22 = vsel %vm1004_vm15, %v1011_v5, %v1013_v21  ;;  %v1009_v35 = vsel %vm1005_vm13, %v993_v1, %v1008_v50  ;;  %v1599_v46 = vor.u32 8388608, %v3507_v51 }
 0x165   :  { %v2204_v27 = vxor.u32 2147483648, %v2198_v6  ;;  %v2208_v42 = vsel %vm2206_vm5, %v2207_v13, %v2198_v6  ;;  %v463_v19 = vshrl.u32 %v445_v9, %v461_v48  ;;  %v466_v37 = vadd.s32 127, %v465_v47 }
 0x166   :  { %v1017_v9 = vsel %vm1005_vm13, %v999_v3, %v1016_v32  ;;  %v1044_v24 = vand.u32 65535, %v1014_v22  ;;  %v1045_v56 = vshrl.u32 %v1014_v22, 16  ;;  %v478_v0 = vsel %vm3545_vm14, 0, %v3534_v53 }
 0x167   :  { %v2205_v33 = vsel %vm2203_vm6, %v2190_v18, %v2204_v27  ;;  %v464_v2 = vor.u32 %v463_v19, %v462_v44  ;;  %v467_v52 = vshll.u32 %v466_v37, 23  ;;  %v1018_v36 = vsel %vm1004_vm15, %v1015_v49, %v1017_v9 }
 0x168   :  { %v2209_v41 = vsel %vm2202_vm7, %v2205_v33, %v2208_v42  ;;  %v1022_v60 = vand.u32 65535, %v1018_v36  ;;  %v1023_v30 = vshrl.u32 %v1018_v36, 16  ;;  %v1048_v15 = vmul.u32 %v1044_v24, %v3515_v7 }
 0x169   :  { %v2210_v39 = vsel %vm2199_vm9, nan, %v2209_v41  ;;  %v468_v12 = vor.u32 4788187, %v467_v52  ;;  %v2748_v62 = vadd.s32 4294967169, %v1595_v23  ;;  %v471_v3 = vcvt.s32.f32 %v464_v2 }
 0x16a   :  { %2689 = vst.msk [vmem:[%s4705_s3 + $0x60] sm:$0xff] %vm2676_vm8, %v2210_v39  ;;  %v1025_v28 = vmul.u32 %v1023_v30, %v3512_v40  ;;  %v1026_v1 = vmul.u32 %v1022_v60, %v3515_v7  ;;  %v3596_v43 = vsel %vm1004_vm15, %v1007_v26, %v1009_v35  ;;  %v1047_v18 = vmul.u32 %v1045_v56, %v3512_v40 }
 0x16b   :  { %v469_v25 = vand.u32 2147483647, %v468_v12  ;;  %v1024_v10 = vmul.u32 %v1022_v60, %v3512_v40  ;;  %v1027_v4 = vmul.u32 %v1023_v30, %v3515_v7  ;;  %v1046_v53 = vmul.u32 %v1044_v24, %v3512_v40 }
 0x16c   :  { %v1028_v54 = vshll.u32 %v1025_v28, 16  ;;  %v1049_v13 = vmul.u32 %v1045_v56, %v3515_v7  ;;  %v1050_v48 = vshll.u32 %v1047_v18, 16  ;;  %v1052_v23 = vshll.u32 %v1048_v15, 16 }
 0x16d   :  { %v472_v6 = vmul.f32 %v471_v3, %v469_v25  ;;  %v1030_v47 = vshll.u32 %v1026_v1, 16  ;;  %v1601_v29 = vadd.s32 1, %v2748_v62  ;;  %v1029_v37 = vshrl.u32 %v1025_v28, 16 }
 0x16e   :  { %vm1032_vm0 = vc.u32 %v1024_v10, %v1028_v54  ;;  %v1034_v50 = vadd.s32 %v1028_v54, %v1024_v10  ;;  %vm1054_vm1 = vc.u32 %v1046_v53, %v1050_v48  ;;  %v1056_v16 = vadd.s32 %v1050_v48, %v1046_v53 }
 0x16f   :  { %v473_v26 = vxor.u32 2147483648, %v472_v6  ;;  %v1033_v5 = vsel %vm1032_vm0, 1, %v2810_v14  ;;  %v1055_v42 = vsel %vm1054_vm1, 1, %v2810_v14  ;;  %vm1602_vm4 = vcmp.gt.s32.totalorder %v1601_v29, 0 }
 0x170   :  { %v1035_v27 = vadd.s32 %v1033_v5, %v1027_v4  ;;  %vm1036_vm2 = vc.u32 %v1034_v50, %v1030_v47  ;;  %v1057_v44 = vadd.s32 %v1055_v42, %v1049_v13  ;;  %vm1058_vm5 = vc.u32 %v1056_v16, %v1052_v23 }
 0x171   :  { %v474_v40 = vsel %vm353_vm3, %v473_v26, %v472_v6  ;;  %v1037_v7 = vsel %vm1036_vm2, 1, %v2810_v14  ;;  %v1059_v49 = vsel %vm1058_vm5, 1, %v2810_v14  ;;  %v1051_v33 = vshrl.u32 %v1047_v18, 16 }
 0x172   :  { %v477_v19 = vsel %vm3545_vm14, %v3285_v38, %v474_v40  ;;  %v1039_v21 = vadd.s32 %v1037_v7, %v1035_v27  ;;  %v1061_v2 = vadd.s32 %v1059_v49, %v1057_v44  ;;  %v1603_v22 = vsel %vm1602_vm4, %v1601_v29, 0 }
 0x173   :  { %v479_v32 = vmul.f32 %v477_v19, %v477_v19  ;;  %v495_v9 = vadd.s32 3, %v478_v0  ;;  %v1031_v41 = vshrl.u32 %v1026_v1, 16  ;;  %v1605_v36 = vand.u32 31, %v1603_v22 }
 0x174   :  { %v1040_v52 = vadd.s32 %v1039_v21, %v1029_v37  ;;  %v1053_v35 = vshrl.u32 %v1048_v15, 16  ;;  %v1062_v60 = vadd.s32 %v1061_v2, %v1051_v33  ;;  %v3614_v20 = vadd.s32 %v1056_v16, %v1052_v23 }
 0x175   :  { %v480_v24 = vmul.f32 -0.001358992, %v479_v32  ;;  %v487_v39 = vmul.f32 -0.00019511016, %v479_v32  ;;  %v1064_v12 = vmul.u32 %v3497_v17, %v3596_v43  ;;  %v3618_v56 = vsub.s32 32, %v1605_v36 }
 0x176   :  { %v3612_v30 = vadd.s32 %v1040_v52, %v1031_v41  ;;  %v1063_v25 = vadd.s32 %v1062_v60, %v1053_v35  ;;  %v3620_v0 = vshrl.u32 %v1603_v22, 5  ;;  %v1608_v15 = vshll.u32 %v2804_v55, %v1605_v36 }
 0x177   :  { %v481_v28 = vadd.f32 0.041655596, %v480_v24  ;;  %v488_v62 = vadd.f32 0.008332121, %v487_v39  ;;  %v1609_v1 = vshrl.u32 %v2805_v57, %v3618_v56  ;;  %v1611_v3 = vshll.u32 %v2805_v57, %v1605_v36 }
 0x178   :  { %vm1066_vm3 = vc.u32 %v3612_v30, %v3614_v20  ;;  %v1067_v17 = vadd.s32 1, %v1063_v25  ;;  %v1612_v43 = vshrl.u32 %v2806_v59, %v3618_v56  ;;  %v1614_v4 = vshll.u32 %v2806_v59, %v1605_v36 }
 0x179   :  { %v482_v18 = vmul.f32 %v481_v28, %v479_v32  ;;  %v489_v10 = vmul.f32 %v488_v62, %v479_v32  ;;  %v1615_v54 = vshrl.u32 %v2807_v61, %v3618_v56  ;;  %v1617_v53 = vshll.u32 %v2807_v61, %v1605_v36 }
 0x17a   :  { %v1618_v6 = vshrl.u32 %v2808_v63, %v3618_v56  ;;  %v1068_v23 = vsel %vm1066_vm3, %v1067_v17, %v1063_v25  ;;  %v1610_v47 = vor.u32 %v1609_v1, %v1608_v15  ;;  %v3636_v29 = vor.u32 %v1612_v43, %v1611_v3 }
 0x17b   :  { %v483_v13 = vadd.f32 -0.4999988, %v482_v18  ;;  %v490_v48 = vadd.f32 -0.16666654, %v489_v10  ;;  %v1069_v50 = vadd.s32 %v1068_v23, %v1064_v12  ;;  %v1616_v26 = vor.u32 %v1615_v54, %v1614_v4 }
 0x17c   :  { %v1619_v5 = vor.u32 %v1618_v6, %v1617_v53  ;;  %v1620_v42 = vshll.u32 %v2808_v63, %v1605_v36  ;;  %v1621_v40 = vshrl.u32 %v2809_v8, %v3618_v56  ;;  %v496_v7 = vand.u32 3, %v495_v9 }
 0x17d   :  { %v484_v16 = vmul.f32 %v483_v13, %v479_v32  ;;  %v491_v27 = vmul.f32 %v490_v48, %v479_v32  ;;  %v1070_v44 = vadd.s32 536870912, %v1069_v50  ;;  %v3643_v37 = vshll.u32 %v1599_v46, 8 }
 0x17e   :  { %v1622_v33 = vor.u32 %v1621_v40, %v1620_v42  ;;  %vm1626_vm6 = vcmp.lt.s32.totalorder %v3620_v0, 4  ;;  %vm1623_vm7 = vcmp.lt.s32.totalorder %v3620_v0, 1  ;;  %vm1625_vm9 = vcmp.lt.s32.totalorder %v3620_v0, 3 }
 0x17f   :  { %v485_v21 = vadd.f32 1.0, %v484_v16  ;;  %v492_v49 = vadd.f32 1.0, %v491_v27  ;;  %v3646_v2 = vshrl.u32 %v1070_v44, 30  ;;  %v1632_v32 = vsel %vm1626_vm6, %v1619_v5, 920167782 }
 0x180   :  { %v1631_v51 = vsel %vm1623_vm7, %v1610_v47, %v3636_v29  ;;  %v1633_v46 = vsel %vm1625_vm9, %v1616_v26, %v1632_v32  ;;  %vm494_vm10 = vweird.f32 %v3285_v38  ;;  %vm497_vm11 = vcmp.lt.s32.totalorder %v496_v7, 2 }
 0x181   :  { %v493_v22 = vmul.f32 %v492_v49, %v477_v19  ;;  %v502_v9 = vxor.u32 2147483648, %v485_v21  ;;  %vm498_vm12 = vcmp.eq.s32.totalorder %v496_v7, 0  ;;  %v1072_v41 = vshll.u32 %v3646_v2, 30 }
 0x182   :  { %vm1624_vm14 = vcmp.lt.s32.totalorder %v3620_v0, 2  ;;  %v1635_v19 = vsel %vm1623_vm7, %v3636_v29, %v1616_v26  ;;  %v1636_v36 = vsel %vm1626_vm6, %v1622_v33, 1326507024  ;;  %vm501_vm15 = vcmp.eq.s32.totalorder %v496_v7, 2 }
 0x183   :  { %v499_v52 = vxor.u32 2147483648, %v493_v22  ;;  %v1073_v24 = vsub.s32 %v1069_v50, %v1072_v41  ;;  %v1634_v39 = vsel %vm1624_vm14, %v1631_v51, %v1633_v46  ;;  %v1637_v35 = vsel %vm1625_vm9, %v1619_v5, %v1636_v36  ;;  %v171_v41 = vpop.f32.mrf.mxu3 }
 0x184   :  { %v503_v12 = vsel %vm501_vm15, %v502_v9, %v493_v22  ;;  %v1638_v28 = vsel %vm1624_vm14, %v1635_v19, %v1637_v35  ;;  %v1640_v62 = vand.u32 65535, %v3643_v37  ;;  %v1641_v1 = vshrl.u32 %v3643_v37, 16  ;;  %v138_v35 = vpop.f32.mrf.mxu0 }
 0x185   :  { %v500_v60 = vsel %vm498_vm12, %v485_v21, %v499_v52  ;;  %vm1074_vm13 = vcmp.lt.s32.totalorder %v1073_v24, 0  ;;  %v1075_v15 = vsub.s32 0, %v1073_v24  ;;  %v1642_v18 = vand.u32 65535, %v1638_v28 }
 0x186   :  { %v504_v25 = vsel %vm497_vm11, %v500_v60, %v503_v12  ;;  %v1643_v10 = vshrl.u32 %v1638_v28, 16  ;;  %v1664_v17 = vand.u32 65535, %v1634_v39  ;;  %v1607_v4 = vshrl.u32 %v2804_v55, %v3618_v56 }
 0x187   :  { %v505_v3 = vsel %vm494_vm10, nan, %v504_v25  ;;  %v1076_v43 = vsel %vm1074_vm13, %v1075_v15, %v1073_v24  ;;  %v1665_v54 = vshrl.u32 %v1634_v39, 16  ;;  %v1646_v13 = vmul.u32 %v1642_v18, %v1641_v1 }
 0x188   :  { %2678 = vst.msk [vmem:[%s4705_s3 + $0x8] sm:$0xff] %vm2676_vm8, %v505_v3  ;;  %v1077_v53 = vclz %v1076_v43  ;;  %v1645_v6 = vmul.u32 %v1643_v10, %v1640_v62  ;;  %v1065_v38 = vadd.s32 %v3614_v20, %v3612_v30  ;;  %v1095_v48 = vsub.s32 4, %v3646_v2 }
 0x189   :  { %v1627_v23 = vsel %vm1623_vm7, %v1607_v4, %v1610_v47  ;;  %v1628_v50 = vsel %vm1626_vm6, %v1616_v26, 2102212464  ;;  %v1644_v16 = vmul.u32 %v1642_v18, %v1640_v62  ;;  %v1668_v42 = vmul.u32 %v1664_v17, %v1641_v1 }
 0x18a   :  { %v2737_v5 = vadd.s32 4294967294, %v1077_v53  ;;  %v1648_v27 = vshll.u32 %v1645_v6, 16  ;;  %v1647_v56 = vmul.u32 %v1643_v10, %v1641_v1  ;;  %v1649_v40 = vshrl.u32 %v1645_v6, 16 }
 0x18b   :  { %v1666_v7 = vmul.u32 %v1664_v17, %v1640_v62  ;;  %v1667_v44 = vmul.u32 %v1665_v54, %v1640_v62  ;;  %v1650_v21 = vshll.u32 %v1646_v13, 16  ;;  %v1669_v33 = vmul.u32 %v1665_v54, %v1641_v1 }
 0x18c   :  { %vm2738_vm0 = vcmp.lt.s32.totalorder %v2737_v5, 0  ;;  %vm1652_vm1 = vc.u32 %v1644_v16, %v1648_v27  ;;  %v1654_v30 = vadd.s32 %v1648_v27, %v1644_v16  ;;  %vm973_vm2 = vcmp.lt.s32.totalorder %v3465_v31, 0 }
 0x18d   :  { %v1080_v20 = vsel %vm2738_vm0, 0, %v2737_v5  ;;  %v1653_v49 = vsel %vm1652_vm1, 1, %v2810_v14  ;;  %v1670_v47 = vshll.u32 %v1667_v44, 16  ;;  %v1672_v9 = vshll.u32 %v1668_v42, 16 }
 0x18e   :  { %v1081_v26 = vsub.s32 32, %v1080_v20  ;;  %v1085_v32 = vsub.s32 4294967266, %v1080_v20  ;;  %v1655_v22 = vadd.s32 %v1653_v49, %v1647_v56  ;;  %v1082_v51 = vshll.u32 %v1073_v24, %v1080_v20 }
 0x18f   :  { %vm1656_vm4 = vc.u32 %v1654_v30, %v1650_v21  ;;  %vm1674_vm5 = vc.u32 %v1666_v7, %v1670_v47  ;;  %v1676_v46 = vadd.s32 %v1670_v47, %v1666_v7  ;;  %v1651_v60 = vshrl.u32 %v1646_v13, 16 }
 0x190   :  { %v1083_v52 = vshrl.u32 %v1065_v38, %v1081_v26  ;;  %v1086_v19 = vadd.s32 127, %v1085_v32  ;;  %v1657_v36 = vsel %vm1656_vm4, 1, %v2810_v14  ;;  %v1675_v39 = vsel %vm1674_vm5, 1, %v2810_v14 }
 0x191   :  { %v1659_v12 = vadd.s32 %v1657_v36, %v1655_v22  ;;  %v1677_v28 = vadd.s32 %v1675_v39, %v1669_v33  ;;  %vm1678_vm3 = vc.u32 %v1676_v46, %v1672_v9  ;;  %v172_v24 = vadd.f32 %v3458_v11, %v171_v41 }
 0x192   :  { %v1084_v62 = vor.u32 %v1083_v52, %v1082_v51  ;;  %v1087_v25 = vshll.u32 %v1086_v19, 23  ;;  %v1679_v15 = vsel %vm1678_vm3, 1, %v2810_v14  ;;  %v1671_v3 = vshrl.u32 %v1667_v44, 16 }
 0x193   :  { %v1660_v1 = vadd.s32 %v1659_v12, %v1649_v40  ;;  %v1681_v18 = vadd.s32 %v1679_v15, %v1677_v28  ;;  %v139_v10 = vadd.f32 %v3458_v11, %v138_v35  ;;  %v1629_v43 = vsel %vm1625_vm9, %v3636_v29, %v1628_v50 }
 0x194   :  { %v1088_v17 = vor.u32 4788187, %v1087_v25  ;;  %v1673_v4 = vshrl.u32 %v1668_v42, 16  ;;  %v3698_v54 = vmul.f32 30.0, %v172_v24  ;;  %v1680_v6 = vadd.s32 %v1676_v46, %v1672_v9 }
 0x195   :  { %v1661_v53 = vadd.s32 %v1660_v1, %v1651_v60  ;;  %v1682_v13 = vadd.s32 %v1681_v18, %v1671_v3  ;;  %v3700_v38 = vmul.f32 30.0, %v139_v10  ;;  %v1091_v16 = vcvt.s32.f32 %v1084_v62 }
 0x196   :  { %v1089_v5 = vand.u32 2147483647, %v1088_v17  ;;  %v2211_v27 = vand.u32 2147483647, %v3698_v54  ;;  %v2214_v56 = vand.u32 2139095040, %v3698_v54  ;;  %v1096_v11 = vsel %vm973_vm2, %v1095_v48, %v3646_v2 }
 0x197   :  { %v1630_v29 = vsel %vm1624_vm14, %v1627_v23, %v1629_v43  ;;  %v1683_v50 = vadd.s32 %v1682_v13, %v1673_v4  ;;  %vm1686_vm6 = vc.u32 %v1661_v53, %v1680_v6  ;;  %vm972_vm7 = vcmp.le.f32.partialorder %v971_v45, 0.7853982 }
 0x198   :  { %v1092_v42 = vmul.f32 %v1091_v16, %v1089_v5  ;;  %v2215_v40 = vshrl.u32 %v2214_v56, 23  ;;  %v2218_v7 = vand.u32 8388607, %v2211_v27  ;;  %v509_v21 = vand.u32 2139095040, %v3700_v38 }
 0x199   :  { %v1687_v44 = vadd.s32 1, %v1683_v50  ;;  %v1098_v20 = vsel %vm972_vm7, 0, %v1096_v11  ;;  %v1684_v2 = vmul.u32 %v3643_v37, %v1630_v29  ;;  %v506_v37 = vand.u32 2147483647, %v3700_v38 }
 0x19a   :  { %v1093_v30 = vxor.u32 2147483648, %v1092_v42  ;;  %v2760_v48 = vadd.s32 4294967169, %v2215_v40  ;;  %v2219_v23 = vor.u32 8388608, %v2218_v7  ;;  %v1115_v32 = vadd.s32 3, %v1098_v20 }
 0x19b   :  { %v1688_v0 = vsel %vm1686_vm6, %v1687_v44, %v1683_v50  ;;  %v510_v22 = vshrl.u32 %v509_v21, 23  ;;  %vm1593_vm10 = vcmp.lt.s32.totalorder %v3487_v34, 0  ;;  %v3724_v62 = vadd.s32 %v1680_v6, %v1661_v53 }
 0x19c   :  { %v1094_v49 = vsel %vm973_vm2, %v1093_v30, %v1092_v42  ;;  %v1689_v33 = vadd.s32 %v1688_v0, %v1684_v2  ;;  %v2221_v47 = vadd.s32 1, %v2760_v48  ;;  %v3718_v46 = vshll.u32 %v2219_v23, 8 }
 0x19d   :  { %v1097_v26 = vsel %vm972_vm7, %v3465_v31, %v1094_v49  ;;  %v3721_v36 = vand.u32 3, %v1115_v32  ;;  %v2727_v35 = vadd.s32 4294967169, %v510_v22  ;;  %v3731_v24 = vand.u32 8388607, %v506_v37 }
 0x19e   :  { %v1099_v45 = vmul.f32 %v1097_v26, %v1097_v26  ;;  %v1690_v9 = vadd.s32 536870912, %v1689_v33  ;;  %vm2222_vm9 = vcmp.gt.s32.totalorder %v2221_v47, 0  ;;  %v3727_v15 = vand.u32 65535, %v3718_v46 }
 0x19f   :  { %v2223_v51 = vsel %vm2222_vm9, %v2221_v47, 0  ;;  %v3736_v10 = vshrl.u32 %v3718_v46, 16  ;;  %vm1121_vm11 = vcmp.eq.s32.totalorder %v3721_v36, 2  ;;  %v3742_v53 = vadd.s32 1, %v2727_v35 }
 0x1a0   :  { %v1100_v41 = vmul.f32 -0.001358992, %v1099_v45  ;;  %v1107_v52 = vmul.f32 -0.00019511016, %v1099_v45  ;;  %v1691_v19 = vshrl.u32 %v1690_v9, 30  ;;  %v2225_v39 = vand.u32 31, %v2223_v51 }
 0x1a1   :  { %v3739_v43 = vshrl.u32 %v2223_v51, 5  ;;  %vm1118_vm14 = vcmp.eq.s32.totalorder %v3721_v36, 0  ;;  %vm1117_vm15 = vcmp.lt.s32.totalorder %v3721_v36, 2  ;;  %vm1114_vm13 = vweird.f32 %v3465_v31 }
 0x1a2   :  { %v1101_v60 = vadd.f32 0.041655596, %v1100_v41  ;;  %v1108_v12 = vadd.f32 0.008332121, %v1107_v52  ;;  %v1692_v28 = vshll.u32 %v1691_v19, 30  ;;  %v2226_v25 = vsub.s32 32, %v2225_v39 }
 0x1a3   :  { %v1715_v17 = vsub.s32 4, %v1691_v19  ;;  %v2228_v4 = vshll.u32 %v2804_v55, %v2225_v39  ;;  %v2231_v56 = vshll.u32 %v2805_v57, %v2225_v39  ;;  %v2234_v29 = vshll.u32 %v2806_v59, %v2225_v39 }
 0x1a4   :  { %v1102_v1 = vmul.f32 %v1101_v60, %v1099_v45  ;;  %v1109_v3 = vmul.f32 %v1108_v12, %v1099_v45  ;;  %v3733_v18 = vsub.s32 %v1689_v33, %v1692_v28  ;;  %v2229_v16 = vshrl.u32 %v2805_v57, %v2226_v25 }
 0x1a5   :  { %v2232_v11 = vshrl.u32 %v2806_v59, %v2226_v25  ;;  %v2235_v7 = vshrl.u32 %v2807_v61, %v2226_v25  ;;  %v1716_v21 = vsel %vm1593_vm10, %v1715_v17, %v1691_v19  ;;  %v2227_v30 = vshrl.u32 %v2804_v55, %v2226_v25 }
 0x1a6   :  { %v1103_v6 = vadd.f32 -0.4999988, %v1102_v1  ;;  %v1110_v13 = vadd.f32 -0.16666654, %v1109_v3  ;;  %vm1694_vm12 = vcmp.lt.s32.totalorder %v3733_v18, 0  ;;  %v1695_v5 = vsub.s32 0, %v3733_v18 }
 0x1a7   :  { %v2238_v20 = vshrl.u32 %v2808_v63, %v2226_v25  ;;  %v2237_v0 = vshll.u32 %v2807_v61, %v2225_v39  ;;  %v2241_v23 = vshrl.u32 %v2809_v8, %v2226_v25  ;;  %vm3763_vm0 = vcmp.le.f32.partialorder %v1591_v58, 0.7853982 }
 0x1a8   :  { %v1104_v50 = vmul.f32 %v1103_v6, %v1099_v45  ;;  %v1111_v42 = vmul.f32 %v1110_v13, %v1099_v45  ;;  %v1696_v40 = vsel %vm1694_vm12, %v1695_v5, %v3733_v18  ;;  %v2230_v47 = vor.u32 %v2229_v16, %v2228_v4 }
 0x1a9   :  { %v1697_v44 = vclz %v1696_v40  ;;  %v2233_v32 = vor.u32 %v2232_v11, %v2231_v56  ;;  %v2240_v22 = vshll.u32 %v2808_v63, %v2225_v39  ;;  %v2236_v51 = vor.u32 %v2235_v7, %v2234_v29 }
 0x1aa   :  { %v1105_v2 = vadd.f32 1.0, %v1104_v50  ;;  %v1112_v48 = vadd.f32 1.0, %v1111_v42  ;;  %v2239_v41 = vor.u32 %v2238_v20, %v2237_v0  ;;  %vm2243_vm2 = vcmp.lt.s32.totalorder %v3739_v43, 1 }
 0x1ab   :  { %v2749_v33 = vadd.s32 4294967294, %v1697_v44  ;;  %v2242_v52 = vor.u32 %v2241_v23, %v2240_v22  ;;  %vm2244_vm4 = vcmp.lt.s32.totalorder %v3739_v43, 2  ;;  %vm2245_vm5 = vcmp.lt.s32.totalorder %v3739_v43, 3 }
 0x1ac   :  { %v1113_v45 = vmul.f32 %v1112_v48, %v1097_v26  ;;  %v1122_v9 = vxor.u32 2147483648, %v1105_v2  ;;  %vm2246_vm3 = vcmp.lt.s32.totalorder %v3739_v43, 4  ;;  %v2251_v25 = vsel %vm2243_vm2, %v2230_v47, %v2233_v32 }
 0x1ad   :  { %vm2750_vm1 = vcmp.lt.s32.totalorder %v2749_v33, 0  ;;  %v2248_v28 = vsel %vm2246_vm3, %v2236_v51, 2102212464  ;;  %v2252_v1 = vsel %vm2246_vm3, %v2239_v41, 920167782  ;;  %v2247_v4 = vsel %vm2243_vm2, %v2227_v30, %v2230_v47 }
 0x1ae   :  { %v1119_v19 = vxor.u32 2147483648, %v1113_v45  ;;  %v1123_v58 = vsel %vm1121_vm11, %v1122_v9, %v1113_v45  ;;  %v1700_v35 = vsel %vm2750_vm1, 0, %v2749_v33  ;;  %v2249_v13 = vsel %vm2245_vm5, %v2233_v32, %v2248_v28 }
 0x1af   :  { %v1701_v60 = vsub.s32 32, %v1700_v35  ;;  %v1702_v39 = vshll.u32 %v3733_v18, %v1700_v35  ;;  %v1705_v26 = vsub.s32 4294967266, %v1700_v35  ;;  %v2253_v5 = vsel %vm2245_vm5, %v2236_v51, %v2252_v1 }
 0x1b0   :  { %v1120_v12 = vsel %vm1118_vm14, %v1105_v2, %v1119_v19  ;;  %v2255_v16 = vsel %vm2243_vm2, %v2233_v32, %v2236_v51  ;;  %v2254_v31 = vsel %vm2244_vm4, %v2251_v25, %v2253_v5  ;;  %v2256_v56 = vsel %vm2246_vm3, %v2242_v52, 1326507024 }
 0x1b1   :  { %v1124_v3 = vsel %vm1117_vm15, %v1120_v12, %v1123_v58  ;;  %v1703_v18 = vshrl.u32 %v3724_v62, %v1701_v60  ;;  %v1706_v17 = vadd.s32 127, %v1705_v26  ;;  %v1718_v11 = vsel %vm3763_vm0, 0, %v1716_v21 }
 0x1b2   :  { %v1125_v6 = vsel %vm1114_vm13, nan, %v1124_v3  ;;  %v2257_v29 = vsel %vm2245_vm5, %v2239_v41, %v2256_v56  ;;  %v2284_v50 = vand.u32 65535, %v2254_v31  ;;  %v2285_v42 = vshrl.u32 %v2254_v31, 16 }
 0x1b3   :  { %2682 = vst.msk [vmem:[%s4705_s3 + $0x28] sm:$0xff] %vm2676_vm8, %v1125_v6  ;;  %v1704_v36 = vor.u32 %v1703_v18, %v1702_v39  ;;  %v1707_v62 = vshll.u32 %v1706_v17, 23  ;;  %v3810_v7 = vsel %vm2244_vm4, %v2247_v4, %v2249_v13  ;;  %v2258_v44 = vsel %vm2244_vm4, %v2255_v16, %v2257_v29 }
 0x1b4   :  { %vm517_vm6 = vcmp.gt.s32.totalorder %v3742_v53, 0  ;;  %v2262_v30 = vand.u32 65535, %v2258_v44  ;;  %v2263_v20 = vshrl.u32 %v2258_v44, 16  ;;  %v2287_v2 = vmul.u32 %v2285_v42, %v3727_v15 }
 0x1b5   :  { %v1708_v40 = vor.u32 4788187, %v1707_v62  ;;  %v514_v21 = vor.u32 8388608, %v3731_v24  ;;  %v1711_v0 = vcvt.s32.f32 %v1704_v36  ;;  %v3817_v23 = vadd.s32 3, %v1718_v11 }
 0x1b6   :  { %v2288_v33 = vmul.u32 %v2284_v50, %v3736_v10  ;;  %v2265_v47 = vmul.u32 %v2263_v20, %v3727_v15  ;;  %v2266_v32 = vmul.u32 %v2262_v30, %v3736_v10  ;;  %v2304_v43 = vmul.u32 %v3718_v46, %v3810_v7 }
 0x1b7   :  { %v1709_v48 = vand.u32 2147483647, %v1708_v40  ;;  %v518_v22 = vsel %vm517_vm6, %v3742_v53, 0  ;;  %v2286_v9 = vmul.u32 %v2284_v50, %v3727_v15  ;;  %v2289_v51 = vmul.u32 %v2285_v42, %v3736_v10 }
 0x1b8   :  { %v2290_v41 = vshll.u32 %v2287_v2, 16  ;;  %v2264_v52 = vmul.u32 %v2262_v30, %v3727_v15  ;;  %v2267_v19 = vmul.u32 %v2263_v20, %v3736_v10  ;;  %v2268_v58 = vshll.u32 %v2265_v47, 16 }
 0x1b9   :  { %v1712_v45 = vmul.f32 %v1711_v0, %v1709_v48  ;;  %v2292_v35 = vshll.u32 %v2288_v33, 16  ;;  %v2270_v39 = vshll.u32 %v2266_v32, 16  ;;  %v520_v28 = vand.u32 31, %v518_v22 }
 0x1ba   :  { %vm2294_vm7 = vc.u32 %v2286_v9, %v2290_v41  ;;  %v2296_v26 = vadd.s32 %v2290_v41, %v2286_v9  ;;  %vm2272_vm9 = vc.u32 %v2264_v52, %v2268_v58  ;;  %v2274_v12 = vadd.s32 %v2268_v58, %v2264_v52 }
 0x1bb   :  { %v1713_v60 = vxor.u32 2147483648, %v1712_v45  ;;  %v2295_v53 = vsel %vm2294_vm7, 1, %v2810_v14  ;;  %v2273_v1 = vsel %vm2272_vm9, 1, %v2810_v14  ;;  %v2291_v6 = vshrl.u32 %v2287_v2, 16 }
 0x1bc   :  { %v2297_v3 = vadd.s32 %v2295_v53, %v2289_v51  ;;  %vm2298_vm11 = vc.u32 %v2296_v26, %v2292_v35  ;;  %v2275_v10 = vadd.s32 %v2273_v1, %v2267_v19  ;;  %vm2276_vm12 = vc.u32 %v2274_v12, %v2270_v39 }
 0x1bd   :  { %v1714_v25 = vsel %vm1593_vm10, %v1713_v60, %v1712_v45  ;;  %v2299_v18 = vsel %vm2298_vm11, 1, %v2810_v14  ;;  %v2277_v4 = vsel %vm2276_vm12, 1, %v2810_v14  ;;  %v2269_v5 = vshrl.u32 %v2265_v47, 16 }
 0x1be   :  { %v1717_v15 = vsel %vm3763_vm0, %v3487_v34, %v1714_v25  ;;  %v2301_v13 = vadd.s32 %v2299_v18, %v2297_v3  ;;  %v2271_v16 = vshrl.u32 %v2266_v32, 16  ;;  %v2279_v36 = vadd.s32 %v2277_v4, %v2275_v10 }
 0x1bf   :  { %v1719_v17 = vmul.f32 %v1717_v15, %v1717_v15  ;;  %v521_v62 = vsub.s32 32, %v520_v28  ;;  %v2293_v11 = vshrl.u32 %v2288_v33, 16  ;;  %v3838_v49 = vadd.s32 %v2296_v26, %v2292_v35 }
 0x1c0   :  { %v2302_v29 = vadd.s32 %v2301_v13, %v2291_v6  ;;  %v2280_v50 = vadd.s32 %v2279_v36, %v2269_v5  ;;  %v523_v42 = vshll.u32 %v2804_v55, %v520_v28  ;;  %v526_v40 = vshll.u32 %v2805_v57, %v520_v28 }
 0x1c1   :  { %v1720_v31 = vmul.f32 -0.001358992, %v1719_v17  ;;  %v1727_v56 = vmul.f32 -0.00019511016, %v1719_v17  ;;  %v529_v2 = vshll.u32 %v2806_v59, %v520_v28  ;;  %v524_v0 = vshrl.u32 %v2805_v57, %v521_v62 }
 0x1c2   :  { %v2303_v20 = vadd.s32 %v2302_v29, %v2293_v11  ;;  %v3843_v48 = vadd.s32 %v2280_v50, %v2271_v16  ;;  %v527_v47 = vshrl.u32 %v2806_v59, %v521_v62  ;;  %v532_v33 = vshll.u32 %v2807_v61, %v520_v28 }
 0x1c3   :  { %v1721_v44 = vadd.f32 0.041655596, %v1720_v31  ;;  %v1728_v30 = vadd.f32 0.008332121, %v1727_v56  ;;  %v530_v51 = vshrl.u32 %v2807_v61, %v521_v62  ;;  %v3851_v41 = vshrl.u32 %v518_v22, 5 }
 0x1c4   :  { %v2307_v9 = vadd.s32 1, %v2303_v20  ;;  %vm2306_vm10 = vc.u32 %v3843_v48, %v3838_v49  ;;  %v533_v52 = vshrl.u32 %v2808_v63, %v521_v62  ;;  %v535_v19 = vshll.u32 %v2808_v63, %v520_v28 }
 0x1c5   :  { %v1722_v32 = vmul.f32 %v1721_v44, %v1719_v17  ;;  %v1729_v45 = vmul.f32 %v1728_v30, %v1719_v17  ;;  %v536_v39 = vshrl.u32 %v2809_v8, %v521_v62  ;;  %v1736_v26 = vand.u32 3, %v3817_v23 }
 0x1c6   :  { %v2308_v60 = vsel %vm2306_vm10, %v2307_v9, %v2303_v20  ;;  %v525_v53 = vor.u32 %v524_v0, %v523_v42  ;;  %v534_v25 = vor.u32 %v533_v52, %v532_v33  ;;  %v528_v3 = vor.u32 %v527_v47, %v526_v40 }
 0x1c7   :  { %v1723_v58 = vadd.f32 -0.4999988, %v1722_v32  ;;  %v1730_v35 = vadd.f32 -0.16666654, %v1729_v45  ;;  %v2309_v12 = vadd.s32 %v2308_v60, %v2304_v43  ;;  %v531_v10 = vor.u32 %v530_v51, %v529_v2 }
 0x1c8   :  { %v537_v4 = vor.u32 %v536_v39, %v535_v19  ;;  %vm538_vm14 = vcmp.lt.s32.totalorder %v3851_v41, 1  ;;  %vm541_vm15 = vcmp.lt.s32.totalorder %v3851_v41, 4  ;;  %vm540_vm13 = vcmp.lt.s32.totalorder %v3851_v41, 3 }
 0x1c9   :  { %v1724_v1 = vmul.f32 %v1723_v58, %v1719_v17  ;;  %v1731_v22 = vmul.f32 %v1730_v35, %v1719_v17  ;;  %v2310_v18 = vadd.s32 536870912, %v2309_v12  ;;  %v547_v46 = vsel %vm541_vm15, %v534_v25, 920167782 }
 0x1ca   :  { %vm1734_vm0 = vweird.f32 %v3487_v34  ;;  %vm1737_vm1 = vcmp.lt.s32.totalorder %v1736_v26, 2  ;;  %v546_v17 = vsel %vm538_vm14, %v525_v53, %v528_v3  ;;  %v550_v13 = vsel %vm538_vm14, %v528_v3, %v531_v10 }
 0x1cb   :  { %v1725_v28 = vadd.f32 1.0, %v1724_v1  ;;  %v1732_v6 = vadd.f32 1.0, %v1731_v22  ;;  %v3866_v7 = vshrl.u32 %v2310_v18, 30  ;;  %v548_v16 = vsel %vm540_vm13, %v531_v10, %v547_v46 }
 0x1cc   :  { %v551_v36 = vsel %vm541_vm15, %v537_v4, 1326507024  ;;  %v3879_v31 = vshll.u32 %v514_v21, 8  ;;  %vm1738_vm2 = vcmp.eq.s32.totalorder %v1736_v26, 0  ;;  %vm539_vm4 = vcmp.lt.s32.totalorder %v3851_v41, 2 }
 0x1cd   :  { %v1733_v23 = vmul.f32 %v1732_v6, %v1717_v15  ;;  %v1742_v43 = vxor.u32 2147483648, %v1725_v28  ;;  %v2312_v5 = vshll.u32 %v3866_v7, 30  ;;  %v552_v56 = vsel %vm540_vm13, %v534_v25, %v551_v36 }
 0x1ce   :  { %vm1741_vm5 = vcmp.eq.s32.totalorder %v1736_v26, 2  ;;  %v522_v29 = vshrl.u32 %v2804_v55, %v521_v62  ;;  %v553_v50 = vsel %vm539_vm4, %v550_v13, %v552_v56  ;;  %v549_v24 = vsel %vm539_vm4, %v546_v17, %v548_v16  ;;  %v150_v17 = vpop.f32.mrf.mxu1 }
 0x1cf   :  { %v1739_v15 = vxor.u32 2147483648, %v1733_v23  ;;  %v2313_v11 = vsub.s32 %v2309_v12, %v2312_v5  ;;  %v1743_v40 = vsel %vm1741_vm5, %v1742_v43, %v1733_v23  ;;  %v557_v21 = vand.u32 65535, %v553_v50 }
 0x1d0   :  { %v556_v20 = vshrl.u32 %v3879_v31, 16  ;;  %v543_v62 = vsel %vm541_vm15, %v531_v10, 2102212464  ;;  %v555_v0 = vand.u32 65535, %v3879_v31  ;;  %v558_v47 = vshrl.u32 %v553_v50, 16 }
 0x1d1   :  { %v1740_v42 = vsel %vm1738_vm2, %v1725_v28, %v1739_v15  ;;  %vm2314_vm3 = vcmp.lt.s32.totalorder %v2313_v11, 0  ;;  %v2315_v30 = vsub.s32 0, %v2313_v11  ;;  %v579_v45 = vand.u32 65535, %v549_v24  ;;  %v162_v15 = vpop.f32.mrf.mxu2 }
 0x1d2   :  { %v1744_v44 = vsel %vm1737_vm1, %v1740_v42, %v1743_v40  ;;  %v561_v32 = vmul.u32 %v557_v21, %v556_v20  ;;  %v580_v9 = vshrl.u32 %v549_v24, 16  ;;  %v560_v52 = vmul.u32 %v558_v47, %v555_v0 }
 0x1d3   :  { %v1745_v2 = vsel %vm1734_vm0, nan, %v1744_v44  ;;  %v2316_v33 = vsel %vm2314_vm3, %v2315_v30, %v2313_v11  ;;  %v2305_v34 = vadd.s32 %v3838_v49, %v3843_v48  ;;  %v542_v19 = vsel %vm538_vm14, %v522_v29, %v525_v53 }
 0x1d4   :  { %2686 = vst.msk [vmem:[%s4705_s3 + $0x48] sm:$0xff] %vm2676_vm8, %v1745_v2  ;;  %v2317_v51 = vclz %v2316_v33  ;;  %v544_v58 = vsel %vm540_vm13, %v528_v3, %v543_v62  ;;  %v559_v60 = vmul.u32 %v557_v21, %v555_v0  ;;  %v563_v39 = vshll.u32 %v560_v52, 16 }
 0x1d5   :  { %v582_v26 = vmul.u32 %v580_v9, %v555_v0  ;;  %v562_v12 = vmul.u32 %v558_v47, %v556_v20  ;;  %v565_v25 = vshll.u32 %v561_v32, 16  ;;  %v581_v1 = vmul.u32 %v579_v45, %v555_v0 }
 0x1d6   :  { %v2761_v35 = vadd.s32 4294967294, %v2317_v51  ;;  %v583_v22 = vmul.u32 %v579_v45, %v556_v20  ;;  %vm567_vm7 = vc.u32 %v559_v60, %v563_v39  ;;  %v569_v10 = vadd.s32 %v563_v39, %v559_v60 }
 0x1d7   :  { %v585_v18 = vshll.u32 %v582_v26, 16  ;;  %v566_v49 = vshrl.u32 %v561_v32, 16  ;;  %v568_v48 = vsel %vm567_vm7, 1, %v2810_v14  ;;  %v584_v53 = vmul.u32 %v580_v9, %v556_v20 }
 0x1d8   :  { %vm2762_vm6 = vcmp.lt.s32.totalorder %v2761_v35, 0  ;;  %v570_v3 = vadd.s32 %v568_v48, %v562_v12  ;;  %v587_v46 = vshll.u32 %v583_v22, 16  ;;  %vm571_vm9 = vc.u32 %v569_v10, %v565_v25 }
 0x1d9   :  { %v2320_v4 = vsel %vm2762_vm6, 0, %v2761_v35  ;;  %vm589_vm11 = vc.u32 %v581_v1, %v585_v18  ;;  %v591_v43 = vadd.s32 %v585_v18, %v581_v1  ;;  %v572_v16 = vsel %vm571_vm9, 1, %v2810_v14 }
 0x1da   :  { %v2321_v28 = vsub.s32 32, %v2320_v4  ;;  %v2325_v6 = vsub.s32 4294967266, %v2320_v4  ;;  %v2322_v23 = vshll.u32 %v2313_v11, %v2320_v4  ;;  %v590_v36 = vsel %vm589_vm11, 1, %v2810_v14  ;;  %v3913_v11 = vld [vmem:[%s4703_s2] ss:$0 sm:$0xff] }
 0x1db   :  { %v564_v56 = vshrl.u32 %v560_v52, 16  ;;  %v574_v29 = vadd.s32 %v572_v16, %v570_v3  ;;  %v592_v50 = vadd.s32 %v590_v36, %v584_v53  ;;  %vm593_vm12 = vc.u32 %v591_v43, %v587_v46 }
 0x1dc   :  { %v2323_v13 = vshrl.u32 %v2305_v34, %v2321_v28  ;;  %v2326_v5 = vadd.s32 127, %v2325_v6  ;;  %v594_v24 = vsel %vm593_vm12, 1, %v2810_v14  ;;  %v151_v21 = vadd.f32 %v3913_v11, %v150_v17 }
 0x1dd   :  { %v575_v44 = vadd.s32 %v574_v29, %v564_v56  ;;  %v586_v30 = vshrl.u32 %v582_v26, 16  ;;  %v596_v20 = vadd.s32 %v594_v24, %v592_v50  ;;  %v163_v2 = vadd.f32 %v3913_v11, %v162_v15 }
 0x1de   :  { %v2324_v42 = vor.u32 %v2323_v13, %v2322_v23  ;;  %v2327_v40 = vshll.u32 %v2326_v5, 23  ;;  %v2335_v0 = vsub.s32 4, %v3866_v7  ;;  %v588_v47 = vshrl.u32 %v583_v22, 16 }
 0x1df   :  { %v3918_v33 = vmul.f32 30.0, %v151_v21  ;;  %v576_v32 = vadd.s32 %v575_v44, %v566_v49  ;;  %v595_v45 = vadd.s32 %v591_v43, %v587_v46  ;;  %v597_v9 = vadd.s32 %v596_v20, %v586_v30 }
 0x1e0   :  { %v2328_v62 = vor.u32 4788187, %v2327_v40  ;;  %v3920_v51 = vmul.f32 30.0, %v163_v2  ;;  %v2331_v34 = vcvt.s32.f32 %v2324_v42  ;;  %v545_v39 = vsel %vm539_vm4, %v542_v19, %v544_v58 }
 0x1e1   :  { %v1126_v35 = vand.u32 2147483647, %v3918_v33  ;;  %v1129_v60 = vand.u32 2139095040, %v3918_v33  ;;  %v598_v26 = vadd.s32 %v597_v9, %v588_v47  ;;  %vm2213_vm10 = vcmp.lt.s32.totalorder %v3698_v54, 0 }
 0x1e2   :  { %v2329_v52 = vand.u32 2147483647, %v2328_v62  ;;  %vm601_vm14 = vc.u32 %v576_v32, %v595_v45  ;;  %v2336_v1 = vsel %vm2213_vm10, %v2335_v0, %v3866_v7  ;;  %v1749_v18 = vand.u32 2139095040, %v3920_v51 }
 0x1e3   :  { %v1130_v25 = vshrl.u32 %v1129_v60, 23  ;;  %v602_v22 = vadd.s32 1, %v598_v26  ;;  %v1133_v10 = vand.u32 8388607, %v1126_v35  ;;  %v599_v49 = vmul.u32 %v3879_v31, %v545_v39 }
 0x1e4   :  { %v2332_v12 = vmul.f32 %v2331_v34, %v2329_v52  ;;  %vm2212_vm15 = vcmp.le.f32.partialorder %v2211_v27, 0.7853982  ;;  %v1750_v3 = vshrl.u32 %v1749_v18, 23  ;;  %vm508_vm0 = vcmp.lt.s32.totalorder %v3700_v38, 0 }
 0x1e5   :  { %v2739_v48 = vadd.s32 4294967169, %v1130_v25  ;;  %v603_v41 = vsel %vm601_vm14, %v602_v22, %v598_v26  ;;  %v2338_v58 = vsel %vm2212_vm15, 0, %v2336_v1  ;;  %v1134_v6 = vor.u32 8388608, %v1133_v10 }
 0x1e6   :  { %v2333_v4 = vxor.u32 2147483648, %v2332_v12  ;;  %v604_v53 = vadd.s32 %v603_v41, %v599_v49  ;;  %v2355_v43 = vadd.s32 3, %v2338_v58  ;;  %v2751_v27 = vadd.s32 4294967169, %v1750_v3 }
 0x1e7   :  { %v1136_v28 = vadd.s32 1, %v2739_v48  ;;  %v3935_v36 = vshll.u32 %v1134_v6, 8  ;;  %v600_v42 = vadd.s32 %v595_v45, %v576_v32  ;;  %v1746_v30 = vand.u32 2147483647, %v3920_v51 }
 0x1e8   :  { %v2334_v19 = vsel %vm2213_vm10, %v2333_v4, %v2332_v12  ;;  %v605_v23 = vadd.s32 536870912, %v604_v53  ;;  %v3937_v50 = vand.u32 3, %v2355_v43  ;;  %v3948_v0 = vadd.s32 1, %v2751_v27 }
 0x1e9   :  { %v2337_v7 = vsel %vm2212_vm15, %v3698_v54, %v2334_v19  ;;  %vm1137_vm13 = vcmp.gt.s32.totalorder %v1136_v28, 0  ;;  %v3946_v62 = vand.u32 65535, %v3935_v36  ;;  %vm2354_vm3 = vweird.f32 %v3698_v54 }
 0x1ea   :  { %v2339_v46 = vmul.f32 %v2337_v7, %v2337_v7  ;;  %v1138_v17 = vsel %vm1137_vm13, %v1136_v28, 0  ;;  %v606_v5 = vshrl.u32 %v605_v23, 30  ;;  %vm2358_vm2 = vcmp.eq.s32.totalorder %v3937_v50, 0 }
 0x1eb   :  { %v1140_v16 = vand.u32 31, %v1138_v17  ;;  %v3943_v2 = vshrl.u32 %v1138_v17, 5  ;;  %vm2361_vm4 = vcmp.eq.s32.totalorder %v3937_v50, 2  ;;  %vm2357_vm5 = vcmp.lt.s32.totalorder %v3937_v50, 2 }
 0x1ec   :  { %v2340_v13 = vmul.f32 -0.001358992, %v2339_v46  ;;  %v2347_v31 = vmul.f32 -0.00019511016, %v2339_v46  ;;  %v607_v29 = vshll.u32 %v606_v5, 30  ;;  %v630_v20 = vsub.s32 4, %v606_v5 }
 0x1ed   :  { %v1141_v40 = vsub.s32 32, %v1140_v16  ;;  %v1143_v45 = vshll.u32 %v2804_v55, %v1140_v16  ;;  %v1146_v34 = vshll.u32 %v2805_v57, %v1140_v16  ;;  %v1152_v25 = vshll.u32 %v2807_v61, %v1140_v16 }
 0x1ee   :  { %v2341_v15 = vadd.f32 0.041655596, %v2340_v13  ;;  %v2348_v56 = vadd.f32 0.008332121, %v2347_v31  ;;  %v3940_v44 = vsub.s32 %v604_v53, %v607_v29  ;;  %v1149_v22 = vshll.u32 %v2806_v59, %v1140_v16 }
 0x1ef   :  { %v1144_v52 = vshrl.u32 %v2805_v57, %v1141_v40  ;;  %v1147_v60 = vshrl.u32 %v2806_v59, %v1141_v40  ;;  %v1150_v10 = vshrl.u32 %v2807_v61, %v1141_v40  ;;  %v1153_v18 = vshrl.u32 %v2808_v63, %v1141_v40 }
 0x1f0   :  { %v2342_v24 = vmul.f32 %v2341_v15, %v2339_v46  ;;  %v2349_v21 = vmul.f32 %v2348_v56, %v2339_v46  ;;  %vm609_vm1 = vcmp.lt.s32.totalorder %v3940_v44, 0  ;;  %v610_v32 = vsub.s32 0, %v3940_v44 }
 0x1f1   :  { %v1155_v48 = vshll.u32 %v2808_v63, %v1140_v16  ;;  %v1156_v41 = vshrl.u32 %v2809_v8, %v1141_v40  ;;  %vm3969_vm6 = vcmp.le.f32.partialorder %v506_v37, 0.7853982  ;;  %v631_v53 = vsel %vm508_vm0, %v630_v20, %v606_v5 }
 0x1f2   :  { %v2343_v47 = vadd.f32 -0.4999988, %v2342_v24  ;;  %v2350_v9 = vadd.f32 -0.16666654, %v2349_v21  ;;  %v611_v12 = vsel %vm609_vm1, %v610_v32, %v3940_v44  ;;  %v1145_v28 = vor.u32 %v1144_v52, %v1143_v45 }
 0x1f3   :  { %v612_v1 = vclz %v611_v12  ;;  %v1176_v6 = vshrl.u32 %v3935_v36, 16  ;;  %v1148_v23 = vor.u32 %v1147_v60, %v1146_v34  ;;  %v1154_v43 = vor.u32 %v1153_v18, %v1152_v25 }
 0x1f4   :  { %v2344_v39 = vmul.f32 %v2343_v47, %v2339_v46  ;;  %v2351_v26 = vmul.f32 %v2350_v9, %v2339_v46  ;;  %v1142_v17 = vshrl.u32 %v2804_v55, %v1141_v40  ;;  %v1151_v13 = vor.u32 %v1150_v10, %v1149_v22 }
 0x1f5   :  { %v2728_v58 = vadd.s32 4294967294, %v612_v1  ;;  %vm1158_vm9 = vcmp.lt.s32.totalorder %v3943_v2, 1  ;;  %vm1757_vm11 = vcmp.gt.s32.totalorder %v3948_v0, 0  ;;  %v1157_v16 = vor.u32 %v1156_v41, %v1155_v48 }
 0x1f6   :  { %v2345_v4 = vadd.f32 1.0, %v2344_v39  ;;  %v2352_v49 = vadd.f32 1.0, %v2351_v26  ;;  %vm1161_vm12 = vcmp.lt.s32.totalorder %v3943_v2, 4  ;;  %vm1159_vm10 = vcmp.lt.s32.totalorder %v3943_v2, 2 }
 0x1f7   :  { %vm2729_vm7 = vcmp.lt.s32.totalorder %v2728_v58, 0  ;;  %vm1160_vm14 = vcmp.lt.s32.totalorder %v3943_v2, 3  ;;  %v1166_v56 = vsel %vm1158_vm9, %v1145_v28, %v1148_v23  ;;  %v1167_v29 = vsel %vm1161_vm12, %v1154_v43, 920167782 }
 0x1f8   :  { %v2353_v3 = vmul.f32 %v2352_v49, %v2337_v7  ;;  %v2362_v46 = vxor.u32 2147483648, %v2345_v4  ;;  %v615_v31 = vsel %vm2729_vm7, 0, %v2728_v58  ;;  %v1163_v9 = vsel %vm1161_vm12, %v1151_v13, 2102212464 }
 0x1f9   :  { %v616_v5 = vsub.s32 32, %v615_v31  ;;  %v620_v27 = vsub.s32 4294967266, %v615_v31  ;;  %v617_v24 = vshll.u32 %v3940_v44, %v615_v31  ;;  %v1168_v32 = vsel %vm1160_vm14, %v1151_v13, %v1167_v29 }
 0x1fa   :  { %v2359_v37 = vxor.u32 2147483648, %v2353_v3  ;;  %v2363_v15 = vsel %vm2361_vm4, %v2362_v46, %v2353_v3  ;;  %v1170_v45 = vsel %vm1158_vm9, %v1148_v23, %v1151_v13  ;;  %v1169_v54 = vsel %vm1159_vm10, %v1166_v56, %v1168_v32 }
 0x1fb   :  { %v618_v21 = vshrl.u32 %v600_v42, %v616_v5  ;;  %v621_v20 = vadd.s32 127, %v620_v27  ;;  %v1171_v44 = vsel %vm1161_vm12, %v1157_v16, 1326507024  ;;  %v633_v52 = vsel %vm3969_vm6, 0, %v631_v53 }
 0x1fc   :  { %v2360_v7 = vsel %vm2358_vm2, %v2345_v4, %v2359_v37  ;;  %v1172_v34 = vsel %vm1160_vm14, %v1154_v43, %v1171_v44  ;;  %v1199_v60 = vand.u32 65535, %v1169_v54  ;;  %v1200_v39 = vshrl.u32 %v1169_v54, 16 }
 0x1fd   :  { %v2364_v40 = vsel %vm2357_vm5, %v2360_v7, %v2363_v15  ;;  %v619_v50 = vor.u32 %v618_v21, %v617_v24  ;;  %v622_v42 = vshll.u32 %v621_v20, 23  ;;  %v1162_v12 = vsel %vm1158_vm9, %v1142_v17, %v1145_v28 }
 0x1fe   :  { %v2365_v47 = vsel %vm2354_vm3, nan, %v2364_v40  ;;  %v1164_v25 = vsel %vm1160_vm14, %v1148_v23, %v1163_v9  ;;  %v1173_v1 = vsel %vm1159_vm10, %v1170_v45, %v1172_v34  ;;  %v1202_v18 = vmul.u32 %v1200_v39, %v3946_v62 }
 0x1ff   :  { %2690 = vst.msk [vmem:[%s4705_s3 + $0x68] sm:$0xff] %vm2676_vm8, %v2365_v47  ;;  %v623_v26 = vor.u32 4788187, %v622_v42  ;;  %v1177_v22 = vand.u32 65535, %v1173_v1  ;;  %v1178_v10 = vshrl.u32 %v1173_v1, 16  ;;  %v626_v48 = vcvt.s32.f32 %v619_v50 }
 0x200   :  { %v4022_v4 = vand.u32 8388607, %v1746_v30  ;;  %v4024_v41 = vadd.s32 3, %v633_v52  ;;  %v1203_v58 = vmul.u32 %v1199_v60, %v1176_v6  ;;  %v4028_v53 = vsel %vm1159_vm10, %v1162_v12, %v1164_v25 }
 0x201   :  { %v624_v49 = vand.u32 2147483647, %v623_v26  ;;  %v1180_v28 = vmul.u32 %v1178_v10, %v3946_v62  ;;  %v1181_v3 = vmul.u32 %v1177_v22, %v1176_v6  ;;  %v1758_v46 = vsel %vm1757_vm11, %v3948_v0, 0 }
 0x202   :  { %v1201_v43 = vmul.u32 %v1199_v60, %v3946_v62  ;;  %v1204_v17 = vmul.u32 %v1200_v39, %v1176_v6  ;;  %v1205_v13 = vshll.u32 %v1202_v18, 16  ;;  %v1179_v37 = vmul.u32 %v1177_v22, %v3946_v62 }
 0x203   :  { %v627_v23 = vmul.f32 %v626_v48, %v624_v49  ;;  %v1182_v31 = vmul.u32 %v1178_v10, %v1176_v6  ;;  %v1183_v16 = vshll.u32 %v1180_v28, 16  ;;  %v1207_v5 = vshll.u32 %v1203_v58, 16 }
 0x204   :  { %v1185_v27 = vshll.u32 %v1181_v3, 16  ;;  %vm1209_vm15 = vc.u32 %v1201_v43, %v1205_v13  ;;  %v1211_v7 = vadd.s32 %v1205_v13, %v1201_v43  ;;  %v1760_v29 = vand.u32 31, %v1758_v46 }
 0x205   :  { %v628_v2 = vxor.u32 2147483648, %v627_v23  ;;  %vm1187_vm13 = vc.u32 %v1179_v37, %v1183_v16  ;;  %v1189_v15 = vadd.s32 %v1183_v16, %v1179_v37  ;;  %v1210_v56 = vsel %vm1209_vm15, 1, %v2810_v14 }
 0x206   :  { %v1188_v40 = vsel %vm1187_vm13, 1, %v2810_v14  ;;  %v1212_v24 = vadd.s32 %v1210_v56, %v1204_v17  ;;  %vm1213_vm1 = vc.u32 %v1211_v7, %v1207_v5  ;;  %v1206_v9 = vshrl.u32 %v1202_v18, 16 }
 0x207   :  { %v629_v0 = vsel %vm508_vm0, %v628_v2, %v627_v23  ;;  %v1190_v6 = vadd.s32 %v1188_v40, %v1182_v31  ;;  %vm1191_vm2 = vc.u32 %v1189_v15, %v1185_v27  ;;  %v1214_v21 = vsel %vm1213_vm1, 1, %v2810_v14 }
 0x208   :  { %v632_v62 = vsel %vm3969_vm6, %v3700_v38, %v629_v0  ;;  %v1192_v47 = vsel %vm1191_vm2, 1, %v2810_v14  ;;  %v1216_v32 = vadd.s32 %v1214_v21, %v1212_v24  ;;  %v1184_v45 = vshrl.u32 %v1180_v28, 16 }
 0x209   :  { %v634_v20 = vmul.f32 %v632_v62, %v632_v62  ;;  %v1194_v50 = vadd.s32 %v1192_v47, %v1190_v6  ;;  %v1219_v42 = vmul.u32 %v3935_v36, %v4028_v53  ;;  %v4047_v54 = vsub.s32 32, %v1760_v29 }
 0x20a   :  { %v1208_v19 = vshrl.u32 %v1203_v58, 16  ;;  %v1217_v34 = vadd.s32 %v1216_v32, %v1206_v9  ;;  %v1186_v60 = vshrl.u32 %v1181_v3, 16  ;;  %v4049_v26 = vadd.s32 %v1211_v7, %v1207_v5 }
 0x20b   :  { %v635_v44 = vmul.f32 -0.001358992, %v634_v20  ;;  %v642_v52 = vmul.f32 -0.00019511016, %v634_v20  ;;  %v1195_v39 = vadd.s32 %v1194_v50, %v1184_v45  ;;  %v4051_v12 = vshrl.u32 %v1758_v46, 5 }
 0x20c   :  { %v1218_v22 = vadd.s32 %v1217_v34, %v1208_v19  ;;  %v1763_v10 = vshll.u32 %v2804_v55, %v1760_v29  ;;  %v1764_v36 = vshrl.u32 %v2805_v57, %v4047_v54  ;;  %v1766_v49 = vshll.u32 %v2805_v57, %v1760_v29 }
 0x20d   :  { %v636_v25 = vadd.f32 0.041655596, %v635_v44  ;;  %v643_v1 = vadd.f32 0.008332121, %v642_v52  ;;  %v4054_v18 = vadd.s32 %v1195_v39, %v1186_v60  ;;  %v1767_v48 = vshrl.u32 %v2806_v59, %v4047_v54 }
 0x20e   :  { %v1222_v28 = vadd.s32 1, %v1218_v22  ;;  %v1770_v3 = vshrl.u32 %v2807_v61, %v4047_v54  ;;  %v1769_v46 = vshll.u32 %v2806_v59, %v1760_v29  ;;  %v1772_v23 = vshll.u32 %v2807_v61, %v1760_v29 }
 0x20f   :  { %v637_v58 = vmul.f32 %v636_v25, %v634_v20  ;;  %v644_v53 = vmul.f32 %v643_v1, %v634_v20  ;;  %vm1221_vm0 = vc.u32 %v4054_v18, %v4049_v26  ;;  %v1773_v43 = vshrl.u32 %v2808_v63, %v4047_v54 }
 0x210   :  { %v1223_v37 = vsel %vm1221_vm0, %v1222_v28, %v1218_v22  ;;  %v1776_v31 = vshrl.u32 %v2809_v8, %v4047_v54  ;;  %v1765_v5 = vor.u32 %v1764_v36, %v1763_v10  ;;  %v1775_v27 = vshll.u32 %v2808_v63, %v1760_v29 }
 0x211   :  { %v638_v17 = vadd.f32 -0.4999988, %v637_v58  ;;  %v645_v13 = vadd.f32 -0.16666654, %v644_v53  ;;  %v1224_v16 = vadd.s32 %v1223_v37, %v1219_v42  ;;  %v1774_v2 = vor.u32 %v1773_v43, %v1772_v23 }
 0x212   :  { %v4072_v56 = vor.u32 %v1767_v48, %v1766_v49  ;;  %v1771_v0 = vor.u32 %v1770_v3, %v1769_v46  ;;  %v1754_v24 = vor.u32 8388608, %v4022_v4  ;;  %v1777_v6 = vor.u32 %v1776_v31, %v1775_v27 }
 0x213   :  { %v639_v7 = vmul.f32 %v638_v17, %v634_v20  ;;  %v646_v15 = vmul.f32 %v645_v13, %v634_v20  ;;  %v1225_v40 = vadd.s32 536870912, %v1224_v16  ;;  %vm1781_vm4 = vcmp.lt.s32.totalorder %v4051_v12, 4 }
 0x214   :  { %v651_v9 = vand.u32 3, %v4024_v41  ;;  %v1787_v32 = vsel %vm1781_vm4, %v1774_v2, 920167782  ;;  %vm649_vm5 = vweird.f32 %v3700_v38  ;;  %vm1778_vm3 = vcmp.lt.s32.totalorder %v4051_v12, 1 }
 0x215   :  { %v640_v21 = vadd.f32 1.0, %v639_v7  ;;  %v647_v47 = vadd.f32 1.0, %v646_v15  ;;  %v4080_v29 = vshrl.u32 %v1225_v40, 30  ;;  %vm1780_vm6 = vcmp.lt.s32.totalorder %v4051_v12, 3 }
 0x216   :  { %v1786_v45 = vsel %vm1778_vm3, %v1765_v5, %v4072_v56  ;;  %v1790_v41 = vsel %vm1778_vm3, %v4072_v56, %v1771_v0  ;;  %v1788_v42 = vsel %vm1780_vm6, %v1771_v0, %v1787_v32  ;;  %v1791_v44 = vsel %vm1781_vm4, %v1777_v6, 1326507024 }
 0x217   :  { %v648_v20 = vmul.f32 %v647_v47, %v632_v62  ;;  %v657_v4 = vxor.u32 2147483648, %v640_v21  ;;  %v1227_v50 = vshll.u32 %v4080_v29, 30  ;;  %v4095_v52 = vshll.u32 %v1754_v24, 8 }
 0x218   :  { %vm652_vm7 = vcmp.lt.s32.totalorder %v651_v9, 2  ;;  %vm1779_vm9 = vcmp.lt.s32.totalorder %v4051_v12, 2  ;;  %v1792_v19 = vsel %vm1780_vm6, %v1774_v2, %v1791_v44  ;;  %vm653_vm11 = vcmp.eq.s32.totalorder %v651_v9, 0 }
 0x219   :  { %v654_v62 = vxor.u32 2147483648, %v648_v20  ;;  %vm656_vm12 = vcmp.eq.s32.totalorder %v651_v9, 2  ;;  %v1228_v34 = vsub.s32 %v1224_v16, %v1227_v50  ;;  %v1793_v60 = vsel %vm1779_vm9, %v1790_v41, %v1792_v19  ;;  %v174_v50 = vpop.f32.mrf.mxu3 }
 0x21a   :  { %v658_v25 = vsel %vm656_vm12, %v657_v4, %v648_v20  ;;  %v1789_v1 = vsel %vm1779_vm9, %v1786_v45, %v1788_v42  ;;  %v1797_v22 = vand.u32 65535, %v1793_v60  ;;  %v1796_v49 = vshrl.u32 %v4095_v52, 16 }
 0x21b   :  { %v655_v39 = vsel %vm653_vm11, %v640_v21, %v654_v62  ;;  %vm1229_vm10 = vcmp.lt.s32.totalorder %v1228_v34, 0  ;;  %v1230_v36 = vsub.s32 0, %v1228_v34  ;;  %v1762_v58 = vshrl.u32 %v2804_v55, %v4047_v54 }
 0x21c   :  { %v659_v10 = vsel %vm652_vm7, %v655_v39, %v658_v25  ;;  %v1795_v53 = vand.u32 65535, %v4095_v52  ;;  %v1798_v28 = vshrl.u32 %v1793_v60, 16  ;;  %v1801_v46 = vmul.u32 %v1797_v22, %v1796_v49  ;;  %v141_v60 = vpop.f32.mrf.mxu0 }
 0x21d   :  { %v660_v48 = vsel %vm649_vm5, nan, %v659_v10  ;;  %v1231_v3 = vsel %vm1229_vm10, %v1230_v36, %v1228_v34  ;;  %v1819_v23 = vand.u32 65535, %v1789_v1  ;;  %v1820_v43 = vshrl.u32 %v1789_v1, 16 }
 0x21e   :  { %2679 = vst.msk [vmem:[%s4705_s3 + $0x10] sm:$0xff] %vm2676_vm8, %v660_v48  ;;  %v1232_v17 = vclz %v1231_v3  ;;  %v1800_v13 = vmul.u32 %v1798_v28, %v1795_v53  ;;  %v1220_v38 = vadd.s32 %v4049_v26, %v4054_v18  ;;  %v1250_v37 = vsub.s32 4, %v4080_v29 }
 0x21f   :  { %v1782_v54 = vsel %vm1778_vm3, %v1762_v58, %v1765_v5  ;;  %v1783_v31 = vsel %vm1781_vm4, %v1771_v0, 2102212464  ;;  %v1799_v2 = vmul.u32 %v1797_v22, %v1795_v53  ;;  %v1822_v7 = vmul.u32 %v1820_v43, %v1795_v53 }
 0x220   :  { %v2740_v16 = vadd.s32 4294967294, %v1232_v17  ;;  %v1803_v27 = vshll.u32 %v1800_v13, 16  ;;  %v1802_v15 = vmul.u32 %v1798_v28, %v1796_v49  ;;  %v1805_v40 = vshll.u32 %v1801_v46, 16 }
 0x221   :  { %v1821_v24 = vmul.u32 %v1819_v23, %v1795_v53  ;;  %v1823_v6 = vmul.u32 %v1819_v23, %v1796_v49  ;;  %v1825_v26 = vshll.u32 %v1822_v7, 16  ;;  %v1806_v47 = vshrl.u32 %v1801_v46, 16 }
 0x222   :  { %vm2741_vm14 = vcmp.lt.s32.totalorder %v2740_v16, 0  ;;  %vm1807_vm15 = vc.u32 %v1799_v2, %v1803_v27  ;;  %v1809_v21 = vadd.s32 %v1803_v27, %v1799_v2  ;;  %v1824_v5 = vmul.u32 %v1820_v43, %v1796_v49 }
 0x223   :  { %v1235_v18 = vsel %vm2741_vm14, 0, %v2740_v16  ;;  %v1808_v9 = vsel %vm1807_vm15, 1, %v2810_v14  ;;  %vm1128_vm13 = vcmp.lt.s32.totalorder %v3918_v33, 0  ;;  %v1827_v4 = vshll.u32 %v1823_v6, 16 }
 0x224   :  { %v1236_v0 = vsub.s32 32, %v1235_v18  ;;  %v1240_v32 = vsub.s32 4294967266, %v1235_v18  ;;  %v1810_v20 = vadd.s32 %v1808_v9, %v1802_v15  ;;  %v1237_v45 = vshll.u32 %v1228_v34, %v1235_v18 }
 0x225   :  { %vm1811_vm1 = vc.u32 %v1809_v21, %v1805_v40  ;;  %vm1829_vm2 = vc.u32 %v1821_v24, %v1825_v26  ;;  %v1831_v41 = vadd.s32 %v1825_v26, %v1821_v24  ;;  %v1804_v39 = vshrl.u32 %v1800_v13, 16 }
 0x226   :  { %v1238_v42 = vshrl.u32 %v1220_v38, %v1236_v0  ;;  %v1241_v44 = vadd.s32 127, %v1240_v32  ;;  %v1812_v62 = vsel %vm1811_vm1, 1, %v2810_v14  ;;  %v1830_v19 = vsel %vm1829_vm2, 1, %v2810_v14 }
 0x227   :  { %v1814_v25 = vadd.s32 %v1812_v62, %v1810_v20  ;;  %v1832_v1 = vadd.s32 %v1830_v19, %v1824_v5  ;;  %vm1833_vm0 = vc.u32 %v1831_v41, %v1827_v4  ;;  %v175_v34 = vadd.f32 %v3913_v11, %v174_v50 }
 0x228   :  { %v1239_v22 = vor.u32 %v1238_v42, %v1237_v45  ;;  %v1242_v10 = vshll.u32 %v1241_v44, 23  ;;  %v1834_v36 = vsel %vm1833_vm0, 1, %v2810_v14  ;;  %v1826_v48 = vshrl.u32 %v1822_v7, 16 }
 0x229   :  { %v1815_v49 = vadd.s32 %v1814_v25, %v1804_v39  ;;  %v1836_v58 = vadd.s32 %v1834_v36, %v1832_v1  ;;  %v142_v53 = vadd.f32 %v3913_v11, %v141_v60  ;;  %v1784_v3 = vsel %vm1780_vm6, %v4072_v56, %v1783_v31 }
 0x22a   :  { %v1243_v28 = vor.u32 4788187, %v1242_v10  ;;  %v1828_v46 = vshrl.u32 %v1823_v6, 16  ;;  %v4131_v23 = vmul.f32 30.0, %v175_v34  ;;  %v1835_v17 = vadd.s32 %v1831_v41, %v1827_v4 }
 0x22b   :  { %v1816_v43 = vadd.s32 %v1815_v49, %v1806_v47  ;;  %v1837_v13 = vadd.s32 %v1836_v58, %v1826_v48  ;;  %v4133_v38 = vmul.f32 30.0, %v142_v53  ;;  %v1246_v2 = vcvt.s32.f32 %v1239_v22 }
 0x22c   :  { %v1244_v16 = vand.u32 2147483647, %v1243_v28  ;;  %v2366_v27 = vand.u32 2147483647, %v4131_v23  ;;  %v2369_v7 = vand.u32 2139095040, %v4131_v23  ;;  %v1251_v11 = vsel %vm1128_vm13, %v1250_v37, %v4080_v29 }
 0x22d   :  { %v1785_v56 = vsel %vm1779_vm9, %v1782_v54, %v1784_v3  ;;  %v1838_v31 = vadd.s32 %v1837_v13, %v1828_v46  ;;  %vm1841_vm4 = vc.u32 %v1816_v43, %v1835_v17  ;;  %vm1127_vm5 = vcmp.le.f32.partialorder %v1126_v35, 0.7853982 }
 0x22e   :  { %v1247_v15 = vmul.f32 %v1246_v2, %v1244_v16  ;;  %v2370_v40 = vshrl.u32 %v2369_v7, 23  ;;  %v2373_v24 = vand.u32 8388607, %v2366_v27  ;;  %v664_v21 = vand.u32 2139095040, %v4133_v38 }
 0x22f   :  { %v1842_v6 = vadd.s32 1, %v1838_v31  ;;  %v1253_v18 = vsel %vm1127_vm5, 0, %v1251_v11  ;;  %v1839_v29 = vmul.u32 %v4095_v52, %v1785_v56  ;;  %v661_v52 = vand.u32 2147483647, %v4133_v38 }
 0x230   :  { %v1248_v26 = vxor.u32 2147483648, %v1247_v15  ;;  %v2763_v37 = vadd.s32 4294967169, %v2370_v40  ;;  %v2374_v54 = vor.u32 8388608, %v2373_v24  ;;  %v1270_v32 = vadd.s32 3, %v1253_v18 }
 0x231   :  { %v1843_v12 = vsel %vm1841_vm4, %v1842_v6, %v1838_v31  ;;  %v665_v20 = vshrl.u32 %v664_v21, 23  ;;  %vm1748_vm6 = vcmp.lt.s32.totalorder %v3920_v51, 0  ;;  %v4157_v22 = vadd.s32 %v1835_v17, %v1816_v43 }
 0x232   :  { %v1249_v47 = vsel %vm1128_vm13, %v1248_v26, %v1247_v15  ;;  %v1844_v9 = vadd.s32 %v1843_v12, %v1839_v29  ;;  %v2376_v5 = vadd.s32 1, %v2763_v37  ;;  %v4151_v41 = vshll.u32 %v2374_v54, 8 }
 0x233   :  { %v1252_v0 = vsel %vm1127_vm5, %v3918_v33, %v1249_v47  ;;  %v4154_v62 = vand.u32 3, %v1270_v32  ;;  %v2730_v60 = vadd.s32 4294967169, %v665_v20  ;;  %v4164_v34 = vand.u32 8388607, %v661_v52 }
 0x234   :  { %v1254_v35 = vmul.f32 %v1252_v0, %v1252_v0  ;;  %v1845_v4 = vadd.s32 536870912, %v1844_v9  ;;  %vm2377_vm3 = vcmp.gt.s32.totalorder %v2376_v5, 0  ;;  %v4160_v36 = vand.u32 65535, %v4151_v41 }
 0x235   :  { %v2378_v45 = vsel %vm2377_vm3, %v2376_v5, 0  ;;  %v4169_v53 = vshrl.u32 %v4151_v41, 16  ;;  %vm1276_vm7 = vcmp.eq.s32.totalorder %v4154_v62, 2  ;;  %v4175_v43 = vadd.s32 1, %v2730_v60 }
 0x236   :  { %v1255_v50 = vmul.f32 -0.001358992, %v1254_v35  ;;  %v1262_v42 = vmul.f32 -0.00019511016, %v1254_v35  ;;  %v1846_v44 = vshrl.u32 %v1845_v4, 30  ;;  %v2380_v19 = vand.u32 31, %v2378_v45 }
 0x237   :  { %v4172_v3 = vshrl.u32 %v2378_v45, 5  ;;  %vm1273_vm11 = vcmp.eq.s32.totalorder %v4154_v62, 0  ;;  %vm1272_vm12 = vcmp.lt.s32.totalorder %v4154_v62, 2  ;;  %vm1269_vm10 = vweird.f32 %v3918_v33 }
 0x238   :  { %v1256_v39 = vadd.f32 0.041655596, %v1255_v50  ;;  %v1263_v25 = vadd.f32 0.008332121, %v1262_v42  ;;  %v1847_v1 = vshll.u32 %v1846_v44, 30  ;;  %v2381_v10 = vsub.s32 32, %v2380_v19 }
 0x239   :  { %v1870_v28 = vsub.s32 4, %v1846_v44  ;;  %v2383_v46 = vshll.u32 %v2804_v55, %v2380_v19  ;;  %v2386_v7 = vshll.u32 %v2805_v57, %v2380_v19  ;;  %v2389_v56 = vshll.u32 %v2806_v59, %v2380_v19 }
 0x23a   :  { %v1257_v49 = vmul.f32 %v1256_v39, %v1254_v35  ;;  %v1264_v48 = vmul.f32 %v1263_v25, %v1254_v35  ;;  %v4166_v58 = vsub.s32 %v1844_v9, %v1847_v1  ;;  %v2384_v2 = vshrl.u32 %v2805_v57, %v2381_v10 }
 0x23b   :  { %v2387_v11 = vshrl.u32 %v2806_v59, %v2381_v10  ;;  %v2390_v24 = vshrl.u32 %v2807_v61, %v2381_v10  ;;  %v1871_v21 = vsel %vm1748_vm6, %v1870_v28, %v1846_v44  ;;  %v2382_v26 = vshrl.u32 %v2804_v55, %v2381_v10 }
 0x23c   :  { %v1258_v17 = vadd.f32 -0.4999988, %v1257_v49  ;;  %v1265_v13 = vadd.f32 -0.16666654, %v1264_v48  ;;  %vm1849_vm9 = vcmp.lt.s32.totalorder %v4166_v58, 0  ;;  %v1850_v16 = vsub.s32 0, %v4166_v58 }
 0x23d   :  { %v2393_v18 = vshrl.u32 %v2808_v63, %v2381_v10  ;;  %v2392_v12 = vshll.u32 %v2807_v61, %v2380_v19  ;;  %v2396_v54 = vshrl.u32 %v2809_v8, %v2381_v10  ;;  %vm4196_vm14 = vcmp.le.f32.partialorder %v1746_v30, 0.7853982 }
 0x23e   :  { %v1259_v31 = vmul.f32 %v1258_v17, %v1254_v35  ;;  %v1266_v15 = vmul.f32 %v1265_v13, %v1254_v35  ;;  %v1851_v40 = vsel %vm1849_vm9, %v1850_v16, %v4166_v58  ;;  %v2385_v5 = vor.u32 %v2384_v2, %v2383_v46 }
 0x23f   :  { %v1852_v6 = vclz %v1851_v40  ;;  %v2388_v32 = vor.u32 %v2387_v11, %v2386_v7  ;;  %v2395_v20 = vshll.u32 %v2808_v63, %v2380_v19  ;;  %v2391_v45 = vor.u32 %v2390_v24, %v2389_v56 }
 0x240   :  { %v1260_v29 = vadd.f32 1.0, %v1259_v31  ;;  %v1267_v37 = vadd.f32 1.0, %v1266_v15  ;;  %v2394_v50 = vor.u32 %v2393_v18, %v2392_v12  ;;  %vm2398_vm13 = vcmp.lt.s32.totalorder %v4172_v3, 1 }
 0x241   :  { %v2752_v9 = vadd.s32 4294967294, %v1852_v6  ;;  %v2397_v42 = vor.u32 %v2396_v54, %v2395_v20  ;;  %vm2399_vm1 = vcmp.lt.s32.totalorder %v4172_v3, 2  ;;  %vm2400_vm2 = vcmp.lt.s32.totalorder %v4172_v3, 3 }
 0x242   :  { %v1268_v35 = vmul.f32 %v1267_v37, %v1252_v0  ;;  %v1277_v4 = vxor.u32 2147483648, %v1260_v29  ;;  %vm2401_vm0 = vcmp.lt.s32.totalorder %v4172_v3, 4  ;;  %v2406_v10 = vsel %vm2398_vm13, %v2385_v5, %v2388_v32 }
 0x243   :  { %vm2753_vm15 = vcmp.lt.s32.totalorder %v2752_v9, 0  ;;  %v2403_v1 = vsel %vm2401_vm0, %v2391_v45, 2102212464  ;;  %v2407_v49 = vsel %vm2401_vm0, %v2394_v50, 920167782  ;;  %v2402_v46 = vsel %vm2398_vm13, %v2382_v26, %v2385_v5 }
 0x244   :  { %v1274_v44 = vxor.u32 2147483648, %v1268_v35  ;;  %v1278_v30 = vsel %vm1276_vm7, %v1277_v4, %v1268_v35  ;;  %v1855_v60 = vsel %vm2753_vm15, 0, %v2752_v9  ;;  %v2404_v13 = vsel %vm2400_vm2, %v2388_v32, %v2403_v1 }
 0x245   :  { %v1856_v39 = vsub.s32 32, %v1855_v60  ;;  %v1857_v19 = vshll.u32 %v4166_v58, %v1855_v60  ;;  %v1860_v0 = vsub.s32 4294967266, %v1855_v60  ;;  %v2408_v16 = vsel %vm2400_vm2, %v2391_v45, %v2407_v49 }
 0x246   :  { %v1275_v25 = vsel %vm1273_vm11, %v1260_v29, %v1274_v44  ;;  %v2410_v2 = vsel %vm2398_vm13, %v2388_v32, %v2391_v45  ;;  %v2409_v33 = vsel %vm2399_vm1, %v2406_v10, %v2408_v16  ;;  %v2411_v7 = vsel %vm2401_vm0, %v2397_v42, 1326507024 }
 0x247   :  { %v1279_v48 = vsel %vm1272_vm12, %v1275_v25, %v1278_v30  ;;  %v1858_v58 = vshrl.u32 %v4157_v22, %v1856_v39  ;;  %v1861_v28 = vadd.s32 127, %v1860_v0  ;;  %v1873_v11 = vsel %vm4196_vm14, 0, %v1871_v21 }
 0x248   :  { %v1280_v17 = vsel %vm1269_vm10, nan, %v1279_v48  ;;  %v2412_v56 = vsel %vm2400_vm2, %v2394_v50, %v2411_v7  ;;  %v2439_v31 = vand.u32 65535, %v2409_v33  ;;  %v2440_v15 = vshrl.u32 %v2409_v33, 16 }
 0x249   :  { %2683 = vst.msk [vmem:[%s4705_s3 + $0x30] sm:$0xff] %vm2676_vm8, %v1280_v17  ;;  %v1859_v62 = vor.u32 %v1858_v58, %v1857_v19  ;;  %v1862_v22 = vshll.u32 %v1861_v28, 23  ;;  %v4243_v24 = vsel %vm2399_vm1, %v2402_v46, %v2404_v13  ;;  %v2413_v6 = vsel %vm2399_vm1, %v2410_v2, %v2412_v56 }
 0x24a   :  { %vm672_vm4 = vcmp.gt.s32.totalorder %v4175_v43, 0  ;;  %v2417_v26 = vand.u32 65535, %v2413_v6  ;;  %v2418_v18 = vshrl.u32 %v2413_v6, 16  ;;  %v2442_v29 = vmul.u32 %v2440_v15, %v4160_v36 }
 0x24b   :  { %v1863_v40 = vor.u32 4788187, %v1862_v22  ;;  %v669_v21 = vor.u32 8388608, %v4164_v34  ;;  %v1866_v12 = vcvt.s32.f32 %v1859_v62  ;;  %v4250_v54 = vadd.s32 3, %v1873_v11 }
 0x24c   :  { %v2443_v9 = vmul.u32 %v2439_v31, %v4169_v53  ;;  %v2420_v5 = vmul.u32 %v2418_v18, %v4160_v36  ;;  %v2421_v32 = vmul.u32 %v2417_v26, %v4169_v53  ;;  %v2459_v3 = vmul.u32 %v4151_v41, %v4243_v24 }
 0x24d   :  { %v1864_v37 = vand.u32 2147483647, %v1863_v40  ;;  %v673_v20 = vsel %vm672_vm4, %v4175_v43, 0  ;;  %v2441_v4 = vmul.u32 %v2439_v31, %v4160_v36  ;;  %v2444_v45 = vmul.u32 %v2440_v15, %v4169_v53 }
 0x24e   :  { %v2445_v50 = vshll.u32 %v2442_v29, 16  ;;  %v2419_v42 = vmul.u32 %v2417_v26, %v4160_v36  ;;  %v2422_v44 = vmul.u32 %v2418_v18, %v4169_v53  ;;  %v2423_v30 = vshll.u32 %v2420_v5, 16 }
 0x24f   :  { %v1867_v35 = vmul.f32 %v1866_v12, %v1864_v37  ;;  %v2447_v60 = vshll.u32 %v2443_v9, 16  ;;  %v2425_v19 = vshll.u32 %v2421_v32, 16  ;;  %v675_v1 = vand.u32 31, %v673_v20 }
 0x250   :  { %vm2449_vm5 = vc.u32 %v2441_v4, %v2445_v50  ;;  %v2451_v0 = vadd.s32 %v2445_v50, %v2441_v4  ;;  %vm2427_vm3 = vc.u32 %v2419_v42, %v2423_v30  ;;  %v2429_v25 = vadd.s32 %v2423_v30, %v2419_v42 }
 0x251   :  { %v1868_v39 = vxor.u32 2147483648, %v1867_v35  ;;  %v2450_v43 = vsel %vm2449_vm5, 1, %v2810_v14  ;;  %v2428_v49 = vsel %vm2427_vm3, 1, %v2810_v14  ;;  %v2446_v17 = vshrl.u32 %v2442_v29, 16 }
 0x252   :  { %v2452_v48 = vadd.s32 %v2450_v43, %v2444_v45  ;;  %vm2453_vm7 = vc.u32 %v2451_v0, %v2447_v60  ;;  %v2430_v53 = vadd.s32 %v2428_v49, %v2422_v44  ;;  %vm2431_vm9 = vc.u32 %v2429_v25, %v2425_v19 }
 0x253   :  { %v1869_v10 = vsel %vm1748_vm6, %v1868_v39, %v1867_v35  ;;  %v2454_v58 = vsel %vm2453_vm7, 1, %v2810_v14  ;;  %v2432_v46 = vsel %vm2431_vm9, 1, %v2810_v14  ;;  %v2424_v16 = vshrl.u32 %v2420_v5, 16 }
 0x254   :  { %v1872_v36 = vsel %vm4196_vm14, %v3920_v51, %v1869_v10  ;;  %v2456_v13 = vadd.s32 %v2454_v58, %v2452_v48  ;;  %v2426_v2 = vshrl.u32 %v2421_v32, 16  ;;  %v2434_v62 = vadd.s32 %v2432_v46, %v2430_v53 }
 0x255   :  { %v1874_v28 = vmul.f32 %v1872_v36, %v1872_v36  ;;  %v676_v22 = vsub.s32 32, %v675_v1  ;;  %v2448_v11 = vshrl.u32 %v2443_v9, 16  ;;  %v4271_v47 = vadd.s32 %v2451_v0, %v2447_v60 }
 0x256   :  { %v2457_v56 = vadd.s32 %v2456_v13, %v2446_v17  ;;  %v2435_v31 = vadd.s32 %v2434_v62, %v2424_v16  ;;  %v678_v15 = vshll.u32 %v2804_v55, %v675_v1  ;;  %v681_v40 = vshll.u32 %v2805_v57, %v675_v1 }
 0x257   :  { %v1875_v33 = vmul.f32 -0.001358992, %v1874_v28  ;;  %v1882_v7 = vmul.f32 -0.00019511016, %v1874_v28  ;;  %v684_v29 = vshll.u32 %v2806_v59, %v675_v1  ;;  %v679_v12 = vshrl.u32 %v2805_v57, %v676_v22 }
 0x258   :  { %v2458_v18 = vadd.s32 %v2457_v56, %v2448_v11  ;;  %v4276_v37 = vadd.s32 %v2435_v31, %v2426_v2  ;;  %v682_v5 = vshrl.u32 %v2806_v59, %v676_v22  ;;  %v687_v9 = vshll.u32 %v2807_v61, %v675_v1 }
 0x259   :  { %v1876_v6 = vadd.f32 0.041655596, %v1875_v33  ;;  %v1883_v26 = vadd.f32 0.008332121, %v1882_v7  ;;  %v685_v45 = vshrl.u32 %v2807_v61, %v676_v22  ;;  %v4284_v50 = vshrl.u32 %v673_v20, 5 }
 0x25a   :  { %v2462_v4 = vadd.s32 1, %v2458_v18  ;;  %vm2461_vm6 = vc.u32 %v4276_v37, %v4271_v47  ;;  %v688_v42 = vshrl.u32 %v2808_v63, %v676_v22  ;;  %v690_v44 = vshll.u32 %v2808_v63, %v675_v1 }
 0x25b   :  { %v1877_v32 = vmul.f32 %v1876_v6, %v1874_v28  ;;  %v1884_v35 = vmul.f32 %v1883_v26, %v1874_v28  ;;  %v691_v19 = vshrl.u32 %v2809_v8, %v676_v22  ;;  %v1891_v0 = vand.u32 3, %v4250_v54 }
 0x25c   :  { %v2463_v39 = vsel %vm2461_vm6, %v2462_v4, %v2458_v18  ;;  %v680_v43 = vor.u32 %v679_v12, %v678_v15  ;;  %v689_v10 = vor.u32 %v688_v42, %v687_v9  ;;  %v683_v48 = vor.u32 %v682_v5, %v681_v40 }
 0x25d   :  { %v1878_v30 = vadd.f32 -0.4999988, %v1877_v32  ;;  %v1885_v60 = vadd.f32 -0.16666654, %v1884_v35  ;;  %v2464_v25 = vadd.s32 %v2463_v39, %v2459_v3  ;;  %v686_v53 = vor.u32 %v685_v45, %v684_v29 }
 0x25e   :  { %v692_v46 = vor.u32 %v691_v19, %v690_v44  ;;  %vm693_vm11 = vcmp.lt.s32.totalorder %v4284_v50, 1  ;;  %vm696_vm12 = vcmp.lt.s32.totalorder %v4284_v50, 4  ;;  %vm695_vm10 = vcmp.lt.s32.totalorder %v4284_v50, 3 }
 0x25f   :  { %v1879_v49 = vmul.f32 %v1878_v30, %v1874_v28  ;;  %v1886_v20 = vmul.f32 %v1885_v60, %v1874_v28  ;;  %v2465_v58 = vadd.s32 536870912, %v2464_v25  ;;  %v702_v41 = vsel %vm696_vm12, %v689_v10, 920167782 }
 0x260   :  { %vm1889_vm14 = vweird.f32 %v3920_v51  ;;  %vm1892_vm15 = vcmp.lt.s32.totalorder %v1891_v0, 2  ;;  %v701_v28 = vsel %vm693_vm11, %v680_v43, %v683_v48  ;;  %v705_v13 = vsel %vm693_vm11, %v683_v48, %v686_v53 }
 0x261   :  { %v1880_v1 = vadd.f32 1.0, %v1879_v49  ;;  %v1887_v17 = vadd.f32 1.0, %v1886_v20  ;;  %v4299_v24 = vshrl.u32 %v2465_v58, 30  ;;  %v703_v2 = vsel %vm695_vm10, %v686_v53, %v702_v41 }
 0x262   :  { %v706_v62 = vsel %vm696_vm12, %v692_v46, 1326507024  ;;  %v4312_v33 = vshll.u32 %v669_v21, 8  ;;  %vm1893_vm13 = vcmp.eq.s32.totalorder %v1891_v0, 0  ;;  %vm694_vm1 = vcmp.lt.s32.totalorder %v4284_v50, 2 }
 0x263   :  { %v1888_v54 = vmul.f32 %v1887_v17, %v1872_v36  ;;  %v1897_v3 = vxor.u32 2147483648, %v1880_v1  ;;  %v2467_v16 = vshll.u32 %v4299_v24, 30  ;;  %v707_v7 = vsel %vm695_vm10, %v689_v10, %v706_v62 }
 0x264   :  { %vm1896_vm2 = vcmp.eq.s32.totalorder %v1891_v0, 2  ;;  %v677_v56 = vshrl.u32 %v2804_v55, %v676_v22  ;;  %v708_v31 = vsel %vm694_vm1, %v705_v13, %v707_v7  ;;  %v704_v34 = vsel %vm694_vm1, %v701_v28, %v703_v2  ;;  %v153_v28 = vpop.f32.mrf.mxu1 }
 0x265   :  { %v1894_v36 = vxor.u32 2147483648, %v1888_v54  ;;  %v2468_v11 = vsub.s32 %v2464_v25, %v2467_v16  ;;  %v1898_v40 = vsel %vm1896_vm2, %v1897_v3, %v1888_v54  ;;  %v712_v21 = vand.u32 65535, %v708_v31 }
 0x266   :  { %v711_v18 = vshrl.u32 %v4312_v33, 16  ;;  %v698_v22 = vsel %vm696_vm12, %v686_v53, 2102212464  ;;  %v710_v12 = vand.u32 65535, %v4312_v33  ;;  %v713_v5 = vshrl.u32 %v708_v31, 16 }
 0x267   :  { %v1895_v15 = vsel %vm1893_vm13, %v1880_v1, %v1894_v36  ;;  %vm2469_vm0 = vcmp.lt.s32.totalorder %v2468_v11, 0  ;;  %v2470_v26 = vsub.s32 0, %v2468_v11  ;;  %v734_v35 = vand.u32 65535, %v704_v34  ;;  %v165_v36 = vpop.f32.mrf.mxu2 }
 0x268   :  { %v1899_v6 = vsel %vm1892_vm15, %v1895_v15, %v1898_v40  ;;  %v716_v32 = vmul.u32 %v712_v21, %v711_v18  ;;  %v735_v4 = vshrl.u32 %v704_v34, 16  ;;  %v715_v42 = vmul.u32 %v713_v5, %v710_v12 }
 0x269   :  { %v1900_v29 = vsel %vm1889_vm14, nan, %v1899_v6  ;;  %v2471_v9 = vsel %vm2469_vm0, %v2470_v26, %v2468_v11  ;;  %v2460_v51 = vadd.s32 %v4271_v47, %v4276_v37  ;;  %v697_v44 = vsel %vm693_vm11, %v677_v56, %v680_v43 }
 0x26a   :  { %2687 = vst.msk [vmem:[%s4705_s3 + $0x50] sm:$0xff] %vm2676_vm8, %v1900_v29  ;;  %v2472_v45 = vclz %v2471_v9  ;;  %v699_v30 = vsel %vm695_vm10, %v683_v48, %v698_v22  ;;  %v714_v39 = vmul.u32 %v712_v21, %v710_v12  ;;  %v718_v19 = vshll.u32 %v715_v42, 16 }
 0x26b   :  { %v737_v0 = vmul.u32 %v735_v4, %v710_v12  ;;  %v717_v25 = vmul.u32 %v713_v5, %v711_v18  ;;  %v720_v10 = vshll.u32 %v716_v32, 16  ;;  %v736_v49 = vmul.u32 %v734_v35, %v710_v12 }
 0x26c   :  { %v2764_v60 = vadd.s32 4294967294, %v2472_v45  ;;  %v738_v20 = vmul.u32 %v734_v35, %v711_v18  ;;  %vm722_vm5 = vc.u32 %v714_v39, %v718_v19  ;;  %v724_v53 = vadd.s32 %v718_v19, %v714_v39 }
 0x26d   :  { %v740_v58 = vshll.u32 %v737_v0, 16  ;;  %v721_v47 = vshrl.u32 %v716_v32, 16  ;;  %v723_v37 = vsel %vm722_vm5, 1, %v2810_v14  ;;  %v739_v43 = vmul.u32 %v735_v4, %v711_v18 }
 0x26e   :  { %vm2765_vm4 = vcmp.lt.s32.totalorder %v2764_v60, 0  ;;  %v725_v48 = vadd.s32 %v723_v37, %v717_v25  ;;  %v742_v41 = vshll.u32 %v738_v20, 16  ;;  %vm726_vm3 = vc.u32 %v724_v53, %v720_v10 }
 0x26f   :  { %v2475_v46 = vsel %vm2765_vm4, 0, %v2764_v60  ;;  %vm744_vm7 = vc.u32 %v736_v49, %v740_v58  ;;  %v746_v3 = vadd.s32 %v740_v58, %v736_v49  ;;  %v727_v2 = vsel %vm726_vm3, 1, %v2810_v14 }
 0x270   :  { %v2476_v1 = vsub.s32 32, %v2475_v46  ;;  %v2480_v17 = vsub.s32 4294967266, %v2475_v46  ;;  %v2477_v54 = vshll.u32 %v2468_v11, %v2475_v46  ;;  %v745_v62 = vsel %vm744_vm7, 1, %v2810_v14  ;;  %v4346_v11 = vld [vmem:[%s4703_s2] ss:$0 sm:$0xff] }
 0x271   :  { %v719_v7 = vshrl.u32 %v715_v42, 16  ;;  %v729_v56 = vadd.s32 %v727_v2, %v725_v48  ;;  %v747_v31 = vadd.s32 %v745_v62, %v739_v43  ;;  %vm748_vm9 = vc.u32 %v746_v3, %v742_v41 }
 0x272   :  { %v2478_v13 = vshrl.u32 %v2460_v51, %v2476_v1  ;;  %v2481_v16 = vadd.s32 127, %v2480_v17  ;;  %v749_v34 = vsel %vm748_vm9, 1, %v2810_v14  ;;  %v154_v21 = vadd.f32 %v4346_v11, %v153_v28 }
 0x273   :  { %v730_v6 = vadd.s32 %v729_v56, %v719_v7  ;;  %v741_v26 = vshrl.u32 %v737_v0, 16  ;;  %v751_v18 = vadd.s32 %v749_v34, %v747_v31  ;;  %v166_v29 = vadd.f32 %v4346_v11, %v165_v36 }
 0x274   :  { %v2479_v15 = vor.u32 %v2478_v13, %v2477_v54  ;;  %v2482_v40 = vshll.u32 %v2481_v16, 23  ;;  %v2490_v12 = vsub.s32 4, %v4299_v24  ;;  %v743_v5 = vshrl.u32 %v738_v20, 16 }
 0x275   :  { %v4351_v9 = vmul.f32 30.0, %v154_v21  ;;  %v731_v32 = vadd.s32 %v730_v6, %v721_v47  ;;  %v750_v35 = vadd.s32 %v746_v3, %v742_v41  ;;  %v752_v4 = vadd.s32 %v751_v18, %v741_v26 }
 0x276   :  { %v2483_v22 = vor.u32 4788187, %v2482_v40  ;;  %v4353_v45 = vmul.f32 30.0, %v166_v29  ;;  %v2486_v51 = vcvt.s32.f32 %v2479_v15  ;;  %v700_v19 = vsel %vm694_vm1, %v697_v44, %v699_v30 }
 0x277   :  { %v1281_v60 = vand.u32 2147483647, %v4351_v9  ;;  %v1284_v39 = vand.u32 2139095040, %v4351_v9  ;;  %v753_v0 = vadd.s32 %v752_v4, %v743_v5  ;;  %vm2368_vm6 = vcmp.lt.s32.totalorder %v4131_v23, 0 }
 0x278   :  { %v2484_v42 = vand.u32 2147483647, %v2483_v22  ;;  %vm756_vm11 = vc.u32 %v731_v32, %v750_v35  ;;  %v2491_v49 = vsel %vm2368_vm6, %v2490_v12, %v4299_v24  ;;  %v1904_v58 = vand.u32 2139095040, %v4353_v45 }
 0x279   :  { %v1285_v10 = vshrl.u32 %v1284_v39, 23  ;;  %v757_v20 = vadd.s32 1, %v753_v0  ;;  %v1288_v53 = vand.u32 8388607, %v1281_v60  ;;  %v754_v47 = vmul.u32 %v4312_v33, %v700_v19 }
 0x27a   :  { %v2487_v25 = vmul.f32 %v2486_v51, %v2484_v42  ;;  %vm2367_vm12 = vcmp.le.f32.partialorder %v2366_v27, 0.7853982  ;;  %v1905_v48 = vshrl.u32 %v1904_v58, 23  ;;  %v755_v21 = vadd.s32 %v750_v35, %v731_v32 }
 0x27b   :  { %v2742_v37 = vadd.s32 4294967169, %v1285_v10  ;;  %v758_v50 = vsel %vm756_vm11, %v757_v20, %v753_v0  ;;  %v2493_v30 = vsel %vm2367_vm12, 0, %v2491_v49  ;;  %v1289_v17 = vor.u32 8388608, %v1288_v53 }
 0x27c   :  { %v2488_v46 = vxor.u32 2147483648, %v2487_v25  ;;  %v759_v43 = vadd.s32 %v758_v50, %v754_v47  ;;  %v2510_v3 = vadd.s32 3, %v2493_v30  ;;  %v2754_v62 = vadd.s32 4294967169, %v1905_v48 }
 0x27d   :  { %v1291_v1 = vadd.s32 1, %v2742_v37  ;;  %v4370_v27 = vshll.u32 %v1289_v17, 8  ;;  %v1901_v29 = vand.u32 2147483647, %v4353_v45  ;;  %vm2509_vm2 = vweird.f32 %v4131_v23 }
 0x27e   :  { %v2489_v44 = vsel %vm2368_vm6, %v2488_v46, %v2487_v25  ;;  %v760_v54 = vadd.s32 536870912, %v759_v43  ;;  %v4373_v31 = vand.u32 3, %v2510_v3  ;;  %v4383_v22 = vadd.s32 1, %v2754_v62 }
 0x27f   :  { %v2492_v24 = vsel %vm2367_vm12, %v4131_v23, %v2489_v44  ;;  %vm1292_vm10 = vcmp.gt.s32.totalorder %v1291_v1, 0  ;;  %v4380_v18 = vand.u32 65535, %v4370_v27  ;;  %vm663_vm0 = vcmp.lt.s32.totalorder %v4133_v38, 0 }
 0x280   :  { %v2494_v41 = vmul.f32 %v2492_v24, %v2492_v24  ;;  %v1293_v28 = vsel %vm1292_vm10, %v1291_v1, 0  ;;  %v4368_v16 = vshrl.u32 %v760_v54, 30  ;;  %vm2513_vm15 = vcmp.eq.s32.totalorder %v4373_v31, 0 }
 0x281   :  { %v1295_v2 = vand.u32 31, %v1293_v28  ;;  %v4377_v26 = vshrl.u32 %v1293_v28, 5  ;;  %vm2516_vm13 = vcmp.eq.s32.totalorder %v4373_v31, 2  ;;  %vm2512_vm1 = vcmp.lt.s32.totalorder %v4373_v31, 2 }
 0x282   :  { %v2495_v13 = vmul.f32 -0.001358992, %v2494_v41  ;;  %v2502_v33 = vmul.f32 -0.00019511016, %v2494_v41  ;;  %v762_v56 = vshll.u32 %v4368_v16, 30  ;;  %v785_v44 = vsub.s32 4, %v4368_v16 }
 0x283   :  { %v1296_v15 = vsub.s32 32, %v1295_v2  ;;  %v1298_v32 = vshll.u32 %v2804_v55, %v1295_v2  ;;  %v1301_v42 = vshll.u32 %v2805_v57, %v1295_v2  ;;  %v1307_v25 = vshll.u32 %v2807_v61, %v1295_v2 }
 0x284   :  { %v2496_v36 = vadd.f32 0.041655596, %v2495_v13  ;;  %v2503_v7 = vadd.f32 0.008332121, %v2502_v33  ;;  %v4375_v6 = vsub.s32 %v759_v43, %v762_v56  ;;  %v1304_v49 = vshll.u32 %v2806_v59, %v1295_v2 }
 0x285   :  { %v1299_v35 = vshrl.u32 %v2805_v57, %v1296_v15  ;;  %v1302_v51 = vshrl.u32 %v2806_v59, %v1296_v15  ;;  %v1305_v20 = vshrl.u32 %v2807_v61, %v1296_v15  ;;  %v1308_v53 = vshrl.u32 %v2808_v63, %v1296_v15 }
 0x286   :  { %v2497_v40 = vmul.f32 %v2496_v36, %v2494_v41  ;;  %v2504_v34 = vmul.f32 %v2503_v7, %v2494_v41  ;;  %vm764_vm14 = vcmp.lt.s32.totalorder %v4375_v6, 0  ;;  %v765_v4 = vsub.s32 0, %v4375_v6 }
 0x287   :  { %v1310_v47 = vshll.u32 %v2808_v63, %v1295_v2  ;;  %v1311_v37 = vshrl.u32 %v2809_v8, %v1296_v15  ;;  %v1300_v30 = vor.u32 %v1299_v35, %v1298_v32  ;;  %v1331_v43 = vshrl.u32 %v4370_v27, 16 }
 0x288   :  { %v2498_v12 = vadd.f32 -0.4999988, %v2497_v40  ;;  %v2505_v5 = vadd.f32 -0.16666654, %v2504_v34  ;;  %v766_v0 = vsel %vm764_vm14, %v765_v4, %v4375_v6  ;;  %v1303_v48 = vor.u32 %v1302_v51, %v1301_v42 }
 0x289   :  { %v767_v10 = vclz %v766_v0  ;;  %v1297_v54 = vshrl.u32 %v2804_v55, %v1296_v15  ;;  %v1306_v3 = vor.u32 %v1305_v20, %v1304_v49  ;;  %vm1313_vm5 = vcmp.lt.s32.totalorder %v4377_v26, 1 }
 0x28a   :  { %v2499_v39 = vmul.f32 %v2498_v12, %v2494_v41  ;;  %v2506_v19 = vmul.f32 %v2505_v5, %v2494_v41  ;;  %v1309_v41 = vor.u32 %v1308_v53, %v1307_v25  ;;  %vm1912_vm3 = vcmp.gt.s32.totalorder %v4383_v22, 0 }
 0x28b   :  { %v2731_v50 = vadd.s32 4294967294, %v767_v10  ;;  %vm4410_vm7 = vcmp.le.f32.partialorder %v661_v52, 0.7853982  ;;  %vm1316_vm9 = vcmp.lt.s32.totalorder %v4377_v26, 4  ;;  %vm1314_vm6 = vcmp.lt.s32.totalorder %v4377_v26, 2 }
 0x28c   :  { %v2500_v58 = vadd.f32 1.0, %v2499_v39  ;;  %v2507_v46 = vadd.f32 1.0, %v2506_v19  ;;  %vm1315_vm11 = vcmp.lt.s32.totalorder %v4377_v26, 3  ;;  %v1321_v52 = vsel %vm1313_vm5, %v1300_v30, %v1303_v48 }
 0x28d   :  { %vm2732_vm4 = vcmp.lt.s32.totalorder %v2731_v50, 0  ;;  %v1322_v56 = vsel %vm1316_vm9, %v1309_v41, 920167782  ;;  %v1318_v4 = vsel %vm1316_vm9, %v1306_v3, 2102212464  ;;  %v1325_v35 = vsel %vm1313_vm5, %v1303_v48, %v1306_v3 }
 0x28e   :  { %v2508_v1 = vmul.f32 %v2507_v46, %v2492_v24  ;;  %v2517_v17 = vxor.u32 2147483648, %v2500_v58  ;;  %v770_v33 = vsel %vm2732_vm4, 0, %v2731_v50  ;;  %v1312_v24 = vor.u32 %v1311_v37, %v1310_v47 }
 0x28f   :  { %v771_v2 = vsub.s32 32, %v770_v33  ;;  %v775_v62 = vsub.s32 4294967266, %v770_v33  ;;  %v772_v40 = vshll.u32 %v4375_v6, %v770_v33  ;;  %v1323_v32 = vsel %vm1315_vm11, %v1306_v3, %v1322_v56 }
 0x290   :  { %v2514_v28 = vxor.u32 2147483648, %v2508_v1  ;;  %v2518_v7 = vsel %vm2516_vm13, %v2517_v17, %v2508_v1  ;;  %v1324_v23 = vsel %vm1314_vm6, %v1321_v52, %v1323_v32  ;;  %v1326_v6 = vsel %vm1316_vm9, %v1312_v24, 1326507024 }
 0x291   :  { %v773_v34 = vshrl.u32 %v755_v21, %v771_v2  ;;  %v776_v12 = vadd.s32 127, %v775_v62  ;;  %v786_v42 = vsel %vm663_vm0, %v785_v44, %v4368_v16  ;;  %v1327_v51 = vsel %vm1315_vm11, %v1309_v41, %v1326_v6 }
 0x292   :  { %v2515_v36 = vsel %vm2513_vm15, %v2500_v58, %v2514_v28  ;;  %v1354_v39 = vand.u32 65535, %v1324_v23  ;;  %v1355_v19 = vshrl.u32 %v1324_v23, 16  ;;  %v1317_v25 = vsel %vm1313_vm5, %v1297_v54, %v1300_v30 }
 0x293   :  { %v2519_v15 = vsel %vm2512_vm1, %v2515_v36, %v2518_v7  ;;  %v774_v31 = vor.u32 %v773_v34, %v772_v40  ;;  %v777_v21 = vshll.u32 %v776_v12, 23  ;;  %v1319_v10 = vsel %vm1315_vm11, %v1303_v48, %v1318_v4 }
 0x294   :  { %v2520_v5 = vsel %vm2509_vm2, nan, %v2519_v15  ;;  %v1328_v49 = vsel %vm1314_vm6, %v1325_v35, %v1327_v51  ;;  %v1357_v58 = vmul.u32 %v1355_v19, %v4380_v18  ;;  %v4458_v16 = vand.u32 8388607, %v1901_v29 }
 0x295   :  { %2691 = vst.msk [vmem:[%s4705_s3 + $0x70] sm:$0xff] %vm2676_vm8, %v2520_v5  ;;  %v778_v0 = vor.u32 4788187, %v777_v21  ;;  %v1332_v20 = vand.u32 65535, %v1328_v49  ;;  %v1333_v53 = vshrl.u32 %v1328_v49, 16  ;;  %v781_v47 = vcvt.s32.f32 %v774_v31 }
 0x296   :  { %v788_v37 = vsel %vm4410_vm7, 0, %v786_v42  ;;  %v1358_v50 = vmul.u32 %v1354_v39, %v1331_v43  ;;  %v4464_v44 = vsel %vm1314_vm6, %v1317_v25, %v1319_v10  ;;  %v1913_v17 = vsel %vm1912_vm3, %v4383_v22, 0 }
 0x297   :  { %v779_v46 = vand.u32 2147483647, %v778_v0  ;;  %v1335_v30 = vmul.u32 %v1333_v53, %v4380_v18  ;;  %v1336_v1 = vmul.u32 %v1332_v20, %v1331_v43  ;;  %v1356_v41 = vmul.u32 %v1354_v39, %v4380_v18 }
 0x298   :  { %v1359_v54 = vmul.u32 %v1355_v19, %v1331_v43  ;;  %v1360_v3 = vshll.u32 %v1357_v58, 16  ;;  %v1334_v28 = vmul.u32 %v1332_v20, %v4380_v18  ;;  %v1337_v33 = vmul.u32 %v1333_v53, %v1331_v43 }
 0x299   :  { %v782_v48 = vmul.f32 %v781_v47, %v779_v46  ;;  %v1338_v24 = vshll.u32 %v1335_v30, 16  ;;  %v1362_v2 = vshll.u32 %v1358_v50, 16  ;;  %v1340_v62 = vshll.u32 %v1336_v1, 16 }
 0x29a   :  { %vm1364_vm12 = vc.u32 %v1356_v41, %v1360_v3  ;;  %v1366_v36 = vadd.s32 %v1360_v3, %v1356_v41  ;;  %v1915_v56 = vand.u32 31, %v1913_v17  ;;  %v1361_v4 = vshrl.u32 %v1357_v58, 16 }
 0x29b   :  { %v783_v26 = vxor.u32 2147483648, %v782_v48  ;;  %vm1342_vm10 = vc.u32 %v1334_v28, %v1338_v24  ;;  %v1344_v7 = vadd.s32 %v1338_v24, %v1334_v28  ;;  %v1365_v52 = vsel %vm1364_vm12, 1, %v2810_v14 }
 0x29c   :  { %v1343_v15 = vsel %vm1342_vm10, 1, %v2810_v14  ;;  %v1367_v40 = vadd.s32 %v1365_v52, %v1359_v54  ;;  %vm1368_vm14 = vc.u32 %v1366_v36, %v1362_v2  ;;  %v805_v35 = vadd.s32 3, %v788_v37 }
 0x29d   :  { %v784_v22 = vsel %vm663_vm0, %v783_v26, %v782_v48  ;;  %v1345_v43 = vadd.s32 %v1343_v15, %v1337_v33  ;;  %vm1346_vm15 = vc.u32 %v1344_v7, %v1340_v62  ;;  %v1369_v34 = vsel %vm1368_vm14, 1, %v2810_v14 }
 0x29e   :  { %v787_v18 = vsel %vm4410_vm7, %v4133_v38, %v784_v22  ;;  %v1347_v5 = vsel %vm1346_vm15, 1, %v2810_v14  ;;  %v1371_v32 = vadd.s32 %v1369_v34, %v1367_v40  ;;  %v1339_v31 = vshrl.u32 %v1335_v30, 16 }
 0x29f   :  { %v789_v12 = vmul.f32 %v787_v18, %v787_v18  ;;  %v1349_v21 = vadd.s32 %v1347_v5, %v1345_v43  ;;  %v4481_v23 = vsub.s32 32, %v1915_v56  ;;  %v1363_v51 = vshrl.u32 %v1358_v50, 16 }
 0x2a0   :  { %v1372_v39 = vadd.s32 %v1371_v32, %v1361_v4  ;;  %v1341_v13 = vshrl.u32 %v1336_v1, 16  ;;  %v1374_v0 = vmul.u32 %v4370_v27, %v4464_v44  ;;  %v4485_v25 = vshrl.u32 %v1913_v17, 5 }
 0x2a1   :  { %v790_v6 = vmul.f32 -0.001358992, %v789_v12  ;;  %v797_v42 = vmul.f32 -0.00019511016, %v789_v12  ;;  %v1350_v19 = vadd.s32 %v1349_v21, %v1339_v31  ;;  %v4487_v20 = vadd.s32 %v1366_v36, %v1362_v2 }
 0x2a2   :  { %v1373_v53 = vadd.s32 %v1372_v39, %v1363_v51  ;;  %v1921_v46 = vshll.u32 %v2805_v57, %v1915_v56  ;;  %v1922_v47 = vshrl.u32 %v2806_v59, %v4481_v23  ;;  %v1924_v37 = vshll.u32 %v2806_v59, %v1915_v56 }
 0x2a3   :  { %v791_v10 = vadd.f32 0.041655596, %v790_v6  ;;  %v798_v49 = vadd.f32 0.008332121, %v797_v42  ;;  %v4489_v58 = vadd.s32 %v1350_v19, %v1341_v13  ;;  %v1925_v27 = vshrl.u32 %v2807_v61, %v4481_v23 }
 0x2a4   :  { %v1377_v1 = vadd.s32 1, %v1373_v53  ;;  %v1919_v44 = vshrl.u32 %v2805_v57, %v4481_v23  ;;  %v1927_v17 = vshll.u32 %v2807_v61, %v1915_v56  ;;  %v1928_v48 = vshrl.u32 %v2808_v63, %v4481_v23 }
 0x2a5   :  { %v792_v50 = vmul.f32 %v791_v10, %v789_v12  ;;  %v799_v30 = vmul.f32 %v798_v49, %v789_v12  ;;  %vm1376_vm13 = vc.u32 %v4489_v58, %v4487_v20  ;;  %v1931_v28 = vshrl.u32 %v2809_v8, %v4481_v23 }
 0x2a6   :  { %v1378_v3 = vsel %vm1376_vm13, %v1377_v1, %v1373_v53  ;;  %v1918_v24 = vshll.u32 %v2804_v55, %v1915_v56  ;;  %v1929_v2 = vor.u32 %v1928_v48, %v1927_v17  ;;  %v1930_v26 = vshll.u32 %v2808_v63, %v1915_v56 }
 0x2a7   :  { %v793_v41 = vadd.f32 -0.4999988, %v792_v50  ;;  %v800_v54 = vadd.f32 -0.16666654, %v799_v30  ;;  %v1379_v33 = vadd.s32 %v1378_v3, %v1374_v0  ;;  %v4508_v7 = vor.u32 %v1922_v47, %v1921_v46 }
 0x2a8   :  { %v1926_v52 = vor.u32 %v1925_v27, %v1924_v37  ;;  %v4510_v15 = vor.u32 %v1919_v44, %v1918_v24  ;;  %v1932_v40 = vor.u32 %v1931_v28, %v1930_v26  ;;  %vm1936_vm1 = vcmp.lt.s32.totalorder %v4485_v25, 4 }
 0x2a9   :  { %v794_v62 = vmul.f32 %v793_v41, %v789_v12  ;;  %v801_v36 = vmul.f32 %v800_v54, %v789_v12  ;;  %v1380_v22 = vadd.s32 536870912, %v1379_v33  ;;  %v1909_v5 = vor.u32 8388608, %v4458_v16 }
 0x2aa   :  { %v1942_v4 = vsel %vm1936_vm1, %v1929_v2, 920167782  ;;  %vm804_vm2 = vweird.f32 %v4133_v38  ;;  %v806_v56 = vand.u32 3, %v805_v35  ;;  %vm1933_vm0 = vcmp.lt.s32.totalorder %v4485_v25, 1 }
 0x2ab   :  { %v795_v43 = vadd.f32 1.0, %v794_v62  ;;  %v802_v34 = vadd.f32 1.0, %v801_v36  ;;  %v4517_v12 = vshrl.u32 %v1380_v22, 30  ;;  %vm1935_vm4 = vcmp.lt.s32.totalorder %v4485_v25, 3 }
 0x2ac   :  { %v1945_v21 = vsel %vm1933_vm0, %v4508_v7, %v1926_v52  ;;  %v1941_v6 = vsel %vm1933_vm0, %v4510_v15, %v4508_v7  ;;  %v1943_v35 = vsel %vm1935_vm4, %v1926_v52, %v1942_v4  ;;  %vm1934_vm5 = vcmp.lt.s32.totalorder %v4485_v25, 2 }
 0x2ad   :  { %v803_v32 = vmul.f32 %v802_v34, %v787_v18  ;;  %v812_v31 = vxor.u32 2147483648, %v795_v43  ;;  %v1382_v16 = vshll.u32 %v4517_v12, 30  ;;  %v1946_v18 = vsel %vm1936_vm1, %v1932_v40, 1326507024 }
 0x2ae   :  { %v1947_v51 = vsel %vm1935_vm4, %v1929_v2, %v1946_v18  ;;  %v4536_v39 = vshll.u32 %v1909_v5, 8  ;;  %vm808_vm3 = vcmp.eq.s32.totalorder %v806_v56, 0  ;;  %vm811_vm7 = vcmp.eq.s32.totalorder %v806_v56, 2 }
 0x2af   :  { %v809_v42 = vxor.u32 2147483648, %v803_v32  ;;  %v1383_v13 = vsub.s32 %v1379_v33, %v1382_v16  ;;  %v1948_v19 = vsel %vm1934_vm5, %v1945_v21, %v1947_v51  ;;  %vm807_vm9 = vcmp.lt.s32.totalorder %v806_v56, 2  ;;  %v177_v21 = vpop.f32.mrf.mxu3 }
 0x2b0   :  { %v813_v10 = vsel %vm811_vm7, %v812_v31, %v803_v32  ;;  %v1944_v49 = vsel %vm1934_vm5, %v1941_v6, %v1943_v35  ;;  %v1952_v47 = vand.u32 65535, %v1948_v19  ;;  %v1950_v50 = vand.u32 65535, %v4536_v39 }
 0x2b1   :  { %v810_v0 = vsel %vm808_vm3, %v795_v43, %v809_v42  ;;  %vm1384_vm6 = vcmp.lt.s32.totalorder %v1383_v13, 0  ;;  %v1385_v46 = vsub.s32 0, %v1383_v13  ;;  %v1953_v30 = vshrl.u32 %v1948_v19, 16 }
 0x2b2   :  { %v814_v53 = vsel %vm807_vm9, %v810_v0, %v813_v10  ;;  %v1951_v27 = vshrl.u32 %v4536_v39, 16  ;;  %v1974_v44 = vand.u32 65535, %v1944_v49  ;;  %v1975_v17 = vshrl.u32 %v1944_v49, 16 }
 0x2b3   :  { %v815_v37 = vsel %vm804_vm2, nan, %v814_v53  ;;  %v1386_v1 = vsel %vm1384_vm6, %v1385_v46, %v1383_v13  ;;  %v1955_v41 = vmul.u32 %v1953_v30, %v1950_v50  ;;  %v1375_v54 = vadd.s32 %v4487_v20, %v4489_v58 }
 0x2b4   :  { %2680 = vst.msk [vmem:[%s4705_s3 + $0x18] sm:$0xff] %vm2676_vm8, %v815_v37  ;;  %v1387_v48 = vclz %v1386_v1  ;;  %v1917_v38 = vshrl.u32 %v2804_v55, %v4481_v23  ;;  %v1956_v3 = vmul.u32 %v1952_v47, %v1951_v27  ;;  %v1954_v33 = vmul.u32 %v1952_v47, %v1950_v50 }
 0x2b5   :  { %v1958_v24 = vshll.u32 %v1955_v41, 16  ;;  %v1977_v2 = vmul.u32 %v1975_v17, %v1950_v50  ;;  %v1938_v26 = vsel %vm1936_vm1, %v1926_v52, 2102212464  ;;  %v1957_v62 = vmul.u32 %v1953_v30, %v1951_v27 }
 0x2b6   :  { %v2743_v28 = vadd.s32 4294967294, %v1387_v48  ;;  %v1976_v36 = vmul.u32 %v1974_v44, %v1950_v50  ;;  %v1978_v22 = vmul.u32 %v1974_v44, %v1951_v27  ;;  %v1960_v20 = vshll.u32 %v1956_v3, 16 }
 0x2b7   :  { %vm1962_vm12 = vc.u32 %v1954_v33, %v1958_v24  ;;  %v1964_v40 = vadd.s32 %v1958_v24, %v1954_v33  ;;  %v1980_v43 = vshll.u32 %v1977_v2, 16  ;;  %v1979_v23 = vmul.u32 %v1975_v17, %v1951_v27 }
 0x2b8   :  { %vm2744_vm11 = vcmp.lt.s32.totalorder %v2743_v28, 0  ;;  %v1963_v58 = vsel %vm1962_vm12, 1, %v2810_v14  ;;  %v1982_v32 = vshll.u32 %v1978_v22, 16  ;;  %v1959_v42 = vshrl.u32 %v1955_v41, 16 }
 0x2b9   :  { %v1390_v34 = vsel %vm2744_vm11, 0, %v2743_v28  ;;  %v1965_v56 = vadd.s32 %v1963_v58, %v1957_v62  ;;  %vm1966_vm10 = vc.u32 %v1964_v40, %v1960_v20  ;;  %vm1984_vm14 = vc.u32 %v1976_v36, %v1980_v43 }
 0x2ba   :  { %v1391_v5 = vsub.s32 32, %v1390_v34  ;;  %v1395_v4 = vsub.s32 4294967266, %v1390_v34  ;;  %v1392_v31 = vshll.u32 %v1383_v13, %v1390_v34  ;;  %v1986_v52 = vadd.s32 %v1980_v43, %v1976_v36 }
 0x2bb   :  { %v1967_v35 = vsel %vm1966_vm10, 1, %v2810_v14  ;;  %v1985_v18 = vsel %vm1984_vm14, 1, %v2810_v14  ;;  %v178_v13 = vadd.f32 %v4346_v11, %v177_v21  ;;  %v1961_v53 = vshrl.u32 %v1956_v3, 16 }
 0x2bc   :  { %v1393_v16 = vshrl.u32 %v1375_v54, %v1391_v5  ;;  %v1396_v6 = vadd.s32 127, %v1395_v4  ;;  %v1969_v51 = vadd.s32 %v1967_v35, %v1965_v56  ;;  %v1987_v19 = vadd.s32 %v1985_v18, %v1979_v23 }
 0x2bd   :  { %vm1988_vm15 = vc.u32 %v1986_v52, %v1982_v32  ;;  %v1981_v47 = vshrl.u32 %v1977_v2, 16  ;;  %v1937_v30 = vsel %vm1933_vm0, %v1917_v38, %v4510_v15  ;;  %v1939_v1 = vsel %vm1935_vm4, %v4508_v7, %v1938_v26 }
 0x2be   :  { %v1394_v0 = vor.u32 %v1393_v16, %v1392_v31  ;;  %v1397_v10 = vshll.u32 %v1396_v6, 23  ;;  %v1989_v49 = vsel %vm1988_vm15, 1, %v2810_v14  ;;  %v1970_v46 = vadd.s32 %v1969_v51, %v1959_v42 }
 0x2bf   :  { %v1991_v37 = vadd.s32 %v1989_v49, %v1987_v19  ;;  %v4567_v27 = vmul.f32 30.0, %v178_v13  ;;  %v1405_v44 = vsub.s32 4, %v4517_v12  ;;  %v1983_v11 = vshrl.u32 %v1978_v22, 16 }
 0x2c0   :  { %v1398_v50 = vor.u32 4788187, %v1397_v10  ;;  %v4570_v17 = vadd.s32 %v1970_v46, %v1961_v53  ;;  %v1401_v54 = vcvt.s32.f32 %v1394_v0  ;;  %v4572_v3 = vadd.s32 %v1986_v52, %v1982_v32 }
 0x2c1   :  { %v1992_v48 = vadd.s32 %v1991_v37, %v1981_v47  ;;  %v2524_v28 = vand.u32 2139095040, %v4567_v27  ;;  %v1940_v15 = vsel %vm1934_vm5, %v1937_v30, %v1939_v1  ;;  %vm1283_vm13 = vcmp.lt.s32.totalorder %v4351_v9, 0 }
 0x2c2   :  { %v1399_v41 = vand.u32 2147483647, %v1398_v50  ;;  %vm1996_vm1 = vc.u32 %v4570_v17, %v4572_v3  ;;  %v1406_v24 = vsel %vm1283_vm13, %v1405_v44, %v4517_v12  ;;  %v1994_v62 = vmul.u32 %v4536_v39, %v1940_v15 }
 0x2c3   :  { %v1993_v38 = vadd.s32 %v1992_v48, %v1983_v11  ;;  %v2525_v33 = vshrl.u32 %v2524_v28, 23  ;;  %vm1282_vm2 = vcmp.le.f32.partialorder %v1281_v60, 0.7853982  ;;  %v2521_v12 = vand.u32 2147483647, %v4567_v27 }
 0x2c4   :  { %v1402_v7 = vmul.f32 %v1401_v54, %v1399_v41  ;;  %v1408_v40 = vsel %vm1282_vm2, 0, %v1406_v24  ;;  %vm1424_vm9 = vweird.f32 %v4351_v9  ;;  %vm1903_vm15 = vcmp.lt.s32.totalorder %v4353_v45, 0 }
 0x2c5   :  { %v1997_v2 = vadd.s32 1, %v1993_v38  ;;  %v2766_v36 = vadd.s32 4294967169, %v2525_v33  ;;  %v1425_v5 = vadd.s32 3, %v1408_v40  ;;  %v2528_v6 = vand.u32 8388607, %v2521_v12 }
 0x2c6   :  { %v1403_v26 = vxor.u32 2147483648, %v1402_v7 }
 0x2c7   :  { %v1998_v25 = vsel %vm1996_vm1, %v1997_v2, %v1993_v38  ;;  %v2531_v34 = vadd.s32 1, %v2766_v36  ;;  %v1426_v16 = vand.u32 3, %v1425_v5  ;;  %v2529_v49 = vor.u32 8388608, %v2528_v6 }
 0x2c8   :  { %v1404_v22 = vsel %vm1283_vm13, %v1403_v26, %v1402_v7  ;;  %v1999_v43 = vadd.s32 %v1998_v25, %v1994_v62  ;;  %v1995_v36 = vadd.s32 %v4572_v3, %v4570_v17  ;;  %vm4656_vm13 = vcmp.le.f32.partialorder %v1901_v29, 0.7853982 }
 0x2c9   :  { %v1407_v20 = vsel %vm1282_vm2, %v4351_v9, %v1404_v22  ;;  %vm2532_vm0 = vcmp.gt.s32.totalorder %v2531_v34, 0  ;;  %vm1428_vm5 = vcmp.eq.s32.totalorder %v1426_v16, 0  ;;  %vm1431_vm3 = vcmp.eq.s32.totalorder %v1426_v16, 2 }
 0x2ca   :  { %v1409_v58 = vmul.f32 %v1407_v20, %v1407_v20  ;;  %v2000_v23 = vadd.s32 536870912, %v1999_v43  ;;  %v2533_v4 = vsel %vm2532_vm0, %v2531_v34, 0  ;;  %vm1427_vm7 = vcmp.lt.s32.totalorder %v1426_v16, 2 }
 0x2cb   :  { %v2535_v31 = vand.u32 31, %v2533_v4  ;;  %v4593_v13 = vshrl.u32 %v2533_v4, 5  ;;  %v4617_v25 = vshll.u32 %v2529_v49, 8 }
 0x2cc   :  { %v1410_v56 = vmul.f32 -0.001358992, %v1409_v58  ;;  %v1417_v39 = vmul.f32 -0.00019511016, %v1409_v58  ;;  %v4586_v32 = vshrl.u32 %v2000_v23, 30 }
 0x2cd   :  { %v4591_v35 = vsub.s32 32, %v2535_v31  ;;  %v2538_v30 = vshll.u32 %v2804_v55, %v2535_v31  ;;  %v2541_v44 = vshll.u32 %v2805_v57, %v2535_v31  ;;  %v2547_v28 = vshll.u32 %v2807_v61, %v2535_v31 }
 0x2ce   :  { %v1411_v60 = vadd.f32 0.041655596, %v1410_v56  ;;  %v1418_v52 = vadd.f32 0.008332121, %v1417_v39  ;;  %v2002_v21 = vshll.u32 %v4586_v32, 30  ;;  %v2550_v62 = vshll.u32 %v2808_v63, %v2535_v31 }
 0x2cf   :  { %v2539_v53 = vshrl.u32 %v2805_v57, %v4591_v35  ;;  %v2542_v46 = vshrl.u32 %v2806_v59, %v4591_v35  ;;  %v2545_v11 = vshrl.u32 %v2807_v61, %v4591_v35  ;;  %v2548_v48 = vshrl.u32 %v2808_v63, %v4591_v35 }
 0x2d0   :  { %v1412_v18 = vmul.f32 %v1411_v60, %v1409_v58  ;;  %v1419_v42 = vmul.f32 %v1418_v52, %v1409_v58  ;;  %v2003_v51 = vsub.s32 %v1999_v43, %v2002_v21  ;;  %v2551_v15 = vshrl.u32 %v2809_v8, %v4591_v35 }
 0x2d1   :  { %v4609_v7 = vor.u32 %v2539_v53, %v2538_v30  ;;  %v4611_v33 = vor.u32 %v2542_v46, %v2541_v44  ;;  %v2544_v57 = vshll.u32 %v2806_v59, %v2535_v31  ;;  %v2549_v26 = vor.u32 %v2548_v48, %v2547_v28 }
 0x2d2   :  { %v1413_v19 = vadd.f32 -0.4999988, %v1412_v18  ;;  %v1420_v0 = vadd.f32 -0.16666654, %v1419_v42  ;;  %vm2004_vm4 = vcmp.lt.s32.totalorder %v2003_v51, 0  ;;  %v2005_v10 = vsub.s32 0, %v2003_v51 }
 0x2d3   :  { %v2546_v61 = vor.u32 %v2545_v11, %v2544_v57  ;;  %v2552_v40 = vor.u32 %v2551_v15, %v2550_v62  ;;  %vm2553_vm11 = vcmp.lt.s32.totalorder %v4593_v13, 1  ;;  %vm2555_vm12 = vcmp.lt.s32.totalorder %v4593_v13, 3 }
 0x2d4   :  { %v1414_v47 = vmul.f32 %v1413_v19, %v1409_v58  ;;  %v1421_v37 = vmul.f32 %v1420_v0, %v1409_v58  ;;  %v2006_v50 = vsel %vm2004_vm4, %v2005_v10, %v2003_v51  ;;  %vm2556_vm10 = vcmp.lt.s32.totalorder %v4593_v13, 4 }
 0x2d5   :  { %v2007_v1 = vclz %v2006_v50  ;;  %v2561_v17 = vsel %vm2553_vm11, %v4609_v7, %v4611_v33  ;;  %v2562_v3 = vsel %vm2556_vm10, %v2549_v26, 920167782  ;;  %vm2554_vm14 = vcmp.lt.s32.totalorder %v4593_v13, 2 }
 0x2d6   :  { %v1415_v41 = vadd.f32 1.0, %v1414_v47  ;;  %v1422_v54 = vadd.f32 1.0, %v1421_v37  ;;  %v2563_v56 = vsel %vm2555_vm12, %v2546_v61, %v2562_v3  ;;  %v2565_v39 = vsel %vm2553_vm11, %v4611_v33, %v2546_v61 }
 0x2d7   :  { %v2755_v38 = vadd.s32 4294967294, %v2007_v1  ;;  %v2564_v9 = vsel %vm2554_vm14, %v2561_v17, %v2563_v56  ;;  %v2566_v52 = vsel %vm2556_vm10, %v2552_v40, 1326507024  ;;  %v2570_v16 = vand.u32 65535, %v4617_v25 }
 0x2d8   :  { %v1423_v24 = vmul.f32 %v1422_v54, %v1407_v20  ;;  %v1432_v2 = vxor.u32 2147483648, %v1415_v41  ;;  %v2567_v21 = vsel %vm2555_vm12, %v2549_v26, %v2566_v52  ;;  %v2594_v6 = vand.u32 65535, %v2564_v9 }
 0x2d9   :  { %vm2756_vm6 = vcmp.lt.s32.totalorder %v2755_v38, 0  ;;  %v2595_v18 = vshrl.u32 %v2564_v9, 16  ;;  %v2571_v19 = vshrl.u32 %v4617_v25, 16  ;;  %v2025_v50 = vsub.s32 4, %v4586_v32 }
 0x2da   :  { %v1429_v8 = vxor.u32 2147483648, %v1423_v24  ;;  %v2010_v22 = vsel %vm2756_vm6, 0, %v2755_v38  ;;  %v1433_v63 = vsel %vm1431_vm3, %v1432_v2, %v1423_v24  ;;  %v2537_v30 = vshrl.u32 %v2804_v55, %v4591_v35 }
 0x2db   :  { %v2011_v43 = vsub.s32 32, %v2010_v22  ;;  %v2015_v34 = vsub.s32 4294967266, %v2010_v22  ;;  %v2012_v58 = vshll.u32 %v2003_v51, %v2010_v22  ;;  %v2568_v51 = vsel %vm2554_vm14, %v2565_v39, %v2567_v21 }
 0x2dc   :  { %v1430_v59 = vsel %vm1428_vm5, %v1415_v41, %v1429_v8  ;;  %v2572_v0 = vand.u32 65535, %v2568_v51  ;;  %v2573_v10 = vshrl.u32 %v2568_v51, 16  ;;  %v2597_v49 = vmul.u32 %v2595_v18, %v2570_v16 }
 0x2dd   :  { %v1434_v20 = vsel %vm1427_vm7, %v1430_v59, %v1433_v63  ;;  %v2013_v23 = vshrl.u32 %v1995_v36, %v2011_v43  ;;  %v2016_v5 = vadd.s32 127, %v2015_v34  ;;  %v2598_v37 = vmul.u32 %v2594_v6, %v2571_v19 }
 0x2de   :  { %v1435_v4 = vsel %vm1424_vm9, nan, %v1434_v20  ;;  %v2575_v1 = vmul.u32 %v2573_v10, %v2570_v16  ;;  %v2576_v44 = vmul.u32 %v2572_v0, %v2571_v19  ;;  %v2558_v48 = vsel %vm2556_vm10, %v2546_v61, 2102212464 }
 0x2df   :  { %2684 = vst.msk [vmem:[%s4705_s3 + $0x38] sm:$0xff] %vm2676_vm8, %v1435_v4  ;;  %v2014_v31 = vor.u32 %v2013_v23, %v2012_v58  ;;  %v2017_v60 = vshll.u32 %v2016_v5, 23  ;;  %v2596_v41 = vmul.u32 %v2594_v6, %v2570_v16  ;;  %v2600_v54 = vshll.u32 %v2597_v49, 16 }
 0x2e0   :  { %v2574_v29 = vmul.u32 %v2572_v0, %v2570_v16  ;;  %v2577_v28 = vmul.u32 %v2573_v10, %v2571_v19  ;;  %v2578_v15 = vshll.u32 %v2575_v1, 16  ;;  %v2599_v38 = vmul.u32 %v2595_v18, %v2571_v19 }
 0x2e1   :  { %v2018_v42 = vor.u32 4788187, %v2017_v60  ;;  %v2021_v47 = vcvt.s32.f32 %v2014_v31  ;;  %v2602_v24 = vshll.u32 %v2598_v37, 16  ;;  %vm2604_vm1 = vc.u32 %v2596_v41, %v2600_v54 }
 0x2e2   :  { %v2606_v2 = vadd.s32 %v2600_v54, %v2596_v41  ;;  %v2580_v26 = vshll.u32 %v2576_v44, 16  ;;  %vm2582_vm2 = vc.u32 %v2574_v29, %v2578_v15  ;;  %v2584_v62 = vadd.s32 %v2578_v15, %v2574_v29 }
 0x2e3   :  { %v2019_v46 = vand.u32 2147483647, %v2018_v42  ;;  %v2605_v55 = vsel %vm2604_vm1, 1, %v2810_v14  ;;  %v2583_v36 = vsel %vm2582_vm2, 1, %v2810_v14  ;;  %v2601_v59 = vshrl.u32 %v2597_v49, 16 }
 0x2e4   :  { %v2607_v61 = vadd.s32 %v2605_v55, %v2599_v38  ;;  %vm2608_vm0 = vc.u32 %v2606_v2, %v2602_v24  ;;  %v2585_v22 = vadd.s32 %v2583_v36, %v2577_v28  ;;  %vm2586_vm4 = vc.u32 %v2584_v62, %v2580_v26 }
 0x2e5   :  { %v2022_v11 = vmul.f32 %v2021_v47, %v2019_v46  ;;  %v2609_v40 = vsel %vm2608_vm0, 1, %v2810_v14  ;;  %v2587_v34 = vsel %vm2586_vm4, 1, %v2810_v14  ;;  %v2557_v17 = vsel %vm2553_vm11, %v2537_v30, %v4609_v7 }
 0x2e6   :  { %v2611_v63 = vadd.s32 %v2609_v40, %v2607_v61  ;;  %v2559_v3 = vsel %vm2555_vm12, %v4611_v33, %v2558_v48  ;;  %v2579_v20 = vshrl.u32 %v2575_v1, 16  ;;  %v2589_v58 = vadd.s32 %v2587_v34, %v2585_v22 }
 0x2e7   :  { %v2023_v57 = vxor.u32 2147483648, %v2022_v11  ;;  %v2603_v4 = vshrl.u32 %v2598_v37, 16  ;;  %v2026_v14 = vsel %vm1903_vm15, %v2025_v50, %v4586_v32  ;;  %v2581_v39 = vshrl.u32 %v2576_v44, 16 }
 0x2e8   :  { %v2612_v56 = vadd.s32 %v2611_v63, %v2601_v59  ;;  %v2590_v31 = vadd.s32 %v2589_v58, %v2579_v20  ;;  %v2560_v7 = vsel %vm2554_vm14, %v2557_v17, %v2559_v3  ;;  %v2610_v33 = vadd.s32 %v2606_v2, %v2602_v24 }
 0x2e9   :  { %v2024_v35 = vsel %vm1903_vm15, %v2023_v57, %v2022_v11  ;;  %v2028_v16 = vsel %vm4656_vm13, 0, %v2026_v14  ;;  %v2614_v51 = vmul.u32 %v4617_v25, %v2560_v7  ;;  %vm2044_vm6 = vweird.f32 %v4353_v45 }
 0x2ea   :  { %v2027_v8 = vsel %vm4656_vm13, %v4353_v45, %v2024_v35  ;;  %v2613_v52 = vadd.s32 %v2612_v56, %v2603_v4  ;;  %v2591_v21 = vadd.s32 %v2590_v31, %v2581_v39  ;;  %v2045_v10 = vadd.s32 3, %v2028_v16 }
 0x2eb   :  { %v2029_v43 = vmul.f32 %v2027_v8, %v2027_v8  ;;  %vm2523_vm10 = vcmp.lt.s32.totalorder %v4567_v27, 0  ;;  %vm2522_vm14 = vcmp.le.f32.partialorder %v2521_v12, 0.7853982  ;;  %vm2664_vm2 = vweird.f32 %v4567_v27 }
 0x2ec   :  { %v2617_v42 = vadd.s32 1, %v2613_v52  ;;  %vm2616_vm5 = vc.u32 %v2591_v21, %v2610_v33  ;;  %v2046_v30 = vand.u32 3, %v2045_v10  ;;  %v2615_v26 = vadd.s32 %v2610_v33, %v2591_v21 }
 0x2ed   :  { %v2030_v23 = vmul.f32 -0.001358992, %v2029_v43  ;;  %v2037_v5 = vmul.f32 -0.00019511016, %v2029_v43 }
 0x2ee   :  { %v2618_v0 = vsel %vm2616_vm5, %v2617_v42, %v2613_v52  ;;  %vm2048_vm3 = vcmp.eq.s32.totalorder %v2046_v30, 0  ;;  %vm2051_vm7 = vcmp.eq.s32.totalorder %v2046_v30, 2  ;;  %vm2047_vm9 = vcmp.lt.s32.totalorder %v2046_v30, 2 }
 0x2ef   :  { %v2031_v60 = vadd.f32 0.041655596, %v2030_v23  ;;  %v2038_v9 = vadd.f32 0.008332121, %v2037_v5  ;;  %v2619_v49 = vadd.s32 %v2618_v0, %v2614_v51 }
 0x2f1   :  { %v2032_v6 = vmul.f32 %v2031_v60, %v2029_v43  ;;  %v2039_v18 = vmul.f32 %v2038_v9, %v2029_v43  ;;  %v2620_v47 = vadd.s32 536870912, %v2619_v49 }
 0x2f3   :  { %v2033_v32 = vadd.f32 -0.4999988, %v2032_v6  ;;  %v2040_v19 = vadd.f32 -0.16666654, %v2039_v18  ;;  %v2621_v1 = vshrl.u32 %v2620_v47, 30 }
 0x2f5   :  { %v2034_v46 = vmul.f32 %v2033_v32, %v2029_v43  ;;  %v2041_v13 = vmul.f32 %v2040_v19, %v2029_v43  ;;  %v2622_v11 = vshll.u32 %v2621_v1, 30  ;;  %v2645_v17 = vsub.s32 4, %v2621_v1 }
 0x2f7   :  { %v2035_v37 = vadd.f32 1.0, %v2034_v46  ;;  %v2042_v50 = vadd.f32 1.0, %v2041_v13  ;;  %v2623_v25 = vsub.s32 %v2619_v49, %v2622_v11  ;;  %v2646_v5 = vsel %vm2523_vm10, %v2645_v17, %v2621_v1 }
 0x2f8   :  { %v2648_v14 = vsel %vm2522_vm14, 0, %v2646_v5 }
 0x2f9   :  { %v2043_v53 = vmul.f32 %v2042_v50, %v2027_v8  ;;  %v2052_v44 = vxor.u32 2147483648, %v2035_v37  ;;  %vm2624_vm11 = vcmp.lt.s32.totalorder %v2623_v25, 0  ;;  %v2625_v28 = vsub.s32 0, %v2623_v25 }
 0x2fa   :  { %v2665_v7 = vadd.s32 3, %v2648_v14 }
 0x2fb   :  { %v2049_v48 = vxor.u32 2147483648, %v2043_v53  ;;  %v2053_v54 = vsel %vm2051_vm7, %v2052_v44, %v2043_v53  ;;  %v2626_v38 = vsel %vm2624_vm11, %v2625_v28, %v2623_v25 }
 0x2fc   :  { %v2627_v57 = vclz %v2626_v38  ;;  %v2666_v16 = vand.u32 3, %v2665_v7 }
 0x2fd   :  { %v2050_v41 = vsel %vm2048_vm3, %v2035_v37, %v2049_v48 }
 0x2fe   :  { %v2054_v29 = vsel %vm2047_vm9, %v2050_v41, %v2053_v54  ;;  %v2767_v24 = vadd.s32 4294967294, %v2627_v57  ;;  %vm2668_vm15 = vcmp.eq.s32.totalorder %v2666_v16, 0  ;;  %vm2671_vm13 = vcmp.eq.s32.totalorder %v2666_v16, 2 }
 0x2ff   :  { %v2055_v15 = vsel %vm2044_vm6, nan, %v2054_v29  ;;  %vm2667_vm1 = vcmp.lt.s32.totalorder %v2666_v16, 2 }
 0x300   :  { %2688 = vst.msk [vmem:[%s4705_s3 + $0x58] sm:$0xff] %vm2676_vm8, %v2055_v15  ;;  %vm2768_vm12 = vcmp.lt.s32.totalorder %v2767_v24, 0 }
 0x301   :  { %v2630_v2 = vsel %vm2768_vm12, 0, %v2767_v24 }
 0x302   :  { %v2631_v62 = vsub.s32 32, %v2630_v2  ;;  %v2635_v55 = vsub.s32 4294967266, %v2630_v2  ;;  %v2632_v35 = vshll.u32 %v2623_v25, %v2630_v2 }
 0x304   :  { %v2633_v36 = vshrl.u32 %v2615_v26, %v2631_v62  ;;  %v2636_v45 = vadd.s32 127, %v2635_v55 }
 0x306   :  { %v2634_v61 = vor.u32 %v2633_v36, %v2632_v35  ;;  %v2637_v8 = vshll.u32 %v2636_v45, 23 }
 0x308   :  { %v2638_v22 = vor.u32 4788187, %v2637_v8  ;;  %v2641_v43 = vcvt.s32.f32 %v2634_v61 }
 0x30a   :  { %v2639_v40 = vand.u32 2147483647, %v2638_v22 }
 0x30c   :  { %v2642_v34 = vmul.f32 %v2641_v43, %v2639_v40 }
 0x30e   :  { %v2643_v59 = vxor.u32 2147483648, %v2642_v34 }
 0x310   :  { %v2644_v63 = vsel %vm2523_vm10, %v2643_v59, %v2642_v34 }
 0x311   :  { %v2647_v3 = vsel %vm2522_vm14, %v4567_v27, %v2644_v63 }
 0x312   :  { %v2649_v20 = vmul.f32 %v2647_v3, %v2647_v3 }
 0x314   :  { %v2650_v58 = vmul.f32 -0.001358992, %v2649_v20  ;;  %v2657_v23 = vmul.f32 -0.00019511016, %v2649_v20 }
 0x316   :  { %v2651_v4 = vadd.f32 0.041655596, %v2650_v58  ;;  %v2658_v56 = vadd.f32 0.008332121, %v2657_v23 }
 0x318   :  { %v2652_v39 = vmul.f32 %v2651_v4, %v2649_v20  ;;  %v2659_v31 = vmul.f32 %v2658_v56, %v2649_v20 }
 0x31a   :  { %v2653_v60 = vadd.f32 -0.4999988, %v2652_v39  ;;  %v2660_v9 = vadd.f32 -0.16666654, %v2659_v31 }
 0x31c   :  { %v2654_v52 = vmul.f32 %v2653_v60, %v2649_v20  ;;  %v2661_v21 = vmul.f32 %v2660_v9, %v2649_v20 }
 0x31e   :  { %v2655_v33 = vadd.f32 1.0, %v2654_v52  ;;  %v2662_v12 = vadd.f32 1.0, %v2661_v21 }
 0x320   :  { %v2663_v6 = vmul.f32 %v2662_v12, %v2647_v3  ;;  %v2672_v18 = vxor.u32 2147483648, %v2655_v33 }
 0x322   :  { %v2669_v42 = vxor.u32 2147483648, %v2663_v6  ;;  %v2673_v32 = vsel %vm2671_vm13, %v2672_v18, %v2663_v6 }
 0x324   :  { %v2670_v51 = vsel %vm2668_vm15, %v2655_v33, %v2669_v42 }
 0x325   :  { %v2674_v19 = vsel %vm2667_vm1, %v2670_v51, %v2673_v32 }
 0x326   :  { %v2675_v0 = vsel %vm2664_vm2, nan, %v2674_v19 }
 0x327   :  { %2692 = vst.msk [vmem:[%s4705_s3 + $0x78] sm:$0xff] %vm2676_vm8, %v2675_v0 }

</bundles_post_ra>
